<compile_context>
chip_gen: v7x
topology: tpu7x:2x2x1
jax: 0.10.0
libtpu: 0.0.40
codegen_flags: <defaults>
</compile_context>

<pallas_src>
import jax
import jax.numpy as jnp
from jax.experimental import pallas as pl
from jax.experimental.pallas import tpu as pltpu

# ---- small, module-consistent config ----------------------------------------
H, W = 4, 8                    # light map (h, w)
N_MULT = 1                     # "n" in the module
LIGHT_TYPE_COUNT = 17
BATCH = 2

HW = H * W                     # in_conv input channels (32)
C = N_MULT * 128               # self.c
INTER = N_MULT * 64            # self.inter_ch (= K of every matmul)
HALF = INTER // 2
OUT_CH = C // 2                # out_conv output channels (64)
NUM_RES = 7
LRELU_SLOPE = 0.1
BN_EPS = 1e-5

LANES = 128                    # lane width of activation / output slabs
B_PAD = 8                      # padded batch (f32 sublane tile)
LTYPE_OFF = HW                 # light_type input lanes start (32)
CL_MID_OFF = 32                # classification intermediate-channel lane offset
NUM_W = 19                     # fused weight blocks
BN_S_ROW = 19                  # bias-slab row holding bn_lrelu scale
BN_T_ROW = 20                  # bias-slab row holding bn_lrelu shift
NUM_B = 24                     # bias-slab rows (padded to multiple of 8)
PREFETCH = 4                   # weight-block prefetch depth (layers of lead)

assert HW + LIGHT_TYPE_COUNT <= INTER           # input packing fits in K=64
assert LIGHT_TYPE_COUNT <= CL_MID_OFF
assert CL_MID_OFF + LIGHT_TYPE_COUNT <= INTER
assert OUT_CH + NUM_RES <= LANES
assert NUM_W + 2 <= NUM_B


# ---- kernel ------------------------------------------------------------------
def light_encoder_kernel(inp_ref, w_hbm, b_ref, out_ref, wbuf, sems):
    def start_w(i):
        pltpu.make_async_copy(w_hbm.at[i], wbuf.at[i], sems.at[i]).start()

    def wait_w(i):
        pltpu.make_async_copy(w_hbm.at[i], wbuf.at[i], sems.at[i]).wait()

    # Prime the per-layer weight prefetch pipeline (depth PREFETCH blocks).
    for i in range(min(PREFETCH, NUM_W)):
        start_w(i)

    def mm(x, i):
        # 1x1 conv (+ folded eval-mode BN bias) as a K=64 bf16 MXU matmul.
        wait_w(i)
        if i + PREFETCH < NUM_W:
            start_w(i + PREFETCH)              # keep DMA ahead of compute
        y = jnp.dot(x[:, :INTER].astype(jnp.bfloat16), wbuf[i],
                    preferred_element_type=jnp.float32)
        # The (1,128)->(8,128) bias broadcast is independent of the dot result,
        # so it schedules off the serial critical path.
        return y + b_ref[i:i + 1, :]

    def cbl(x, i):                             # conv -> BN -> LeakyReLU(0.1)
        y = mm(x, i)
        return jnp.maximum(y, LRELU_SLOPE * y)

    x = inp_ref[...]                           # (B_PAD, 128) f32

    # in_conv + classification, both DoubleConvs fused block-diagonally:
    t = cbl(x, 0)      # lanes 0:17 = in_conv L1 out, 32:49 = classification L1 out
    t = cbl(t, 1)      # lanes 0:32 = light, 32:64 = light_type  == cat(...)
    x = mm(t, 2)       # self.conv (plain 1x1 conv, no activation)

    lane = jax.lax.broadcasted_iota(jnp.int32, (B_PAD, LANES), 1)
    ch_valid = lane < INTER
    neg_inf = jnp.full((B_PAD, LANES), -jnp.inf, jnp.float32)
    skip_acc = jnp.zeros((B_PAD, LANES), jnp.float32)

    for k in range(NUM_RES):
        r = cbl(x, 3 + 2 * k)
        r = cbl(r, 4 + 2 * k)
        x = x + r
        # MaxPool3d((INTER,1,1)) on (B,INTER,1,1) == max over real channels of r.
        # Padded lanes are exactly zero and must be masked out (-inf) so they
        # never win when all real channels are negative.
        m = jnp.max(jnp.where(ch_valid, r, neg_inf), axis=1, keepdims=True)
        skip_acc = jnp.where(lane == OUT_CH + k, m, skip_acc)

    # self.bn_lrelu(x)  (eval-mode BN as per-channel affine, then LeakyReLU)
    x = x * b_ref[BN_S_ROW:BN_S_ROW + 1, :] + b_ref[BN_T_ROW:BN_T_ROW + 1, :]
    x = jnp.maximum(x, LRELU_SLOPE * x)

    # self.out_conv(x)
    y = cbl(x, 17)
    y = cbl(y, 18)     # features in lanes 0:OUT_CH, padded lanes exactly zero

    # Features + 7 skip maxima merged into ONE lane-dense (8,128) store.
    out_ref[...] = y + skip_acc


# ---- parameter setup: deterministic synthetic params, BN folded, packed ------
def _conv_bn(key, cin, cout):
    kw, kb, kg, ke = jax.random.split(key, 4)
    w = jax.random.normal(kw, (cin, cout), jnp.float32) / jnp.sqrt(float(cin))
    b = 0.01 * jax.random.normal(kb, (cout,), jnp.float32)
    gamma = 1.0 + 0.1 * jax.random.normal(kg, (cout,), jnp.float32)
    beta = 0.1 * jax.random.normal(ke, (cout,), jnp.float32)
    s = gamma / jnp.sqrt(1.0 + BN_EPS)       # running_mean=0, running_var=1
    return w * s[None, :], b * s + beta


def _plain_conv(key, cin, cout):
    kw, kb = jax.random.split(key, 2)
    w = jax.random.normal(kw, (cin, cout), jnp.float32) / jnp.sqrt(float(cin))
    b = 0.01 * jax.random.normal(kb, (cout,), jnp.float32)
    return w, b


def init_packed_params(key):
    keys = iter(jax.random.split(key, 32))
    Wslab = jnp.zeros((NUM_W, INTER, LANES), jnp.float32)   # only 64 K-rows kept
    Bslab = jnp.zeros((NUM_B, LANES), jnp.float32)

    def place(Wslab, Bslab, idx, w, b, row_off=0, col_off=0):
        cin, cout = w.shape
        Wslab = Wslab.at[idx, row_off:row_off + cin,
                         col_off:col_off + cout].set(w)
        Bslab = Bslab.at[idx, col_off:col_off + cout].set(b)
        return Wslab, Bslab

    # block 0: in_conv layer1 (+ classification layer1, disjoint rows/cols,
    # both within the first 64 K-rows because light_type sits at lanes 32:49)
    w, b = _conv_bn(next(keys), HW, LIGHT_TYPE_COUNT)
    Wslab, Bslab = place(Wslab, Bslab, 0, w, b, row_off=0, col_off=0)
    w, b = _conv_bn(next(keys), LIGHT_TYPE_COUNT, LIGHT_TYPE_COUNT)
    Wslab, Bslab = place(Wslab, Bslab, 0, w, b,
                         row_off=LTYPE_OFF, col_off=CL_MID_OFF)

    # block 1: in_conv layer2 (+ classification layer2 -> output lanes HALF:INTER,
    # realizing cat([light, light_type], dim=1) purely by weight placement)
    w, b = _conv_bn(next(keys), LIGHT_TYPE_COUNT, HALF)
    Wslab, Bslab = place(Wslab, Bslab, 1, w, b, row_off=0, col_off=0)
    w, b = _conv_bn(next(keys), LIGHT_TYPE_COUNT, HALF)
    Wslab, Bslab = place(Wslab, Bslab, 1, w, b,
                         row_off=CL_MID_OFF, col_off=HALF)

    # block 2: self.conv (plain 1x1 conv, INTER -> INTER)
    w, b = _plain_conv(next(keys), INTER, INTER)
    Wslab, Bslab = place(Wslab, Bslab, 2, w, b)

    # blocks 3..16: 7 ResConv DoubleConvs (INTER -> INTER -> INTER)
    for k in range(NUM_RES):
        w, b = _conv_bn(next(keys), INTER, INTER)
        Wslab, Bslab = place(Wslab, Bslab, 3 + 2 * k, w, b)
        w, b = _conv_bn(next(keys), INTER, INTER)
        Wslab, Bslab = place(Wslab, Bslab, 4 + 2 * k, w, b)

    # blocks 17, 18: out_conv (Inconv / DoubleConv: INTER -> INTER -> OUT_CH)
    w, b = _conv_bn(next(keys), INTER, INTER)
    Wslab, Bslab = place(Wslab, Bslab, 17, w, b)
    w, b = _conv_bn(next(keys), INTER, OUT_CH)
    Wslab, Bslab = place(Wslab, Bslab, 18, w, b)

    # bn_lrelu affine (eval-mode BN) rows
    kg, ke = jax.random.split(next(keys), 2)
    gamma = 1.0 + 0.1 * jax.random.normal(kg, (INTER,), jnp.float32)
    beta = 0.1 * jax.random.normal(ke, (INTER,), jnp.float32)
    Bslab = Bslab.at[BN_S_ROW, 0:INTER].set(gamma / jnp.sqrt(1.0 + BN_EPS))
    Bslab = Bslab.at[BN_T_ROW, 0:INTER].set(beta)

    return Wslab.astype(jnp.bfloat16), Bslab


# ---- wrapper -----------------------------------------------------------------
def light_encoder(light, light_type, w_slab, b_slab):
    bsz = light.shape[0]
    light_flat = light.reshape(bsz, -1).astype(jnp.float32)          # (B, HW)
    ltype_flat = light_type.reshape(bsz, LIGHT_TYPE_COUNT).astype(jnp.float32)

    # Pack both inputs into one lane-dense (B_PAD, 128) slab; only the first
    # INTER lanes are ever contracted by the kernel's K=64 matmuls.
    inp = jnp.zeros((B_PAD, LANES), jnp.float32)
    inp = inp.at[:bsz, 0:HW].set(light_flat)
    inp = inp.at[:bsz, LTYPE_OFF:LTYPE_OFF + LIGHT_TYPE_COUNT].set(ltype_flat)

    vmem = pl.BlockSpec(memory_space=pltpu.MemorySpace.VMEM)
    hbm = pl.BlockSpec(memory_space=pl.ANY)      # weights stay in HBM; manual DMA
    cost = pl.CostEstimate(
        flops=2 * B_PAD * INTER * LANES * NUM_W,
        transcendentals=0,
        bytes_accessed=int(w_slab.size) * 2 + int(b_slab.size) * 4
        + B_PAD * LANES * 4 * 2,
    )

    out = pl.pallas_call(
        light_encoder_kernel,
        out_shape=jax.ShapeDtypeStruct((B_PAD, LANES), jnp.float32),
        in_specs=[vmem, hbm, vmem],
        out_specs=vmem,
        scratch_shapes=[pltpu.VMEM((NUM_W, INTER, LANES), jnp.bfloat16),
                        pltpu.SemaphoreType.DMA((NUM_W,))],
        cost_estimate=cost,
    )(inp, w_slab, b_slab)

    feat = out[:bsz, :OUT_CH].reshape(bsz, OUT_CH, 1, 1)
    # res.repeat((1,1,2**(7-i),2**(7-i))) on a (B,1,1,1) tensor == broadcast
    skips = []
    for i in range(NUM_RES):
        s = 2 ** (NUM_RES - i)
        skips.append(jnp.broadcast_to(
            out[:bsz, OUT_CH + i].reshape(bsz, 1, 1, 1), (bsz, 1, s, s)))
    return feat, skips


# ---- main --------------------------------------------------------------------
if __name__ == "__main__":
    key = jax.random.PRNGKey(0)
    k_light, k_type, k_params = jax.random.split(key, 3)

    light = jax.random.normal(k_light, (BATCH, H, W), jnp.float32)
    light_type = jax.random.normal(k_type, (BATCH, LIGHT_TYPE_COUNT), jnp.float32)
    w_slab, b_slab = init_packed_params(k_params)

    out, skips = light_encoder(light, light_type, w_slab, b_slab)
    jax.block_until_ready(out)
    for s in skips:
        jax.block_until_ready(s)

    assert out.shape == (BATCH, OUT_CH, 1, 1)
    for i, s in enumerate(skips):
        assert s.shape == (BATCH, 1, 2 ** (NUM_RES - i), 2 ** (NUM_RES - i))
    print("KERNEL_OK")
</pallas_src>

<mosaic_0001>
module attributes {stable_mosaic.version = 11 : i64} {
  func.func @light_encoder_kernel(%arg0: memref<8x128xf32, #tpu.memory_space<vmem>>, %arg1: memref<19x64x128xbf16, #tpu.memory_space<any>>, %arg2: memref<24x128xf32, #tpu.memory_space<vmem>>, %arg3: memref<8x128xf32, #tpu.memory_space<vmem>>, %arg4: memref<19x64x128xbf16, #tpu.memory_space<vmem>>, %arg5: memref<19x!tpu.dma_semaphore, #tpu.memory_space<semaphore_mem>>) attributes {dimension_semantics = [], scalar_prefetch = 0 : i64, scratch_operands = 2 : i64, tpu.core_type = #tpu.core_type<tc>} {
    %c0_i32 = arith.constant 0 : i32
    %c0_i32_0 = arith.constant 0 : i32
    %c0_i32_1 = arith.constant 0 : i32
    %c0_i32_2 = arith.constant 0 : i32
    %c0_i32_3 = arith.constant 0 : i32
    %0 = tpu.memref_slice %arg1[%c0_i32, %c0_i32_2, %c0_i32_3] : memref<19x64x128xbf16, #tpu.memory_space<any>> -> memref<1x64x128xbf16, #tpu.memory_space<any>>
    %1 = tpu.memref_squeeze %0 : memref<1x64x128xbf16, #tpu.memory_space<any>> -> memref<64x128xbf16, #tpu.memory_space<any>>
    %c0_i32_4 = arith.constant 0 : i32
    %c0_i32_5 = arith.constant 0 : i32
    %2 = tpu.memref_slice %arg4[%c0_i32_0, %c0_i32_4, %c0_i32_5] : memref<19x64x128xbf16, #tpu.memory_space<vmem>> -> memref<1x64x128xbf16, #tpu.memory_space<vmem>>
    %3 = tpu.memref_squeeze %2 : memref<1x64x128xbf16, #tpu.memory_space<vmem>> -> memref<64x128xbf16, #tpu.memory_space<vmem>>
    %4 = tpu.memref_slice %arg5[%c0_i32_1] : memref<19x!tpu.dma_semaphore, #tpu.memory_space<semaphore_mem>> -> memref<1x!tpu.dma_semaphore, #tpu.memory_space<semaphore_mem>>
    %5 = tpu.memref_squeeze %4 : memref<1x!tpu.dma_semaphore, #tpu.memory_space<semaphore_mem>> -> memref<!tpu.dma_semaphore, #tpu.memory_space<semaphore_mem>>
    tpu.enqueue_dma source(%1 : memref<64x128xbf16, #tpu.memory_space<any>>) target(%3 : memref<64x128xbf16, #tpu.memory_space<vmem>>) target_semaphore(%5 : memref<!tpu.dma_semaphore, #tpu.memory_space<semaphore_mem>>)
    %c1_i32 = arith.constant 1 : i32
    %c1_i32_6 = arith.constant 1 : i32
    %c1_i32_7 = arith.constant 1 : i32
    %c0_i32_8 = arith.constant 0 : i32
    %c0_i32_9 = arith.constant 0 : i32
    %6 = tpu.memref_slice %arg1[%c1_i32, %c0_i32_8, %c0_i32_9] : memref<19x64x128xbf16, #tpu.memory_space<any>> -> memref<1x64x128xbf16, #tpu.memory_space<any>>
    %7 = tpu.memref_squeeze %6 : memref<1x64x128xbf16, #tpu.memory_space<any>> -> memref<64x128xbf16, #tpu.memory_space<any>>
    %c0_i32_10 = arith.constant 0 : i32
    %c0_i32_11 = arith.constant 0 : i32
    %8 = tpu.memref_slice %arg4[%c1_i32_6, %c0_i32_10, %c0_i32_11] : memref<19x64x128xbf16, #tpu.memory_space<vmem>> -> memref<1x64x128xbf16, #tpu.memory_space<vmem>>
    %9 = tpu.memref_squeeze %8 : memref<1x64x128xbf16, #tpu.memory_space<vmem>> -> memref<64x128xbf16, #tpu.memory_space<vmem>>
    %10 = tpu.memref_slice %arg5[%c1_i32_7] : memref<19x!tpu.dma_semaphore, #tpu.memory_space<semaphore_mem>> -> memref<1x!tpu.dma_semaphore, #tpu.memory_space<semaphore_mem>>
    %11 = tpu.memref_squeeze %10 : memref<1x!tpu.dma_semaphore, #tpu.memory_space<semaphore_mem>> -> memref<!tpu.dma_semaphore, #tpu.memory_space<semaphore_mem>>
    tpu.enqueue_dma source(%7 : memref<64x128xbf16, #tpu.memory_space<any>>) target(%9 : memref<64x128xbf16, #tpu.memory_space<vmem>>) target_semaphore(%11 : memref<!tpu.dma_semaphore, #tpu.memory_space<semaphore_mem>>)
    %c2_i32 = arith.constant 2 : i32
    %c2_i32_12 = arith.constant 2 : i32
    %c2_i32_13 = arith.constant 2 : i32
    %c0_i32_14 = arith.constant 0 : i32
    %c0_i32_15 = arith.constant 0 : i32
    %12 = tpu.memref_slice %arg1[%c2_i32, %c0_i32_14, %c0_i32_15] : memref<19x64x128xbf16, #tpu.memory_space<any>> -> memref<1x64x128xbf16, #tpu.memory_space<any>>
    %13 = tpu.memref_squeeze %12 : memref<1x64x128xbf16, #tpu.memory_space<any>> -> memref<64x128xbf16, #tpu.memory_space<any>>
    %c0_i32_16 = arith.constant 0 : i32
    %c0_i32_17 = arith.constant 0 : i32
    %14 = tpu.memref_slice %arg4[%c2_i32_12, %c0_i32_16, %c0_i32_17] : memref<19x64x128xbf16, #tpu.memory_space<vmem>> -> memref<1x64x128xbf16, #tpu.memory_space<vmem>>
    %15 = tpu.memref_squeeze %14 : memref<1x64x128xbf16, #tpu.memory_space<vmem>> -> memref<64x128xbf16, #tpu.memory_space<vmem>>
    %16 = tpu.memref_slice %arg5[%c2_i32_13] : memref<19x!tpu.dma_semaphore, #tpu.memory_space<semaphore_mem>> -> memref<1x!tpu.dma_semaphore, #tpu.memory_space<semaphore_mem>>
    %17 = tpu.memref_squeeze %16 : memref<1x!tpu.dma_semaphore, #tpu.memory_space<semaphore_mem>> -> memref<!tpu.dma_semaphore, #tpu.memory_space<semaphore_mem>>
    tpu.enqueue_dma source(%13 : memref<64x128xbf16, #tpu.memory_space<any>>) target(%15 : memref<64x128xbf16, #tpu.memory_space<vmem>>) target_semaphore(%17 : memref<!tpu.dma_semaphore, #tpu.memory_space<semaphore_mem>>)
    %c3_i32 = arith.constant 3 : i32
    %c3_i32_18 = arith.constant 3 : i32
    %c3_i32_19 = arith.constant 3 : i32
    %c0_i32_20 = arith.constant 0 : i32
    %c0_i32_21 = arith.constant 0 : i32
    %18 = tpu.memref_slice %arg1[%c3_i32, %c0_i32_20, %c0_i32_21] : memref<19x64x128xbf16, #tpu.memory_space<any>> -> memref<1x64x128xbf16, #tpu.memory_space<any>>
    %19 = tpu.memref_squeeze %18 : memref<1x64x128xbf16, #tpu.memory_space<any>> -> memref<64x128xbf16, #tpu.memory_space<any>>
    %c0_i32_22 = arith.constant 0 : i32
    %c0_i32_23 = arith.constant 0 : i32
    %20 = tpu.memref_slice %arg4[%c3_i32_18, %c0_i32_22, %c0_i32_23] : memref<19x64x128xbf16, #tpu.memory_space<vmem>> -> memref<1x64x128xbf16, #tpu.memory_space<vmem>>
    %21 = tpu.memref_squeeze %20 : memref<1x64x128xbf16, #tpu.memory_space<vmem>> -> memref<64x128xbf16, #tpu.memory_space<vmem>>
    %22 = tpu.memref_slice %arg5[%c3_i32_19] : memref<19x!tpu.dma_semaphore, #tpu.memory_space<semaphore_mem>> -> memref<1x!tpu.dma_semaphore, #tpu.memory_space<semaphore_mem>>
    %23 = tpu.memref_squeeze %22 : memref<1x!tpu.dma_semaphore, #tpu.memory_space<semaphore_mem>> -> memref<!tpu.dma_semaphore, #tpu.memory_space<semaphore_mem>>
    tpu.enqueue_dma source(%19 : memref<64x128xbf16, #tpu.memory_space<any>>) target(%21 : memref<64x128xbf16, #tpu.memory_space<vmem>>) target_semaphore(%23 : memref<!tpu.dma_semaphore, #tpu.memory_space<semaphore_mem>>)
    %c0 = arith.constant 0 : index
    %c0_24 = arith.constant 0 : index
    %24 = vector.load %arg0[%c0, %c0_24] : memref<8x128xf32, #tpu.memory_space<vmem>>, vector<8x128xf32>
    %c0_i32_25 = arith.constant 0 : i32
    %c0_i32_26 = arith.constant 0 : i32
    %c0_i32_27 = arith.constant 0 : i32
    %c0_i32_28 = arith.constant 0 : i32
    %c0_i32_29 = arith.constant 0 : i32
    %25 = tpu.memref_slice %arg1[%c0_i32_25, %c0_i32_28, %c0_i32_29] : memref<19x64x128xbf16, #tpu.memory_space<any>> -> memref<1x64x128xbf16, #tpu.memory_space<any>>
    %26 = tpu.memref_squeeze %25 : memref<1x64x128xbf16, #tpu.memory_space<any>> -> memref<64x128xbf16, #tpu.memory_space<any>>
    %c0_i32_30 = arith.constant 0 : i32
    %c0_i32_31 = arith.constant 0 : i32
    %27 = tpu.memref_slice %arg4[%c0_i32_26, %c0_i32_30, %c0_i32_31] : memref<19x64x128xbf16, #tpu.memory_space<vmem>> -> memref<1x64x128xbf16, #tpu.memory_space<vmem>>
    %28 = tpu.memref_squeeze %27 : memref<1x64x128xbf16, #tpu.memory_space<vmem>> -> memref<64x128xbf16, #tpu.memory_space<vmem>>
    %29 = tpu.memref_slice %arg5[%c0_i32_27] : memref<19x!tpu.dma_semaphore, #tpu.memory_space<semaphore_mem>> -> memref<1x!tpu.dma_semaphore, #tpu.memory_space<semaphore_mem>>
    %30 = tpu.memref_squeeze %29 : memref<1x!tpu.dma_semaphore, #tpu.memory_space<semaphore_mem>> -> memref<!tpu.dma_semaphore, #tpu.memory_space<semaphore_mem>>
    tpu.wait_dma2 semaphore(%30 : memref<!tpu.dma_semaphore, #tpu.memory_space<semaphore_mem>>) src(%26 : memref<64x128xbf16, #tpu.memory_space<any>>) dst(%28 : memref<64x128xbf16, #tpu.memory_space<vmem>>)
    %c4_i32 = arith.constant 4 : i32
    %c4_i32_32 = arith.constant 4 : i32
    %c4_i32_33 = arith.constant 4 : i32
    %c0_i32_34 = arith.constant 0 : i32
    %c0_i32_35 = arith.constant 0 : i32
    %31 = tpu.memref_slice %arg1[%c4_i32, %c0_i32_34, %c0_i32_35] : memref<19x64x128xbf16, #tpu.memory_space<any>> -> memref<1x64x128xbf16, #tpu.memory_space<any>>
    %32 = tpu.memref_squeeze %31 : memref<1x64x128xbf16, #tpu.memory_space<any>> -> memref<64x128xbf16, #tpu.memory_space<any>>
    %c0_i32_36 = arith.constant 0 : i32
    %c0_i32_37 = arith.constant 0 : i32
    %33 = tpu.memref_slice %arg4[%c4_i32_32, %c0_i32_36, %c0_i32_37] : memref<19x64x128xbf16, #tpu.memory_space<vmem>> -> memref<1x64x128xbf16, #tpu.memory_space<vmem>>
    %34 = tpu.memref_squeeze %33 : memref<1x64x128xbf16, #tpu.memory_space<vmem>> -> memref<64x128xbf16, #tpu.memory_space<vmem>>
    %35 = tpu.memref_slice %arg5[%c4_i32_33] : memref<19x!tpu.dma_semaphore, #tpu.memory_space<semaphore_mem>> -> memref<1x!tpu.dma_semaphore, #tpu.memory_space<semaphore_mem>>
    %36 = tpu.memref_squeeze %35 : memref<1x!tpu.dma_semaphore, #tpu.memory_space<semaphore_mem>> -> memref<!tpu.dma_semaphore, #tpu.memory_space<semaphore_mem>>
    tpu.enqueue_dma source(%32 : memref<64x128xbf16, #tpu.memory_space<any>>) target(%34 : memref<64x128xbf16, #tpu.memory_space<vmem>>) target_semaphore(%36 : memref<!tpu.dma_semaphore, #tpu.memory_space<semaphore_mem>>)
    %37 = vector.extract_strided_slice %24 {offsets = [0, 0], sizes = [8, 64], strides = [1, 1]} : vector<8x128xf32> to vector<8x64xf32>
    %38 = arith.truncf %37 : vector<8x64xf32> to vector<8x64xbf16>
    %c0_38 = arith.constant 0 : index
    %c0_39 = arith.constant 0 : index
    %c0_40 = arith.constant 0 : index
    %39 = vector.load %arg4[%c0_38, %c0_39, %c0_40] : memref<19x64x128xbf16, #tpu.memory_space<vmem>>, vector<1x64x128xbf16>
    %40 = vector.shape_cast %39 : vector<1x64x128xbf16> to vector<64x128xbf16>
    %cst = arith.constant dense<0.000000e+00> : vector<8x128xf32>
    %41 = tpu.matmul %38, %40, %cst {dimension_numbers = #tpu.dot_dimension_numbers<[1], [0], [0], [1], [0, 0, 1, 1], [], []>} : vector<8x64xbf16>, vector<64x128xbf16>, vector<8x128xf32> -> vector<8x128xf32>
    %c0_41 = arith.constant 0 : index
    %c0_42 = arith.constant 0 : index
    %42 = vector.load %arg2[%c0_41, %c0_42] : memref<24x128xf32, #tpu.memory_space<vmem>>, vector<1x128xf32>
    %43 = vector.broadcast %42 : vector<1x128xf32> to vector<8x128xf32>
    %44 = arith.addf %41, %43 : vector<8x128xf32>
    %cst_43 = arith.constant 1.000000e-01 : f32
    %45 = vector.broadcast %cst_43 : f32 to vector<8x128xf32>
    %46 = arith.mulf %45, %44 : vector<8x128xf32>
    %47 = arith.maximumf %44, %46 : vector<8x128xf32>
    %c1_i32_44 = arith.constant 1 : i32
    %c1_i32_45 = arith.constant 1 : i32
    %c1_i32_46 = arith.constant 1 : i32
    %c0_i32_47 = arith.constant 0 : i32
    %c0_i32_48 = arith.constant 0 : i32
    %48 = tpu.memref_slice %arg1[%c1_i32_44, %c0_i32_47, %c0_i32_48] : memref<19x64x128xbf16, #tpu.memory_space<any>> -> memref<1x64x128xbf16, #tpu.memory_space<any>>
    %49 = tpu.memref_squeeze %48 : memref<1x64x128xbf16, #tpu.memory_space<any>> -> memref<64x128xbf16, #tpu.memory_space<any>>
    %c0_i32_49 = arith.constant 0 : i32
    %c0_i32_50 = arith.constant 0 : i32
    %50 = tpu.memref_slice %arg4[%c1_i32_45, %c0_i32_49, %c0_i32_50] : memref<19x64x128xbf16, #tpu.memory_space<vmem>> -> memref<1x64x128xbf16, #tpu.memory_space<vmem>>
    %51 = tpu.memref_squeeze %50 : memref<1x64x128xbf16, #tpu.memory_space<vmem>> -> memref<64x128xbf16, #tpu.memory_space<vmem>>
    %52 = tpu.memref_slice %arg5[%c1_i32_46] : memref<19x!tpu.dma_semaphore, #tpu.memory_space<semaphore_mem>> -> memref<1x!tpu.dma_semaphore, #tpu.memory_space<semaphore_mem>>
    %53 = tpu.memref_squeeze %52 : memref<1x!tpu.dma_semaphore, #tpu.memory_space<semaphore_mem>> -> memref<!tpu.dma_semaphore, #tpu.memory_space<semaphore_mem>>
    tpu.wait_dma2 semaphore(%53 : memref<!tpu.dma_semaphore, #tpu.memory_space<semaphore_mem>>) src(%49 : memref<64x128xbf16, #tpu.memory_space<any>>) dst(%51 : memref<64x128xbf16, #tpu.memory_space<vmem>>)
    %c5_i32 = arith.constant 5 : i32
    %c5_i32_51 = arith.constant 5 : i32
    %c5_i32_52 = arith.constant 5 : i32
    %c0_i32_53 = arith.constant 0 : i32
    %c0_i32_54 = arith.constant 0 : i32
    %54 = tpu.memref_slice %arg1[%c5_i32, %c0_i32_53, %c0_i32_54] : memref<19x64x128xbf16, #tpu.memory_space<any>> -> memref<1x64x128xbf16, #tpu.memory_space<any>>
    %55 = tpu.memref_squeeze %54 : memref<1x64x128xbf16, #tpu.memory_space<any>> -> memref<64x128xbf16, #tpu.memory_space<any>>
    %c0_i32_55 = arith.constant 0 : i32
    %c0_i32_56 = arith.constant 0 : i32
    %56 = tpu.memref_slice %arg4[%c5_i32_51, %c0_i32_55, %c0_i32_56] : memref<19x64x128xbf16, #tpu.memory_space<vmem>> -> memref<1x64x128xbf16, #tpu.memory_space<vmem>>
    %57 = tpu.memref_squeeze %56 : memref<1x64x128xbf16, #tpu.memory_space<vmem>> -> memref<64x128xbf16, #tpu.memory_space<vmem>>
    %58 = tpu.memref_slice %arg5[%c5_i32_52] : memref<19x!tpu.dma_semaphore, #tpu.memory_space<semaphore_mem>> -> memref<1x!tpu.dma_semaphore, #tpu.memory_space<semaphore_mem>>
    %59 = tpu.memref_squeeze %58 : memref<1x!tpu.dma_semaphore, #tpu.memory_space<semaphore_mem>> -> memref<!tpu.dma_semaphore, #tpu.memory_space<semaphore_mem>>
    tpu.enqueue_dma source(%55 : memref<64x128xbf16, #tpu.memory_space<any>>) target(%57 : memref<64x128xbf16, #tpu.memory_space<vmem>>) target_semaphore(%59 : memref<!tpu.dma_semaphore, #tpu.memory_space<semaphore_mem>>)
    %60 = vector.extract_strided_slice %47 {offsets = [0, 0], sizes = [8, 64], strides = [1, 1]} : vector<8x128xf32> to vector<8x64xf32>
    %61 = arith.truncf %60 : vector<8x64xf32> to vector<8x64xbf16>
    %c1 = arith.constant 1 : index
    %c0_57 = arith.constant 0 : index
    %c0_58 = arith.constant 0 : index
    %62 = vector.load %arg4[%c1, %c0_57, %c0_58] : memref<19x64x128xbf16, #tpu.memory_space<vmem>>, vector<1x64x128xbf16>
    %63 = vector.shape_cast %62 : vector<1x64x128xbf16> to vector<64x128xbf16>
    %cst_59 = arith.constant dense<0.000000e+00> : vector<8x128xf32>
    %64 = tpu.matmul %61, %63, %cst_59 {dimension_numbers = #tpu.dot_dimension_numbers<[1], [0], [0], [1], [0, 0, 1, 1], [], []>} : vector<8x64xbf16>, vector<64x128xbf16>, vector<8x128xf32> -> vector<8x128xf32>
    %c1_60 = arith.constant 1 : index
    %c0_61 = arith.constant 0 : index
    %65 = vector.load %arg2[%c1_60, %c0_61] : memref<24x128xf32, #tpu.memory_space<vmem>>, vector<1x128xf32>
    %66 = vector.broadcast %65 : vector<1x128xf32> to vector<8x128xf32>
    %67 = arith.addf %64, %66 : vector<8x128xf32>
    %cst_62 = arith.constant 1.000000e-01 : f32
    %68 = vector.broadcast %cst_62 : f32 to vector<8x128xf32>
    %69 = arith.mulf %68, %67 : vector<8x128xf32>
    %70 = arith.maximumf %67, %69 : vector<8x128xf32>
    %c2_i32_63 = arith.constant 2 : i32
    %c2_i32_64 = arith.constant 2 : i32
    %c2_i32_65 = arith.constant 2 : i32
    %c0_i32_66 = arith.constant 0 : i32
    %c0_i32_67 = arith.constant 0 : i32
    %71 = tpu.memref_slice %arg1[%c2_i32_63, %c0_i32_66, %c0_i32_67] : memref<19x64x128xbf16, #tpu.memory_space<any>> -> memref<1x64x128xbf16, #tpu.memory_space<any>>
    %72 = tpu.memref_squeeze %71 : memref<1x64x128xbf16, #tpu.memory_space<any>> -> memref<64x128xbf16, #tpu.memory_space<any>>
    %c0_i32_68 = arith.constant 0 : i32
    %c0_i32_69 = arith.constant 0 : i32
    %73 = tpu.memref_slice %arg4[%c2_i32_64, %c0_i32_68, %c0_i32_69] : memref<19x64x128xbf16, #tpu.memory_space<vmem>> -> memref<1x64x128xbf16, #tpu.memory_space<vmem>>
    %74 = tpu.memref_squeeze %73 : memref<1x64x128xbf16, #tpu.memory_space<vmem>> -> memref<64x128xbf16, #tpu.memory_space<vmem>>
    %75 = tpu.memref_slice %arg5[%c2_i32_65] : memref<19x!tpu.dma_semaphore, #tpu.memory_space<semaphore_mem>> -> memref<1x!tpu.dma_semaphore, #tpu.memory_space<semaphore_mem>>
    %76 = tpu.memref_squeeze %75 : memref<1x!tpu.dma_semaphore, #tpu.memory_space<semaphore_mem>> -> memref<!tpu.dma_semaphore, #tpu.memory_space<semaphore_mem>>
    tpu.wait_dma2 semaphore(%76 : memref<!tpu.dma_semaphore, #tpu.memory_space<semaphore_mem>>) src(%72 : memref<64x128xbf16, #tpu.memory_space<any>>) dst(%74 : memref<64x128xbf16, #tpu.memory_space<vmem>>)
    %c6_i32 = arith.constant 6 : i32
    %c6_i32_70 = arith.constant 6 : i32
    %c6_i32_71 = arith.constant 6 : i32
    %c0_i32_72 = arith.constant 0 : i32
    %c0_i32_73 = arith.constant 0 : i32
    %77 = tpu.memref_slice %arg1[%c6_i32, %c0_i32_72, %c0_i32_73] : memref<19x64x128xbf16, #tpu.memory_space<any>> -> memref<1x64x128xbf16, #tpu.memory_space<any>>
    %78 = tpu.memref_squeeze %77 : memref<1x64x128xbf16, #tpu.memory_space<any>> -> memref<64x128xbf16, #tpu.memory_space<any>>
    %c0_i32_74 = arith.constant 0 : i32
    %c0_i32_75 = arith.constant 0 : i32
    %79 = tpu.memref_slice %arg4[%c6_i32_70, %c0_i32_74, %c0_i32_75] : memref<19x64x128xbf16, #tpu.memory_space<vmem>> -> memref<1x64x128xbf16, #tpu.memory_space<vmem>>
    %80 = tpu.memref_squeeze %79 : memref<1x64x128xbf16, #tpu.memory_space<vmem>> -> memref<64x128xbf16, #tpu.memory_space<vmem>>
    %81 = tpu.memref_slice %arg5[%c6_i32_71] : memref<19x!tpu.dma_semaphore, #tpu.memory_space<semaphore_mem>> -> memref<1x!tpu.dma_semaphore, #tpu.memory_space<semaphore_mem>>
    %82 = tpu.memref_squeeze %81 : memref<1x!tpu.dma_semaphore, #tpu.memory_space<semaphore_mem>> -> memref<!tpu.dma_semaphore, #tpu.memory_space<semaphore_mem>>
    tpu.enqueue_dma source(%78 : memref<64x128xbf16, #tpu.memory_space<any>>) target(%80 : memref<64x128xbf16, #tpu.memory_space<vmem>>) target_semaphore(%82 : memref<!tpu.dma_semaphore, #tpu.memory_space<semaphore_mem>>)
    %83 = vector.extract_strided_slice %70 {offsets = [0, 0], sizes = [8, 64], strides = [1, 1]} : vector<8x128xf32> to vector<8x64xf32>
    %84 = arith.truncf %83 : vector<8x64xf32> to vector<8x64xbf16>
    %c2 = arith.constant 2 : index
    %c0_76 = arith.constant 0 : index
    %c0_77 = arith.constant 0 : index
    %85 = vector.load %arg4[%c2, %c0_76, %c0_77] : memref<19x64x128xbf16, #tpu.memory_space<vmem>>, vector<1x64x128xbf16>
    %86 = vector.shape_cast %85 : vector<1x64x128xbf16> to vector<64x128xbf16>
    %cst_78 = arith.constant dense<0.000000e+00> : vector<8x128xf32>
    %87 = tpu.matmul %84, %86, %cst_78 {dimension_numbers = #tpu.dot_dimension_numbers<[1], [0], [0], [1], [0, 0, 1, 1], [], []>} : vector<8x64xbf16>, vector<64x128xbf16>, vector<8x128xf32> -> vector<8x128xf32>
    %c2_79 = arith.constant 2 : index
    %c0_80 = arith.constant 0 : index
    %88 = vector.load %arg2[%c2_79, %c0_80] : memref<24x128xf32, #tpu.memory_space<vmem>>, vector<1x128xf32>
    %89 = vector.broadcast %88 : vector<1x128xf32> to vector<8x128xf32>
    %90 = arith.addf %87, %89 : vector<8x128xf32>
    %91 = tpu.iota {dimensions = array<i32: 1>} : vector<8x128xi32>
    %c64_i32 = arith.constant 64 : i32
    %92 = vector.broadcast %c64_i32 : i32 to vector<8x128xi32>
    %93 = arith.cmpi slt, %91, %92 : vector<8x128xi32>
    %cst_81 = arith.constant 0xFF800000 : f32
    %94 = vector.broadcast %cst_81 : f32 to vector<8x128xf32>
    %cst_82 = arith.constant 0.000000e+00 : f32
    %95 = vector.broadcast %cst_82 : f32 to vector<8x128xf32>
    %c3_i32_83 = arith.constant 3 : i32
    %c3_i32_84 = arith.constant 3 : i32
    %c3_i32_85 = arith.constant 3 : i32
    %c0_i32_86 = arith.constant 0 : i32
    %c0_i32_87 = arith.constant 0 : i32
    %96 = tpu.memref_slice %arg1[%c3_i32_83, %c0_i32_86, %c0_i32_87] : memref<19x64x128xbf16, #tpu.memory_space<any>> -> memref<1x64x128xbf16, #tpu.memory_space<any>>
    %97 = tpu.memref_squeeze %96 : memref<1x64x128xbf16, #tpu.memory_space<any>> -> memref<64x128xbf16, #tpu.memory_space<any>>
    %c0_i32_88 = arith.constant 0 : i32
    %c0_i32_89 = arith.constant 0 : i32
    %98 = tpu.memref_slice %arg4[%c3_i32_84, %c0_i32_88, %c0_i32_89] : memref<19x64x128xbf16, #tpu.memory_space<vmem>> -> memref<1x64x128xbf16, #tpu.memory_space<vmem>>
    %99 = tpu.memref_squeeze %98 : memref<1x64x128xbf16, #tpu.memory_space<vmem>> -> memref<64x128xbf16, #tpu.memory_space<vmem>>
    %100 = tpu.memref_slice %arg5[%c3_i32_85] : memref<19x!tpu.dma_semaphore, #tpu.memory_space<semaphore_mem>> -> memref<1x!tpu.dma_semaphore, #tpu.memory_space<semaphore_mem>>
    %101 = tpu.memref_squeeze %100 : memref<1x!tpu.dma_semaphore, #tpu.memory_space<semaphore_mem>> -> memref<!tpu.dma_semaphore, #tpu.memory_space<semaphore_mem>>
    tpu.wait_dma2 semaphore(%101 : memref<!tpu.dma_semaphore, #tpu.memory_space<semaphore_mem>>) src(%97 : memref<64x128xbf16, #tpu.memory_space<any>>) dst(%99 : memref<64x128xbf16, #tpu.memory_space<vmem>>)
    %c7_i32 = arith.constant 7 : i32
    %c7_i32_90 = arith.constant 7 : i32
    %c7_i32_91 = arith.constant 7 : i32
    %c0_i32_92 = arith.constant 0 : i32
    %c0_i32_93 = arith.constant 0 : i32
    %102 = tpu.memref_slice %arg1[%c7_i32, %c0_i32_92, %c0_i32_93] : memref<19x64x128xbf16, #tpu.memory_space<any>> -> memref<1x64x128xbf16, #tpu.memory_space<any>>
    %103 = tpu.memref_squeeze %102 : memref<1x64x128xbf16, #tpu.memory_space<any>> -> memref<64x128xbf16, #tpu.memory_space<any>>
    %c0_i32_94 = arith.constant 0 : i32
    %c0_i32_95 = arith.constant 0 : i32
    %104 = tpu.memref_slice %arg4[%c7_i32_90, %c0_i32_94, %c0_i32_95] : memref<19x64x128xbf16, #tpu.memory_space<vmem>> -> memref<1x64x128xbf16, #tpu.memory_space<vmem>>
    %105 = tpu.memref_squeeze %104 : memref<1x64x128xbf16, #tpu.memory_space<vmem>> -> memref<64x128xbf16, #tpu.memory_space<vmem>>
    %106 = tpu.memref_slice %arg5[%c7_i32_91] : memref<19x!tpu.dma_semaphore, #tpu.memory_space<semaphore_mem>> -> memref<1x!tpu.dma_semaphore, #tpu.memory_space<semaphore_mem>>
    %107 = tpu.memref_squeeze %106 : memref<1x!tpu.dma_semaphore, #tpu.memory_space<semaphore_mem>> -> memref<!tpu.dma_semaphore, #tpu.memory_space<semaphore_mem>>
    tpu.enqueue_dma source(%103 : memref<64x128xbf16, #tpu.memory_space<any>>) target(%105 : memref<64x128xbf16, #tpu.memory_space<vmem>>) target_semaphore(%107 : memref<!tpu.dma_semaphore, #tpu.memory_space<semaphore_mem>>)
    %108 = vector.extract_strided_slice %90 {offsets = [0, 0], sizes = [8, 64], strides = [1, 1]} : vector<8x128xf32> to vector<8x64xf32>
    %109 = arith.truncf %108 : vector<8x64xf32> to vector<8x64xbf16>
    %c3 = arith.constant 3 : index
    %c0_96 = arith.constant 0 : index
    %c0_97 = arith.constant 0 : index
    %110 = vector.load %arg4[%c3, %c0_96, %c0_97] : memref<19x64x128xbf16, #tpu.memory_space<vmem>>, vector<1x64x128xbf16>
    %111 = vector.shape_cast %110 : vector<1x64x128xbf16> to vector<64x128xbf16>
    %cst_98 = arith.constant dense<0.000000e+00> : vector<8x128xf32>
    %112 = tpu.matmul %109, %111, %cst_98 {dimension_numbers = #tpu.dot_dimension_numbers<[1], [0], [0], [1], [0, 0, 1, 1], [], []>} : vector<8x64xbf16>, vector<64x128xbf16>, vector<8x128xf32> -> vector<8x128xf32>
    %c3_99 = arith.constant 3 : index
    %c0_100 = arith.constant 0 : index
    %113 = vector.load %arg2[%c3_99, %c0_100] : memref<24x128xf32, #tpu.memory_space<vmem>>, vector<1x128xf32>
    %114 = vector.broadcast %113 : vector<1x128xf32> to vector<8x128xf32>
    %115 = arith.addf %112, %114 : vector<8x128xf32>
    %cst_101 = arith.constant 1.000000e-01 : f32
    %116 = vector.broadcast %cst_101 : f32 to vector<8x128xf32>
    %117 = arith.mulf %116, %115 : vector<8x128xf32>
    %118 = arith.maximumf %115, %117 : vector<8x128xf32>
    %c4_i32_102 = arith.constant 4 : i32
    %c4_i32_103 = arith.constant 4 : i32
    %c4_i32_104 = arith.constant 4 : i32
    %c0_i32_105 = arith.constant 0 : i32
    %c0_i32_106 = arith.constant 0 : i32
    %119 = tpu.memref_slice %arg1[%c4_i32_102, %c0_i32_105, %c0_i32_106] : memref<19x64x128xbf16, #tpu.memory_space<any>> -> memref<1x64x128xbf16, #tpu.memory_space<any>>
    %120 = tpu.memref_squeeze %119 : memref<1x64x128xbf16, #tpu.memory_space<any>> -> memref<64x128xbf16, #tpu.memory_space<any>>
    %c0_i32_107 = arith.constant 0 : i32
    %c0_i32_108 = arith.constant 0 : i32
    %121 = tpu.memref_slice %arg4[%c4_i32_103, %c0_i32_107, %c0_i32_108] : memref<19x64x128xbf16, #tpu.memory_space<vmem>> -> memref<1x64x128xbf16, #tpu.memory_space<vmem>>
    %122 = tpu.memref_squeeze %121 : memref<1x64x128xbf16, #tpu.memory_space<vmem>> -> memref<64x128xbf16, #tpu.memory_space<vmem>>
    %123 = tpu.memref_slice %arg5[%c4_i32_104] : memref<19x!tpu.dma_semaphore, #tpu.memory_space<semaphore_mem>> -> memref<1x!tpu.dma_semaphore, #tpu.memory_space<semaphore_mem>>
    %124 = tpu.memref_squeeze %123 : memref<1x!tpu.dma_semaphore, #tpu.memory_space<semaphore_mem>> -> memref<!tpu.dma_semaphore, #tpu.memory_space<semaphore_mem>>
    tpu.wait_dma2 semaphore(%124 : memref<!tpu.dma_semaphore, #tpu.memory_space<semaphore_mem>>) src(%120 : memref<64x128xbf16, #tpu.memory_space<any>>) dst(%122 : memref<64x128xbf16, #tpu.memory_space<vmem>>)
    %c8_i32 = arith.constant 8 : i32
    %c8_i32_109 = arith.constant 8 : i32
    %c8_i32_110 = arith.constant 8 : i32
    %c0_i32_111 = arith.constant 0 : i32
    %c0_i32_112 = arith.constant 0 : i32
    %125 = tpu.memref_slice %arg1[%c8_i32, %c0_i32_111, %c0_i32_112] : memref<19x64x128xbf16, #tpu.memory_space<any>> -> memref<1x64x128xbf16, #tpu.memory_space<any>>
    %126 = tpu.memref_squeeze %125 : memref<1x64x128xbf16, #tpu.memory_space<any>> -> memref<64x128xbf16, #tpu.memory_space<any>>
    %c0_i32_113 = arith.constant 0 : i32
    %c0_i32_114 = arith.constant 0 : i32
    %127 = tpu.memref_slice %arg4[%c8_i32_109, %c0_i32_113, %c0_i32_114] : memref<19x64x128xbf16, #tpu.memory_space<vmem>> -> memref<1x64x128xbf16, #tpu.memory_space<vmem>>
    %128 = tpu.memref_squeeze %127 : memref<1x64x128xbf16, #tpu.memory_space<vmem>> -> memref<64x128xbf16, #tpu.memory_space<vmem>>
    %129 = tpu.memref_slice %arg5[%c8_i32_110] : memref<19x!tpu.dma_semaphore, #tpu.memory_space<semaphore_mem>> -> memref<1x!tpu.dma_semaphore, #tpu.memory_space<semaphore_mem>>
    %130 = tpu.memref_squeeze %129 : memref<1x!tpu.dma_semaphore, #tpu.memory_space<semaphore_mem>> -> memref<!tpu.dma_semaphore, #tpu.memory_space<semaphore_mem>>
    tpu.enqueue_dma source(%126 : memref<64x128xbf16, #tpu.memory_space<any>>) target(%128 : memref<64x128xbf16, #tpu.memory_space<vmem>>) target_semaphore(%130 : memref<!tpu.dma_semaphore, #tpu.memory_space<semaphore_mem>>)
    %131 = vector.extract_strided_slice %118 {offsets = [0, 0], sizes = [8, 64], strides = [1, 1]} : vector<8x128xf32> to vector<8x64xf32>
    %132 = arith.truncf %131 : vector<8x64xf32> to vector<8x64xbf16>
    %c4 = arith.constant 4 : index
    %c0_115 = arith.constant 0 : index
    %c0_116 = arith.constant 0 : index
    %133 = vector.load %arg4[%c4, %c0_115, %c0_116] : memref<19x64x128xbf16, #tpu.memory_space<vmem>>, vector<1x64x128xbf16>
    %134 = vector.shape_cast %133 : vector<1x64x128xbf16> to vector<64x128xbf16>
    %cst_117 = arith.constant dense<0.000000e+00> : vector<8x128xf32>
    %135 = tpu.matmul %132, %134, %cst_117 {dimension_numbers = #tpu.dot_dimension_numbers<[1], [0], [0], [1], [0, 0, 1, 1], [], []>} : vector<8x64xbf16>, vector<64x128xbf16>, vector<8x128xf32> -> vector<8x128xf32>
    %c4_118 = arith.constant 4 : index
    %c0_119 = arith.constant 0 : index
    %136 = vector.load %arg2[%c4_118, %c0_119] : memref<24x128xf32, #tpu.memory_space<vmem>>, vector<1x128xf32>
    %137 = vector.broadcast %136 : vector<1x128xf32> to vector<8x128xf32>
    %138 = arith.addf %135, %137 : vector<8x128xf32>
    %cst_120 = arith.constant 1.000000e-01 : f32
    %139 = vector.broadcast %cst_120 : f32 to vector<8x128xf32>
    %140 = arith.mulf %139, %138 : vector<8x128xf32>
    %141 = arith.maximumf %138, %140 : vector<8x128xf32>
    %142 = arith.addf %90, %141 : vector<8x128xf32>
    %143 = arith.select %93, %141, %94 : vector<8x128xi1>, vector<8x128xf32>
    %cst_121 = arith.constant dense<0xFF800000> : vector<8xf32>
    %144 = vector.multi_reduction <maximumf>, %143, %cst_121 [1] : vector<8x128xf32> to vector<8xf32>
    %145 = vector.shape_cast %144 : vector<8xf32> to vector<8x1xf32>
    %c64_i32_122 = arith.constant 64 : i32
    %146 = vector.broadcast %c64_i32_122 : i32 to vector<8x128xi32>
    %147 = arith.cmpi eq, %91, %146 : vector<8x128xi32>
    %148 = vector.shape_cast %145 : vector<8x1xf32> to vector<8x1xf32>
    %149 = vector.broadcast %148 : vector<8x1xf32> to vector<8x128xf32>
    %150 = arith.select %147, %149, %95 : vector<8x128xi1>, vector<8x128xf32>
    %c5_i32_123 = arith.constant 5 : i32
    %c5_i32_124 = arith.constant 5 : i32
    %c5_i32_125 = arith.constant 5 : i32
    %c0_i32_126 = arith.constant 0 : i32
    %c0_i32_127 = arith.constant 0 : i32
    %151 = tpu.memref_slice %arg1[%c5_i32_123, %c0_i32_126, %c0_i32_127] : memref<19x64x128xbf16, #tpu.memory_space<any>> -> memref<1x64x128xbf16, #tpu.memory_space<any>>
    %152 = tpu.memref_squeeze %151 : memref<1x64x128xbf16, #tpu.memory_space<any>> -> memref<64x128xbf16, #tpu.memory_space<any>>
    %c0_i32_128 = arith.constant 0 : i32
    %c0_i32_129 = arith.constant 0 : i32
    %153 = tpu.memref_slice %arg4[%c5_i32_124, %c0_i32_128, %c0_i32_129] : memref<19x64x128xbf16, #tpu.memory_space<vmem>> -> memref<1x64x128xbf16, #tpu.memory_space<vmem>>
    %154 = tpu.memref_squeeze %153 : memref<1x64x128xbf16, #tpu.memory_space<vmem>> -> memref<64x128xbf16, #tpu.memory_space<vmem>>
    %155 = tpu.memref_slice %arg5[%c5_i32_125] : memref<19x!tpu.dma_semaphore, #tpu.memory_space<semaphore_mem>> -> memref<1x!tpu.dma_semaphore, #tpu.memory_space<semaphore_mem>>
    %156 = tpu.memref_squeeze %155 : memref<1x!tpu.dma_semaphore, #tpu.memory_space<semaphore_mem>> -> memref<!tpu.dma_semaphore, #tpu.memory_space<semaphore_mem>>
    tpu.wait_dma2 semaphore(%156 : memref<!tpu.dma_semaphore, #tpu.memory_space<semaphore_mem>>) src(%152 : memref<64x128xbf16, #tpu.memory_space<any>>) dst(%154 : memref<64x128xbf16, #tpu.memory_space<vmem>>)
    %c9_i32 = arith.constant 9 : i32
    %c9_i32_130 = arith.constant 9 : i32
    %c9_i32_131 = arith.constant 9 : i32
    %c0_i32_132 = arith.constant 0 : i32
    %c0_i32_133 = arith.constant 0 : i32
    %157 = tpu.memref_slice %arg1[%c9_i32, %c0_i32_132, %c0_i32_133] : memref<19x64x128xbf16, #tpu.memory_space<any>> -> memref<1x64x128xbf16, #tpu.memory_space<any>>
    %158 = tpu.memref_squeeze %157 : memref<1x64x128xbf16, #tpu.memory_space<any>> -> memref<64x128xbf16, #tpu.memory_space<any>>
    %c0_i32_134 = arith.constant 0 : i32
    %c0_i32_135 = arith.constant 0 : i32
    %159 = tpu.memref_slice %arg4[%c9_i32_130, %c0_i32_134, %c0_i32_135] : memref<19x64x128xbf16, #tpu.memory_space<vmem>> -> memref<1x64x128xbf16, #tpu.memory_space<vmem>>
    %160 = tpu.memref_squeeze %159 : memref<1x64x128xbf16, #tpu.memory_space<vmem>> -> memref<64x128xbf16, #tpu.memory_space<vmem>>
    %161 = tpu.memref_slice %arg5[%c9_i32_131] : memref<19x!tpu.dma_semaphore, #tpu.memory_space<semaphore_mem>> -> memref<1x!tpu.dma_semaphore, #tpu.memory_space<semaphore_mem>>
    %162 = tpu.memref_squeeze %161 : memref<1x!tpu.dma_semaphore, #tpu.memory_space<semaphore_mem>> -> memref<!tpu.dma_semaphore, #tpu.memory_space<semaphore_mem>>
    tpu.enqueue_dma source(%158 : memref<64x128xbf16, #tpu.memory_space<any>>) target(%160 : memref<64x128xbf16, #tpu.memory_space<vmem>>) target_semaphore(%162 : memref<!tpu.dma_semaphore, #tpu.memory_space<semaphore_mem>>)
    %163 = vector.extract_strided_slice %142 {offsets = [0, 0], sizes = [8, 64], strides = [1, 1]} : vector<8x128xf32> to vector<8x64xf32>
    %164 = arith.truncf %163 : vector<8x64xf32> to vector<8x64xbf16>
    %c5 = arith.constant 5 : index
    %c0_136 = arith.constant 0 : index
    %c0_137 = arith.constant 0 : index
    %165 = vector.load %arg4[%c5, %c0_136, %c0_137] : memref<19x64x128xbf16, #tpu.memory_space<vmem>>, vector<1x64x128xbf16>
    %166 = vector.shape_cast %165 : vector<1x64x128xbf16> to vector<64x128xbf16>
    %cst_138 = arith.constant dense<0.000000e+00> : vector<8x128xf32>
    %167 = tpu.matmul %164, %166, %cst_138 {dimension_numbers = #tpu.dot_dimension_numbers<[1], [0], [0], [1], [0, 0, 1, 1], [], []>} : vector<8x64xbf16>, vector<64x128xbf16>, vector<8x128xf32> -> vector<8x128xf32>
    %c5_139 = arith.constant 5 : index
    %c0_140 = arith.constant 0 : index
    %168 = vector.load %arg2[%c5_139, %c0_140] : memref<24x128xf32, #tpu.memory_space<vmem>>, vector<1x128xf32>
    %169 = vector.broadcast %168 : vector<1x128xf32> to vector<8x128xf32>
    %170 = arith.addf %167, %169 : vector<8x128xf32>
    %cst_141 = arith.constant 1.000000e-01 : f32
    %171 = vector.broadcast %cst_141 : f32 to vector<8x128xf32>
    %172 = arith.mulf %171, %170 : vector<8x128xf32>
    %173 = arith.maximumf %170, %172 : vector<8x128xf32>
    %c6_i32_142 = arith.constant 6 : i32
    %c6_i32_143 = arith.constant 6 : i32
    %c6_i32_144 = arith.constant 6 : i32
    %c0_i32_145 = arith.constant 0 : i32
    %c0_i32_146 = arith.constant 0 : i32
    %174 = tpu.memref_slice %arg1[%c6_i32_142, %c0_i32_145, %c0_i32_146] : memref<19x64x128xbf16, #tpu.memory_space<any>> -> memref<1x64x128xbf16, #tpu.memory_space<any>>
    %175 = tpu.memref_squeeze %174 : memref<1x64x128xbf16, #tpu.memory_space<any>> -> memref<64x128xbf16, #tpu.memory_space<any>>
    %c0_i32_147 = arith.constant 0 : i32
    %c0_i32_148 = arith.constant 0 : i32
    %176 = tpu.memref_slice %arg4[%c6_i32_143, %c0_i32_147, %c0_i32_148] : memref<19x64x128xbf16, #tpu.memory_space<vmem>> -> memref<1x64x128xbf16, #tpu.memory_space<vmem>>
    %177 = tpu.memref_squeeze %176 : memref<1x64x128xbf16, #tpu.memory_space<vmem>> -> memref<64x128xbf16, #tpu.memory_space<vmem>>
    %178 = tpu.memref_slice %arg5[%c6_i32_144] : memref<19x!tpu.dma_semaphore, #tpu.memory_space<semaphore_mem>> -> memref<1x!tpu.dma_semaphore, #tpu.memory_space<semaphore_mem>>
    %179 = tpu.memref_squeeze %178 : memref<1x!tpu.dma_semaphore, #tpu.memory_space<semaphore_mem>> -> memref<!tpu.dma_semaphore, #tpu.memory_space<semaphore_mem>>
    tpu.wait_dma2 semaphore(%179 : memref<!tpu.dma_semaphore, #tpu.memory_space<semaphore_mem>>) src(%175 : memref<64x128xbf16, #tpu.memory_space<any>>) dst(%177 : memref<64x128xbf16, #tpu.memory_space<vmem>>)
    %c10_i32 = arith.constant 10 : i32
    %c10_i32_149 = arith.constant 10 : i32
    %c10_i32_150 = arith.constant 10 : i32
    %c0_i32_151 = arith.constant 0 : i32
    %c0_i32_152 = arith.constant 0 : i32
    %180 = tpu.memref_slice %arg1[%c10_i32, %c0_i32_151, %c0_i32_152] : memref<19x64x128xbf16, #tpu.memory_space<any>> -> memref<1x64x128xbf16, #tpu.memory_space<any>>
    %181 = tpu.memref_squeeze %180 : memref<1x64x128xbf16, #tpu.memory_space<any>> -> memref<64x128xbf16, #tpu.memory_space<any>>
    %c0_i32_153 = arith.constant 0 : i32
    %c0_i32_154 = arith.constant 0 : i32
    %182 = tpu.memref_slice %arg4[%c10_i32_149, %c0_i32_153, %c0_i32_154] : memref<19x64x128xbf16, #tpu.memory_space<vmem>> -> memref<1x64x128xbf16, #tpu.memory_space<vmem>>
    %183 = tpu.memref_squeeze %182 : memref<1x64x128xbf16, #tpu.memory_space<vmem>> -> memref<64x128xbf16, #tpu.memory_space<vmem>>
    %184 = tpu.memref_slice %arg5[%c10_i32_150] : memref<19x!tpu.dma_semaphore, #tpu.memory_space<semaphore_mem>> -> memref<1x!tpu.dma_semaphore, #tpu.memory_space<semaphore_mem>>
    %185 = tpu.memref_squeeze %184 : memref<1x!tpu.dma_semaphore, #tpu.memory_space<semaphore_mem>> -> memref<!tpu.dma_semaphore, #tpu.memory_space<semaphore_mem>>
    tpu.enqueue_dma source(%181 : memref<64x128xbf16, #tpu.memory_space<any>>) target(%183 : memref<64x128xbf16, #tpu.memory_space<vmem>>) target_semaphore(%185 : memref<!tpu.dma_semaphore, #tpu.memory_space<semaphore_mem>>)
    %186 = vector.extract_strided_slice %173 {offsets = [0, 0], sizes = [8, 64], strides = [1, 1]} : vector<8x128xf32> to vector<8x64xf32>
    %187 = arith.truncf %186 : vector<8x64xf32> to vector<8x64xbf16>
    %c6 = arith.constant 6 : index
    %c0_155 = arith.constant 0 : index
    %c0_156 = arith.constant 0 : index
    %188 = vector.load %arg4[%c6, %c0_155, %c0_156] : memref<19x64x128xbf16, #tpu.memory_space<vmem>>, vector<1x64x128xbf16>
    %189 = vector.shape_cast %188 : vector<1x64x128xbf16> to vector<64x128xbf16>
    %cst_157 = arith.constant dense<0.000000e+00> : vector<8x128xf32>
    %190 = tpu.matmul %187, %189, %cst_157 {dimension_numbers = #tpu.dot_dimension_numbers<[1], [0], [0], [1], [0, 0, 1, 1], [], []>} : vector<8x64xbf16>, vector<64x128xbf16>, vector<8x128xf32> -> vector<8x128xf32>
    %c6_158 = arith.constant 6 : index
    %c0_159 = arith.constant 0 : index
    %191 = vector.load %arg2[%c6_158, %c0_159] : memref<24x128xf32, #tpu.memory_space<vmem>>, vector<1x128xf32>
    %192 = vector.broadcast %191 : vector<1x128xf32> to vector<8x128xf32>
    %193 = arith.addf %190, %192 : vector<8x128xf32>
    %cst_160 = arith.constant 1.000000e-01 : f32
    %194 = vector.broadcast %cst_160 : f32 to vector<8x128xf32>
    %195 = arith.mulf %194, %193 : vector<8x128xf32>
    %196 = arith.maximumf %193, %195 : vector<8x128xf32>
    %197 = arith.addf %142, %196 : vector<8x128xf32>
    %198 = arith.select %93, %196, %94 : vector<8x128xi1>, vector<8x128xf32>
    %cst_161 = arith.constant dense<0xFF800000> : vector<8xf32>
    %199 = vector.multi_reduction <maximumf>, %198, %cst_161 [1] : vector<8x128xf32> to vector<8xf32>
    %200 = vector.shape_cast %199 : vector<8xf32> to vector<8x1xf32>
    %c65_i32 = arith.constant 65 : i32
    %201 = vector.broadcast %c65_i32 : i32 to vector<8x128xi32>
    %202 = arith.cmpi eq, %91, %201 : vector<8x128xi32>
    %203 = vector.shape_cast %200 : vector<8x1xf32> to vector<8x1xf32>
    %204 = vector.broadcast %203 : vector<8x1xf32> to vector<8x128xf32>
    %205 = arith.select %202, %204, %150 : vector<8x128xi1>, vector<8x128xf32>
    %c7_i32_162 = arith.constant 7 : i32
    %c7_i32_163 = arith.constant 7 : i32
    %c7_i32_164 = arith.constant 7 : i32
    %c0_i32_165 = arith.constant 0 : i32
    %c0_i32_166 = arith.constant 0 : i32
    %206 = tpu.memref_slice %arg1[%c7_i32_162, %c0_i32_165, %c0_i32_166] : memref<19x64x128xbf16, #tpu.memory_space<any>> -> memref<1x64x128xbf16, #tpu.memory_space<any>>
    %207 = tpu.memref_squeeze %206 : memref<1x64x128xbf16, #tpu.memory_space<any>> -> memref<64x128xbf16, #tpu.memory_space<any>>
    %c0_i32_167 = arith.constant 0 : i32
    %c0_i32_168 = arith.constant 0 : i32
    %208 = tpu.memref_slice %arg4[%c7_i32_163, %c0_i32_167, %c0_i32_168] : memref<19x64x128xbf16, #tpu.memory_space<vmem>> -> memref<1x64x128xbf16, #tpu.memory_space<vmem>>
    %209 = tpu.memref_squeeze %208 : memref<1x64x128xbf16, #tpu.memory_space<vmem>> -> memref<64x128xbf16, #tpu.memory_space<vmem>>
    %210 = tpu.memref_slice %arg5[%c7_i32_164] : memref<19x!tpu.dma_semaphore, #tpu.memory_space<semaphore_mem>> -> memref<1x!tpu.dma_semaphore, #tpu.memory_space<semaphore_mem>>
    %211 = tpu.memref_squeeze %210 : memref<1x!tpu.dma_semaphore, #tpu.memory_space<semaphore_mem>> -> memref<!tpu.dma_semaphore, #tpu.memory_space<semaphore_mem>>
    tpu.wait_dma2 semaphore(%211 : memref<!tpu.dma_semaphore, #tpu.memory_space<semaphore_mem>>) src(%207 : memref<64x128xbf16, #tpu.memory_space<any>>) dst(%209 : memref<64x128xbf16, #tpu.memory_space<vmem>>)
    %c11_i32 = arith.constant 11 : i32
    %c11_i32_169 = arith.constant 11 : i32
    %c11_i32_170 = arith.constant 11 : i32
    %c0_i32_171 = arith.constant 0 : i32
    %c0_i32_172 = arith.constant 0 : i32
    %212 = tpu.memref_slice %arg1[%c11_i32, %c0_i32_171, %c0_i32_172] : memref<19x64x128xbf16, #tpu.memory_space<any>> -> memref<1x64x128xbf16, #tpu.memory_space<any>>
    %213 = tpu.memref_squeeze %212 : memref<1x64x128xbf16, #tpu.memory_space<any>> -> memref<64x128xbf16, #tpu.memory_space<any>>
    %c0_i32_173 = arith.constant 0 : i32
    %c0_i32_174 = arith.constant 0 : i32
    %214 = tpu.memref_slice %arg4[%c11_i32_169, %c0_i32_173, %c0_i32_174] : memref<19x64x128xbf16, #tpu.memory_space<vmem>> -> memref<1x64x128xbf16, #tpu.memory_space<vmem>>
    %215 = tpu.memref_squeeze %214 : memref<1x64x128xbf16, #tpu.memory_space<vmem>> -> memref<64x128xbf16, #tpu.memory_space<vmem>>
    %216 = tpu.memref_slice %arg5[%c11_i32_170] : memref<19x!tpu.dma_semaphore, #tpu.memory_space<semaphore_mem>> -> memref<1x!tpu.dma_semaphore, #tpu.memory_space<semaphore_mem>>
    %217 = tpu.memref_squeeze %216 : memref<1x!tpu.dma_semaphore, #tpu.memory_space<semaphore_mem>> -> memref<!tpu.dma_semaphore, #tpu.memory_space<semaphore_mem>>
    tpu.enqueue_dma source(%213 : memref<64x128xbf16, #tpu.memory_space<any>>) target(%215 : memref<64x128xbf16, #tpu.memory_space<vmem>>) target_semaphore(%217 : memref<!tpu.dma_semaphore, #tpu.memory_space<semaphore_mem>>)
    %218 = vector.extract_strided_slice %197 {offsets = [0, 0], sizes = [8, 64], strides = [1, 1]} : vector<8x128xf32> to vector<8x64xf32>
    %219 = arith.truncf %218 : vector<8x64xf32> to vector<8x64xbf16>
    %c7 = arith.constant 7 : index
    %c0_175 = arith.constant 0 : index
    %c0_176 = arith.constant 0 : index
    %220 = vector.load %arg4[%c7, %c0_175, %c0_176] : memref<19x64x128xbf16, #tpu.memory_space<vmem>>, vector<1x64x128xbf16>
    %221 = vector.shape_cast %220 : vector<1x64x128xbf16> to vector<64x128xbf16>
    %cst_177 = arith.constant dense<0.000000e+00> : vector<8x128xf32>
    %222 = tpu.matmul %219, %221, %cst_177 {dimension_numbers = #tpu.dot_dimension_numbers<[1], [0], [0], [1], [0, 0, 1, 1], [], []>} : vector<8x64xbf16>, vector<64x128xbf16>, vector<8x128xf32> -> vector<8x128xf32>
    %c7_178 = arith.constant 7 : index
    %c0_179 = arith.constant 0 : index
    %223 = vector.load %arg2[%c7_178, %c0_179] : memref<24x128xf32, #tpu.memory_space<vmem>>, vector<1x128xf32>
    %224 = vector.broadcast %223 : vector<1x128xf32> to vector<8x128xf32>
    %225 = arith.addf %222, %224 : vector<8x128xf32>
    %cst_180 = arith.constant 1.000000e-01 : f32
    %226 = vector.broadcast %cst_180 : f32 to vector<8x128xf32>
    %227 = arith.mulf %226, %225 : vector<8x128xf32>
    %228 = arith.maximumf %225, %227 : vector<8x128xf32>
    %c8_i32_181 = arith.constant 8 : i32
    %c8_i32_182 = arith.constant 8 : i32
    %c8_i32_183 = arith.constant 8 : i32
    %c0_i32_184 = arith.constant 0 : i32
    %c0_i32_185 = arith.constant 0 : i32
    %229 = tpu.memref_slice %arg1[%c8_i32_181, %c0_i32_184, %c0_i32_185] : memref<19x64x128xbf16, #tpu.memory_space<any>> -> memref<1x64x128xbf16, #tpu.memory_space<any>>
    %230 = tpu.memref_squeeze %229 : memref<1x64x128xbf16, #tpu.memory_space<any>> -> memref<64x128xbf16, #tpu.memory_space<any>>
    %c0_i32_186 = arith.constant 0 : i32
    %c0_i32_187 = arith.constant 0 : i32
    %231 = tpu.memref_slice %arg4[%c8_i32_182, %c0_i32_186, %c0_i32_187] : memref<19x64x128xbf16, #tpu.memory_space<vmem>> -> memref<1x64x128xbf16, #tpu.memory_space<vmem>>
    %232 = tpu.memref_squeeze %231 : memref<1x64x128xbf16, #tpu.memory_space<vmem>> -> memref<64x128xbf16, #tpu.memory_space<vmem>>
    %233 = tpu.memref_slice %arg5[%c8_i32_183] : memref<19x!tpu.dma_semaphore, #tpu.memory_space<semaphore_mem>> -> memref<1x!tpu.dma_semaphore, #tpu.memory_space<semaphore_mem>>
    %234 = tpu.memref_squeeze %233 : memref<1x!tpu.dma_semaphore, #tpu.memory_space<semaphore_mem>> -> memref<!tpu.dma_semaphore, #tpu.memory_space<semaphore_mem>>
    tpu.wait_dma2 semaphore(%234 : memref<!tpu.dma_semaphore, #tpu.memory_space<semaphore_mem>>) src(%230 : memref<64x128xbf16, #tpu.memory_space<any>>) dst(%232 : memref<64x128xbf16, #tpu.memory_space<vmem>>)
    %c12_i32 = arith.constant 12 : i32
    %c12_i32_188 = arith.constant 12 : i32
    %c12_i32_189 = arith.constant 12 : i32
    %c0_i32_190 = arith.constant 0 : i32
    %c0_i32_191 = arith.constant 0 : i32
    %235 = tpu.memref_slice %arg1[%c12_i32, %c0_i32_190, %c0_i32_191] : memref<19x64x128xbf16, #tpu.memory_space<any>> -> memref<1x64x128xbf16, #tpu.memory_space<any>>
    %236 = tpu.memref_squeeze %235 : memref<1x64x128xbf16, #tpu.memory_space<any>> -> memref<64x128xbf16, #tpu.memory_space<any>>
    %c0_i32_192 = arith.constant 0 : i32
    %c0_i32_193 = arith.constant 0 : i32
    %237 = tpu.memref_slice %arg4[%c12_i32_188, %c0_i32_192, %c0_i32_193] : memref<19x64x128xbf16, #tpu.memory_space<vmem>> -> memref<1x64x128xbf16, #tpu.memory_space<vmem>>
    %238 = tpu.memref_squeeze %237 : memref<1x64x128xbf16, #tpu.memory_space<vmem>> -> memref<64x128xbf16, #tpu.memory_space<vmem>>
    %239 = tpu.memref_slice %arg5[%c12_i32_189] : memref<19x!tpu.dma_semaphore, #tpu.memory_space<semaphore_mem>> -> memref<1x!tpu.dma_semaphore, #tpu.memory_space<semaphore_mem>>
    %240 = tpu.memref_squeeze %239 : memref<1x!tpu.dma_semaphore, #tpu.memory_space<semaphore_mem>> -> memref<!tpu.dma_semaphore, #tpu.memory_space<semaphore_mem>>
    tpu.enqueue_dma source(%236 : memref<64x128xbf16, #tpu.memory_space<any>>) target(%238 : memref<64x128xbf16, #tpu.memory_space<vmem>>) target_semaphore(%240 : memref<!tpu.dma_semaphore, #tpu.memory_space<semaphore_mem>>)
    %241 = vector.extract_strided_slice %228 {offsets = [0, 0], sizes = [8, 64], strides = [1, 1]} : vector<8x128xf32> to vector<8x64xf32>
    %242 = arith.truncf %241 : vector<8x64xf32> to vector<8x64xbf16>
    %c8 = arith.constant 8 : index
    %c0_194 = arith.constant 0 : index
    %c0_195 = arith.constant 0 : index
    %243 = vector.load %arg4[%c8, %c0_194, %c0_195] : memref<19x64x128xbf16, #tpu.memory_space<vmem>>, vector<1x64x128xbf16>
    %244 = vector.shape_cast %243 : vector<1x64x128xbf16> to vector<64x128xbf16>
    %cst_196 = arith.constant dense<0.000000e+00> : vector<8x128xf32>
    %245 = tpu.matmul %242, %244, %cst_196 {dimension_numbers = #tpu.dot_dimension_numbers<[1], [0], [0], [1], [0, 0, 1, 1], [], []>} : vector<8x64xbf16>, vector<64x128xbf16>, vector<8x128xf32> -> vector<8x128xf32>
    %c8_197 = arith.constant 8 : index
    %c0_198 = arith.constant 0 : index
    %246 = vector.load %arg2[%c8_197, %c0_198] : memref<24x128xf32, #tpu.memory_space<vmem>>, vector<1x128xf32>
    %247 = vector.broadcast %246 : vector<1x128xf32> to vector<8x128xf32>
    %248 = arith.addf %245, %247 : vector<8x128xf32>
    %cst_199 = arith.constant 1.000000e-01 : f32
    %249 = vector.broadcast %cst_199 : f32 to vector<8x128xf32>
    %250 = arith.mulf %249, %248 : vector<8x128xf32>
    %251 = arith.maximumf %248, %250 : vector<8x128xf32>
    %252 = arith.addf %197, %251 : vector<8x128xf32>
    %253 = arith.select %93, %251, %94 : vector<8x128xi1>, vector<8x128xf32>
    %cst_200 = arith.constant dense<0xFF800000> : vector<8xf32>
    %254 = vector.multi_reduction <maximumf>, %253, %cst_200 [1] : vector<8x128xf32> to vector<8xf32>
    %255 = vector.shape_cast %254 : vector<8xf32> to vector<8x1xf32>
    %c66_i32 = arith.constant 66 : i32
    %256 = vector.broadcast %c66_i32 : i32 to vector<8x128xi32>
    %257 = arith.cmpi eq, %91, %256 : vector<8x128xi32>
    %258 = vector.shape_cast %255 : vector<8x1xf32> to vector<8x1xf32>
    %259 = vector.broadcast %258 : vector<8x1xf32> to vector<8x128xf32>
    %260 = arith.select %257, %259, %205 : vector<8x128xi1>, vector<8x128xf32>
    %c9_i32_201 = arith.constant 9 : i32
    %c9_i32_202 = arith.constant 9 : i32
    %c9_i32_203 = arith.constant 9 : i32
    %c0_i32_204 = arith.constant 0 : i32
    %c0_i32_205 = arith.constant 0 : i32
    %261 = tpu.memref_slice %arg1[%c9_i32_201, %c0_i32_204, %c0_i32_205] : memref<19x64x128xbf16, #tpu.memory_space<any>> -> memref<1x64x128xbf16, #tpu.memory_space<any>>
    %262 = tpu.memref_squeeze %261 : memref<1x64x128xbf16, #tpu.memory_space<any>> -> memref<64x128xbf16, #tpu.memory_space<any>>
    %c0_i32_206 = arith.constant 0 : i32
    %c0_i32_207 = arith.constant 0 : i32
    %263 = tpu.memref_slice %arg4[%c9_i32_202, %c0_i32_206, %c0_i32_207] : memref<19x64x128xbf16, #tpu.memory_space<vmem>> -> memref<1x64x128xbf16, #tpu.memory_space<vmem>>
    %264 = tpu.memref_squeeze %263 : memref<1x64x128xbf16, #tpu.memory_space<vmem>> -> memref<64x128xbf16, #tpu.memory_space<vmem>>
    %265 = tpu.memref_slice %arg5[%c9_i32_203] : memref<19x!tpu.dma_semaphore, #tpu.memory_space<semaphore_mem>> -> memref<1x!tpu.dma_semaphore, #tpu.memory_space<semaphore_mem>>
    %266 = tpu.memref_squeeze %265 : memref<1x!tpu.dma_semaphore, #tpu.memory_space<semaphore_mem>> -> memref<!tpu.dma_semaphore, #tpu.memory_space<semaphore_mem>>
    tpu.wait_dma2 semaphore(%266 : memref<!tpu.dma_semaphore, #tpu.memory_space<semaphore_mem>>) src(%262 : memref<64x128xbf16, #tpu.memory_space<any>>) dst(%264 : memref<64x128xbf16, #tpu.memory_space<vmem>>)
    %c13_i32 = arith.constant 13 : i32
    %c13_i32_208 = arith.constant 13 : i32
    %c13_i32_209 = arith.constant 13 : i32
    %c0_i32_210 = arith.constant 0 : i32
    %c0_i32_211 = arith.constant 0 : i32
    %267 = tpu.memref_slice %arg1[%c13_i32, %c0_i32_210, %c0_i32_211] : memref<19x64x128xbf16, #tpu.memory_space<any>> -> memref<1x64x128xbf16, #tpu.memory_space<any>>
    %268 = tpu.memref_squeeze %267 : memref<1x64x128xbf16, #tpu.memory_space<any>> -> memref<64x128xbf16, #tpu.memory_space<any>>
    %c0_i32_212 = arith.constant 0 : i32
    %c0_i32_213 = arith.constant 0 : i32
    %269 = tpu.memref_slice %arg4[%c13_i32_208, %c0_i32_212, %c0_i32_213] : memref<19x64x128xbf16, #tpu.memory_space<vmem>> -> memref<1x64x128xbf16, #tpu.memory_space<vmem>>
    %270 = tpu.memref_squeeze %269 : memref<1x64x128xbf16, #tpu.memory_space<vmem>> -> memref<64x128xbf16, #tpu.memory_space<vmem>>
    %271 = tpu.memref_slice %arg5[%c13_i32_209] : memref<19x!tpu.dma_semaphore, #tpu.memory_space<semaphore_mem>> -> memref<1x!tpu.dma_semaphore, #tpu.memory_space<semaphore_mem>>
    %272 = tpu.memref_squeeze %271 : memref<1x!tpu.dma_semaphore, #tpu.memory_space<semaphore_mem>> -> memref<!tpu.dma_semaphore, #tpu.memory_space<semaphore_mem>>
    tpu.enqueue_dma source(%268 : memref<64x128xbf16, #tpu.memory_space<any>>) target(%270 : memref<64x128xbf16, #tpu.memory_space<vmem>>) target_semaphore(%272 : memref<!tpu.dma_semaphore, #tpu.memory_space<semaphore_mem>>)
    %273 = vector.extract_strided_slice %252 {offsets = [0, 0], sizes = [8, 64], strides = [1, 1]} : vector<8x128xf32> to vector<8x64xf32>
    %274 = arith.truncf %273 : vector<8x64xf32> to vector<8x64xbf16>
    %c9 = arith.constant 9 : index
    %c0_214 = arith.constant 0 : index
    %c0_215 = arith.constant 0 : index
    %275 = vector.load %arg4[%c9, %c0_214, %c0_215] : memref<19x64x128xbf16, #tpu.memory_space<vmem>>, vector<1x64x128xbf16>
    %276 = vector.shape_cast %275 : vector<1x64x128xbf16> to vector<64x128xbf16>
    %cst_216 = arith.constant dense<0.000000e+00> : vector<8x128xf32>
    %277 = tpu.matmul %274, %276, %cst_216 {dimension_numbers = #tpu.dot_dimension_numbers<[1], [0], [0], [1], [0, 0, 1, 1], [], []>} : vector<8x64xbf16>, vector<64x128xbf16>, vector<8x128xf32> -> vector<8x128xf32>
    %c9_217 = arith.constant 9 : index
    %c0_218 = arith.constant 0 : index
    %278 = vector.load %arg2[%c9_217, %c0_218] : memref<24x128xf32, #tpu.memory_space<vmem>>, vector<1x128xf32>
    %279 = vector.broadcast %278 : vector<1x128xf32> to vector<8x128xf32>
    %280 = arith.addf %277, %279 : vector<8x128xf32>
    %cst_219 = arith.constant 1.000000e-01 : f32
    %281 = vector.broadcast %cst_219 : f32 to vector<8x128xf32>
    %282 = arith.mulf %281, %280 : vector<8x128xf32>
    %283 = arith.maximumf %280, %282 : vector<8x128xf32>
    %c10_i32_220 = arith.constant 10 : i32
    %c10_i32_221 = arith.constant 10 : i32
    %c10_i32_222 = arith.constant 10 : i32
    %c0_i32_223 = arith.constant 0 : i32
    %c0_i32_224 = arith.constant 0 : i32
    %284 = tpu.memref_slice %arg1[%c10_i32_220, %c0_i32_223, %c0_i32_224] : memref<19x64x128xbf16, #tpu.memory_space<any>> -> memref<1x64x128xbf16, #tpu.memory_space<any>>
    %285 = tpu.memref_squeeze %284 : memref<1x64x128xbf16, #tpu.memory_space<any>> -> memref<64x128xbf16, #tpu.memory_space<any>>
    %c0_i32_225 = arith.constant 0 : i32
    %c0_i32_226 = arith.constant 0 : i32
    %286 = tpu.memref_slice %arg4[%c10_i32_221, %c0_i32_225, %c0_i32_226] : memref<19x64x128xbf16, #tpu.memory_space<vmem>> -> memref<1x64x128xbf16, #tpu.memory_space<vmem>>
    %287 = tpu.memref_squeeze %286 : memref<1x64x128xbf16, #tpu.memory_space<vmem>> -> memref<64x128xbf16, #tpu.memory_space<vmem>>
    %288 = tpu.memref_slice %arg5[%c10_i32_222] : memref<19x!tpu.dma_semaphore, #tpu.memory_space<semaphore_mem>> -> memref<1x!tpu.dma_semaphore, #tpu.memory_space<semaphore_mem>>
    %289 = tpu.memref_squeeze %288 : memref<1x!tpu.dma_semaphore, #tpu.memory_space<semaphore_mem>> -> memref<!tpu.dma_semaphore, #tpu.memory_space<semaphore_mem>>
    tpu.wait_dma2 semaphore(%289 : memref<!tpu.dma_semaphore, #tpu.memory_space<semaphore_mem>>) src(%285 : memref<64x128xbf16, #tpu.memory_space<any>>) dst(%287 : memref<64x128xbf16, #tpu.memory_space<vmem>>)
    %c14_i32 = arith.constant 14 : i32
    %c14_i32_227 = arith.constant 14 : i32
    %c14_i32_228 = arith.constant 14 : i32
    %c0_i32_229 = arith.constant 0 : i32
    %c0_i32_230 = arith.constant 0 : i32
    %290 = tpu.memref_slice %arg1[%c14_i32, %c0_i32_229, %c0_i32_230] : memref<19x64x128xbf16, #tpu.memory_space<any>> -> memref<1x64x128xbf16, #tpu.memory_space<any>>
    %291 = tpu.memref_squeeze %290 : memref<1x64x128xbf16, #tpu.memory_space<any>> -> memref<64x128xbf16, #tpu.memory_space<any>>
    %c0_i32_231 = arith.constant 0 : i32
    %c0_i32_232 = arith.constant 0 : i32
    %292 = tpu.memref_slice %arg4[%c14_i32_227, %c0_i32_231, %c0_i32_232] : memref<19x64x128xbf16, #tpu.memory_space<vmem>> -> memref<1x64x128xbf16, #tpu.memory_space<vmem>>
    %293 = tpu.memref_squeeze %292 : memref<1x64x128xbf16, #tpu.memory_space<vmem>> -> memref<64x128xbf16, #tpu.memory_space<vmem>>
    %294 = tpu.memref_slice %arg5[%c14_i32_228] : memref<19x!tpu.dma_semaphore, #tpu.memory_space<semaphore_mem>> -> memref<1x!tpu.dma_semaphore, #tpu.memory_space<semaphore_mem>>
    %295 = tpu.memref_squeeze %294 : memref<1x!tpu.dma_semaphore, #tpu.memory_space<semaphore_mem>> -> memref<!tpu.dma_semaphore, #tpu.memory_space<semaphore_mem>>
    tpu.enqueue_dma source(%291 : memref<64x128xbf16, #tpu.memory_space<any>>) target(%293 : memref<64x128xbf16, #tpu.memory_space<vmem>>) target_semaphore(%295 : memref<!tpu.dma_semaphore, #tpu.memory_space<semaphore_mem>>)
    %296 = vector.extract_strided_slice %283 {offsets = [0, 0], sizes = [8, 64], strides = [1, 1]} : vector<8x128xf32> to vector<8x64xf32>
    %297 = arith.truncf %296 : vector<8x64xf32> to vector<8x64xbf16>
    %c10 = arith.constant 10 : index
    %c0_233 = arith.constant 0 : index
    %c0_234 = arith.constant 0 : index
    %298 = vector.load %arg4[%c10, %c0_233, %c0_234] : memref<19x64x128xbf16, #tpu.memory_space<vmem>>, vector<1x64x128xbf16>
    %299 = vector.shape_cast %298 : vector<1x64x128xbf16> to vector<64x128xbf16>
    %cst_235 = arith.constant dense<0.000000e+00> : vector<8x128xf32>
    %300 = tpu.matmul %297, %299, %cst_235 {dimension_numbers = #tpu.dot_dimension_numbers<[1], [0], [0], [1], [0, 0, 1, 1], [], []>} : vector<8x64xbf16>, vector<64x128xbf16>, vector<8x128xf32> -> vector<8x128xf32>
    %c10_236 = arith.constant 10 : index
    %c0_237 = arith.constant 0 : index
    %301 = vector.load %arg2[%c10_236, %c0_237] : memref<24x128xf32, #tpu.memory_space<vmem>>, vector<1x128xf32>
    %302 = vector.broadcast %301 : vector<1x128xf32> to vector<8x128xf32>
    %303 = arith.addf %300, %302 : vector<8x128xf32>
    %cst_238 = arith.constant 1.000000e-01 : f32
    %304 = vector.broadcast %cst_238 : f32 to vector<8x128xf32>
    %305 = arith.mulf %304, %303 : vector<8x128xf32>
    %306 = arith.maximumf %303, %305 : vector<8x128xf32>
    %307 = arith.addf %252, %306 : vector<8x128xf32>
    %308 = arith.select %93, %306, %94 : vector<8x128xi1>, vector<8x128xf32>
    %cst_239 = arith.constant dense<0xFF800000> : vector<8xf32>
    %309 = vector.multi_reduction <maximumf>, %308, %cst_239 [1] : vector<8x128xf32> to vector<8xf32>
    %310 = vector.shape_cast %309 : vector<8xf32> to vector<8x1xf32>
    %c67_i32 = arith.constant 67 : i32
    %311 = vector.broadcast %c67_i32 : i32 to vector<8x128xi32>
    %312 = arith.cmpi eq, %91, %311 : vector<8x128xi32>
    %313 = vector.shape_cast %310 : vector<8x1xf32> to vector<8x1xf32>
    %314 = vector.broadcast %313 : vector<8x1xf32> to vector<8x128xf32>
    %315 = arith.select %312, %314, %260 : vector<8x128xi1>, vector<8x128xf32>
    %c11_i32_240 = arith.constant 11 : i32
    %c11_i32_241 = arith.constant 11 : i32
    %c11_i32_242 = arith.constant 11 : i32
    %c0_i32_243 = arith.constant 0 : i32
    %c0_i32_244 = arith.constant 0 : i32
    %316 = tpu.memref_slice %arg1[%c11_i32_240, %c0_i32_243, %c0_i32_244] : memref<19x64x128xbf16, #tpu.memory_space<any>> -> memref<1x64x128xbf16, #tpu.memory_space<any>>
    %317 = tpu.memref_squeeze %316 : memref<1x64x128xbf16, #tpu.memory_space<any>> -> memref<64x128xbf16, #tpu.memory_space<any>>
    %c0_i32_245 = arith.constant 0 : i32
    %c0_i32_246 = arith.constant 0 : i32
    %318 = tpu.memref_slice %arg4[%c11_i32_241, %c0_i32_245, %c0_i32_246] : memref<19x64x128xbf16, #tpu.memory_space<vmem>> -> memref<1x64x128xbf16, #tpu.memory_space<vmem>>
    %319 = tpu.memref_squeeze %318 : memref<1x64x128xbf16, #tpu.memory_space<vmem>> -> memref<64x128xbf16, #tpu.memory_space<vmem>>
    %320 = tpu.memref_slice %arg5[%c11_i32_242] : memref<19x!tpu.dma_semaphore, #tpu.memory_space<semaphore_mem>> -> memref<1x!tpu.dma_semaphore, #tpu.memory_space<semaphore_mem>>
    %321 = tpu.memref_squeeze %320 : memref<1x!tpu.dma_semaphore, #tpu.memory_space<semaphore_mem>> -> memref<!tpu.dma_semaphore, #tpu.memory_space<semaphore_mem>>
    tpu.wait_dma2 semaphore(%321 : memref<!tpu.dma_semaphore, #tpu.memory_space<semaphore_mem>>) src(%317 : memref<64x128xbf16, #tpu.memory_space<any>>) dst(%319 : memref<64x128xbf16, #tpu.memory_space<vmem>>)
    %c15_i32 = arith.constant 15 : i32
    %c15_i32_247 = arith.constant 15 : i32
    %c15_i32_248 = arith.constant 15 : i32
    %c0_i32_249 = arith.constant 0 : i32
    %c0_i32_250 = arith.constant 0 : i32
    %322 = tpu.memref_slice %arg1[%c15_i32, %c0_i32_249, %c0_i32_250] : memref<19x64x128xbf16, #tpu.memory_space<any>> -> memref<1x64x128xbf16, #tpu.memory_space<any>>
    %323 = tpu.memref_squeeze %322 : memref<1x64x128xbf16, #tpu.memory_space<any>> -> memref<64x128xbf16, #tpu.memory_space<any>>
    %c0_i32_251 = arith.constant 0 : i32
    %c0_i32_252 = arith.constant 0 : i32
    %324 = tpu.memref_slice %arg4[%c15_i32_247, %c0_i32_251, %c0_i32_252] : memref<19x64x128xbf16, #tpu.memory_space<vmem>> -> memref<1x64x128xbf16, #tpu.memory_space<vmem>>
    %325 = tpu.memref_squeeze %324 : memref<1x64x128xbf16, #tpu.memory_space<vmem>> -> memref<64x128xbf16, #tpu.memory_space<vmem>>
    %326 = tpu.memref_slice %arg5[%c15_i32_248] : memref<19x!tpu.dma_semaphore, #tpu.memory_space<semaphore_mem>> -> memref<1x!tpu.dma_semaphore, #tpu.memory_space<semaphore_mem>>
    %327 = tpu.memref_squeeze %326 : memref<1x!tpu.dma_semaphore, #tpu.memory_space<semaphore_mem>> -> memref<!tpu.dma_semaphore, #tpu.memory_space<semaphore_mem>>
    tpu.enqueue_dma source(%323 : memref<64x128xbf16, #tpu.memory_space<any>>) target(%325 : memref<64x128xbf16, #tpu.memory_space<vmem>>) target_semaphore(%327 : memref<!tpu.dma_semaphore, #tpu.memory_space<semaphore_mem>>)
    %328 = vector.extract_strided_slice %307 {offsets = [0, 0], sizes = [8, 64], strides = [1, 1]} : vector<8x128xf32> to vector<8x64xf32>
    %329 = arith.truncf %328 : vector<8x64xf32> to vector<8x64xbf16>
    %c11 = arith.constant 11 : index
    %c0_253 = arith.constant 0 : index
    %c0_254 = arith.constant 0 : index
    %330 = vector.load %arg4[%c11, %c0_253, %c0_254] : memref<19x64x128xbf16, #tpu.memory_space<vmem>>, vector<1x64x128xbf16>
    %331 = vector.shape_cast %330 : vector<1x64x128xbf16> to vector<64x128xbf16>
    %cst_255 = arith.constant dense<0.000000e+00> : vector<8x128xf32>
    %332 = tpu.matmul %329, %331, %cst_255 {dimension_numbers = #tpu.dot_dimension_numbers<[1], [0], [0], [1], [0, 0, 1, 1], [], []>} : vector<8x64xbf16>, vector<64x128xbf16>, vector<8x128xf32> -> vector<8x128xf32>
    %c11_256 = arith.constant 11 : index
    %c0_257 = arith.constant 0 : index
    %333 = vector.load %arg2[%c11_256, %c0_257] : memref<24x128xf32, #tpu.memory_space<vmem>>, vector<1x128xf32>
    %334 = vector.broadcast %333 : vector<1x128xf32> to vector<8x128xf32>
    %335 = arith.addf %332, %334 : vector<8x128xf32>
    %cst_258 = arith.constant 1.000000e-01 : f32
    %336 = vector.broadcast %cst_258 : f32 to vector<8x128xf32>
    %337 = arith.mulf %336, %335 : vector<8x128xf32>
    %338 = arith.maximumf %335, %337 : vector<8x128xf32>
    %c12_i32_259 = arith.constant 12 : i32
    %c12_i32_260 = arith.constant 12 : i32
    %c12_i32_261 = arith.constant 12 : i32
    %c0_i32_262 = arith.constant 0 : i32
    %c0_i32_263 = arith.constant 0 : i32
    %339 = tpu.memref_slice %arg1[%c12_i32_259, %c0_i32_262, %c0_i32_263] : memref<19x64x128xbf16, #tpu.memory_space<any>> -> memref<1x64x128xbf16, #tpu.memory_space<any>>
    %340 = tpu.memref_squeeze %339 : memref<1x64x128xbf16, #tpu.memory_space<any>> -> memref<64x128xbf16, #tpu.memory_space<any>>
    %c0_i32_264 = arith.constant 0 : i32
    %c0_i32_265 = arith.constant 0 : i32
    %341 = tpu.memref_slice %arg4[%c12_i32_260, %c0_i32_264, %c0_i32_265] : memref<19x64x128xbf16, #tpu.memory_space<vmem>> -> memref<1x64x128xbf16, #tpu.memory_space<vmem>>
    %342 = tpu.memref_squeeze %341 : memref<1x64x128xbf16, #tpu.memory_space<vmem>> -> memref<64x128xbf16, #tpu.memory_space<vmem>>
    %343 = tpu.memref_slice %arg5[%c12_i32_261] : memref<19x!tpu.dma_semaphore, #tpu.memory_space<semaphore_mem>> -> memref<1x!tpu.dma_semaphore, #tpu.memory_space<semaphore_mem>>
    %344 = tpu.memref_squeeze %343 : memref<1x!tpu.dma_semaphore, #tpu.memory_space<semaphore_mem>> -> memref<!tpu.dma_semaphore, #tpu.memory_space<semaphore_mem>>
    tpu.wait_dma2 semaphore(%344 : memref<!tpu.dma_semaphore, #tpu.memory_space<semaphore_mem>>) src(%340 : memref<64x128xbf16, #tpu.memory_space<any>>) dst(%342 : memref<64x128xbf16, #tpu.memory_space<vmem>>)
    %c16_i32 = arith.constant 16 : i32
    %c16_i32_266 = arith.constant 16 : i32
    %c16_i32_267 = arith.constant 16 : i32
    %c0_i32_268 = arith.constant 0 : i32
    %c0_i32_269 = arith.constant 0 : i32
    %345 = tpu.memref_slice %arg1[%c16_i32, %c0_i32_268, %c0_i32_269] : memref<19x64x128xbf16, #tpu.memory_space<any>> -> memref<1x64x128xbf16, #tpu.memory_space<any>>
    %346 = tpu.memref_squeeze %345 : memref<1x64x128xbf16, #tpu.memory_space<any>> -> memref<64x128xbf16, #tpu.memory_space<any>>
    %c0_i32_270 = arith.constant 0 : i32
    %c0_i32_271 = arith.constant 0 : i32
    %347 = tpu.memref_slice %arg4[%c16_i32_266, %c0_i32_270, %c0_i32_271] : memref<19x64x128xbf16, #tpu.memory_space<vmem>> -> memref<1x64x128xbf16, #tpu.memory_space<vmem>>
    %348 = tpu.memref_squeeze %347 : memref<1x64x128xbf16, #tpu.memory_space<vmem>> -> memref<64x128xbf16, #tpu.memory_space<vmem>>
    %349 = tpu.memref_slice %arg5[%c16_i32_267] : memref<19x!tpu.dma_semaphore, #tpu.memory_space<semaphore_mem>> -> memref<1x!tpu.dma_semaphore, #tpu.memory_space<semaphore_mem>>
    %350 = tpu.memref_squeeze %349 : memref<1x!tpu.dma_semaphore, #tpu.memory_space<semaphore_mem>> -> memref<!tpu.dma_semaphore, #tpu.memory_space<semaphore_mem>>
    tpu.enqueue_dma source(%346 : memref<64x128xbf16, #tpu.memory_space<any>>) target(%348 : memref<64x128xbf16, #tpu.memory_space<vmem>>) target_semaphore(%350 : memref<!tpu.dma_semaphore, #tpu.memory_space<semaphore_mem>>)
    %351 = vector.extract_strided_slice %338 {offsets = [0, 0], sizes = [8, 64], strides = [1, 1]} : vector<8x128xf32> to vector<8x64xf32>
    %352 = arith.truncf %351 : vector<8x64xf32> to vector<8x64xbf16>
    %c12 = arith.constant 12 : index
    %c0_272 = arith.constant 0 : index
    %c0_273 = arith.constant 0 : index
    %353 = vector.load %arg4[%c12, %c0_272, %c0_273] : memref<19x64x128xbf16, #tpu.memory_space<vmem>>, vector<1x64x128xbf16>
    %354 = vector.shape_cast %353 : vector<1x64x128xbf16> to vector<64x128xbf16>
    %cst_274 = arith.constant dense<0.000000e+00> : vector<8x128xf32>
    %355 = tpu.matmul %352, %354, %cst_274 {dimension_numbers = #tpu.dot_dimension_numbers<[1], [0], [0], [1], [0, 0, 1, 1], [], []>} : vector<8x64xbf16>, vector<64x128xbf16>, vector<8x128xf32> -> vector<8x128xf32>
    %c12_275 = arith.constant 12 : index
    %c0_276 = arith.constant 0 : index
    %356 = vector.load %arg2[%c12_275, %c0_276] : memref<24x128xf32, #tpu.memory_space<vmem>>, vector<1x128xf32>
    %357 = vector.broadcast %356 : vector<1x128xf32> to vector<8x128xf32>
    %358 = arith.addf %355, %357 : vector<8x128xf32>
    %cst_277 = arith.constant 1.000000e-01 : f32
    %359 = vector.broadcast %cst_277 : f32 to vector<8x128xf32>
    %360 = arith.mulf %359, %358 : vector<8x128xf32>
    %361 = arith.maximumf %358, %360 : vector<8x128xf32>
    %362 = arith.addf %307, %361 : vector<8x128xf32>
    %363 = arith.select %93, %361, %94 : vector<8x128xi1>, vector<8x128xf32>
    %cst_278 = arith.constant dense<0xFF800000> : vector<8xf32>
    %364 = vector.multi_reduction <maximumf>, %363, %cst_278 [1] : vector<8x128xf32> to vector<8xf32>
    %365 = vector.shape_cast %364 : vector<8xf32> to vector<8x1xf32>
    %c68_i32 = arith.constant 68 : i32
    %366 = vector.broadcast %c68_i32 : i32 to vector<8x128xi32>
    %367 = arith.cmpi eq, %91, %366 : vector<8x128xi32>
    %368 = vector.shape_cast %365 : vector<8x1xf32> to vector<8x1xf32>
    %369 = vector.broadcast %368 : vector<8x1xf32> to vector<8x128xf32>
    %370 = arith.select %367, %369, %315 : vector<8x128xi1>, vector<8x128xf32>
    %c13_i32_279 = arith.constant 13 : i32
    %c13_i32_280 = arith.constant 13 : i32
    %c13_i32_281 = arith.constant 13 : i32
    %c0_i32_282 = arith.constant 0 : i32
    %c0_i32_283 = arith.constant 0 : i32
    %371 = tpu.memref_slice %arg1[%c13_i32_279, %c0_i32_282, %c0_i32_283] : memref<19x64x128xbf16, #tpu.memory_space<any>> -> memref<1x64x128xbf16, #tpu.memory_space<any>>
    %372 = tpu.memref_squeeze %371 : memref<1x64x128xbf16, #tpu.memory_space<any>> -> memref<64x128xbf16, #tpu.memory_space<any>>
    %c0_i32_284 = arith.constant 0 : i32
    %c0_i32_285 = arith.constant 0 : i32
    %373 = tpu.memref_slice %arg4[%c13_i32_280, %c0_i32_284, %c0_i32_285] : memref<19x64x128xbf16, #tpu.memory_space<vmem>> -> memref<1x64x128xbf16, #tpu.memory_space<vmem>>
    %374 = tpu.memref_squeeze %373 : memref<1x64x128xbf16, #tpu.memory_space<vmem>> -> memref<64x128xbf16, #tpu.memory_space<vmem>>
    %375 = tpu.memref_slice %arg5[%c13_i32_281] : memref<19x!tpu.dma_semaphore, #tpu.memory_space<semaphore_mem>> -> memref<1x!tpu.dma_semaphore, #tpu.memory_space<semaphore_mem>>
    %376 = tpu.memref_squeeze %375 : memref<1x!tpu.dma_semaphore, #tpu.memory_space<semaphore_mem>> -> memref<!tpu.dma_semaphore, #tpu.memory_space<semaphore_mem>>
    tpu.wait_dma2 semaphore(%376 : memref<!tpu.dma_semaphore, #tpu.memory_space<semaphore_mem>>) src(%372 : memref<64x128xbf16, #tpu.memory_space<any>>) dst(%374 : memref<64x128xbf16, #tpu.memory_space<vmem>>)
    %c17_i32 = arith.constant 17 : i32
    %c17_i32_286 = arith.constant 17 : i32
    %c17_i32_287 = arith.constant 17 : i32
    %c0_i32_288 = arith.constant 0 : i32
    %c0_i32_289 = arith.constant 0 : i32
    %377 = tpu.memref_slice %arg1[%c17_i32, %c0_i32_288, %c0_i32_289] : memref<19x64x128xbf16, #tpu.memory_space<any>> -> memref<1x64x128xbf16, #tpu.memory_space<any>>
    %378 = tpu.memref_squeeze %377 : memref<1x64x128xbf16, #tpu.memory_space<any>> -> memref<64x128xbf16, #tpu.memory_space<any>>
    %c0_i32_290 = arith.constant 0 : i32
    %c0_i32_291 = arith.constant 0 : i32
    %379 = tpu.memref_slice %arg4[%c17_i32_286, %c0_i32_290, %c0_i32_291] : memref<19x64x128xbf16, #tpu.memory_space<vmem>> -> memref<1x64x128xbf16, #tpu.memory_space<vmem>>
    %380 = tpu.memref_squeeze %379 : memref<1x64x128xbf16, #tpu.memory_space<vmem>> -> memref<64x128xbf16, #tpu.memory_space<vmem>>
    %381 = tpu.memref_slice %arg5[%c17_i32_287] : memref<19x!tpu.dma_semaphore, #tpu.memory_space<semaphore_mem>> -> memref<1x!tpu.dma_semaphore, #tpu.memory_space<semaphore_mem>>
    %382 = tpu.memref_squeeze %381 : memref<1x!tpu.dma_semaphore, #tpu.memory_space<semaphore_mem>> -> memref<!tpu.dma_semaphore, #tpu.memory_space<semaphore_mem>>
    tpu.enqueue_dma source(%378 : memref<64x128xbf16, #tpu.memory_space<any>>) target(%380 : memref<64x128xbf16, #tpu.memory_space<vmem>>) target_semaphore(%382 : memref<!tpu.dma_semaphore, #tpu.memory_space<semaphore_mem>>)
    %383 = vector.extract_strided_slice %362 {offsets = [0, 0], sizes = [8, 64], strides = [1, 1]} : vector<8x128xf32> to vector<8x64xf32>
    %384 = arith.truncf %383 : vector<8x64xf32> to vector<8x64xbf16>
    %c13 = arith.constant 13 : index
    %c0_292 = arith.constant 0 : index
    %c0_293 = arith.constant 0 : index
    %385 = vector.load %arg4[%c13, %c0_292, %c0_293] : memref<19x64x128xbf16, #tpu.memory_space<vmem>>, vector<1x64x128xbf16>
    %386 = vector.shape_cast %385 : vector<1x64x128xbf16> to vector<64x128xbf16>
    %cst_294 = arith.constant dense<0.000000e+00> : vector<8x128xf32>
    %387 = tpu.matmul %384, %386, %cst_294 {dimension_numbers = #tpu.dot_dimension_numbers<[1], [0], [0], [1], [0, 0, 1, 1], [], []>} : vector<8x64xbf16>, vector<64x128xbf16>, vector<8x128xf32> -> vector<8x128xf32>
    %c13_295 = arith.constant 13 : index
    %c0_296 = arith.constant 0 : index
    %388 = vector.load %arg2[%c13_295, %c0_296] : memref<24x128xf32, #tpu.memory_space<vmem>>, vector<1x128xf32>
    %389 = vector.broadcast %388 : vector<1x128xf32> to vector<8x128xf32>
    %390 = arith.addf %387, %389 : vector<8x128xf32>
    %cst_297 = arith.constant 1.000000e-01 : f32
    %391 = vector.broadcast %cst_297 : f32 to vector<8x128xf32>
    %392 = arith.mulf %391, %390 : vector<8x128xf32>
    %393 = arith.maximumf %390, %392 : vector<8x128xf32>
    %c14_i32_298 = arith.constant 14 : i32
    %c14_i32_299 = arith.constant 14 : i32
    %c14_i32_300 = arith.constant 14 : i32
    %c0_i32_301 = arith.constant 0 : i32
    %c0_i32_302 = arith.constant 0 : i32
    %394 = tpu.memref_slice %arg1[%c14_i32_298, %c0_i32_301, %c0_i32_302] : memref<19x64x128xbf16, #tpu.memory_space<any>> -> memref<1x64x128xbf16, #tpu.memory_space<any>>
    %395 = tpu.memref_squeeze %394 : memref<1x64x128xbf16, #tpu.memory_space<any>> -> memref<64x128xbf16, #tpu.memory_space<any>>
    %c0_i32_303 = arith.constant 0 : i32
    %c0_i32_304 = arith.constant 0 : i32
    %396 = tpu.memref_slice %arg4[%c14_i32_299, %c0_i32_303, %c0_i32_304] : memref<19x64x128xbf16, #tpu.memory_space<vmem>> -> memref<1x64x128xbf16, #tpu.memory_space<vmem>>
    %397 = tpu.memref_squeeze %396 : memref<1x64x128xbf16, #tpu.memory_space<vmem>> -> memref<64x128xbf16, #tpu.memory_space<vmem>>
    %398 = tpu.memref_slice %arg5[%c14_i32_300] : memref<19x!tpu.dma_semaphore, #tpu.memory_space<semaphore_mem>> -> memref<1x!tpu.dma_semaphore, #tpu.memory_space<semaphore_mem>>
    %399 = tpu.memref_squeeze %398 : memref<1x!tpu.dma_semaphore, #tpu.memory_space<semaphore_mem>> -> memref<!tpu.dma_semaphore, #tpu.memory_space<semaphore_mem>>
    tpu.wait_dma2 semaphore(%399 : memref<!tpu.dma_semaphore, #tpu.memory_space<semaphore_mem>>) src(%395 : memref<64x128xbf16, #tpu.memory_space<any>>) dst(%397 : memref<64x128xbf16, #tpu.memory_space<vmem>>)
    %c18_i32 = arith.constant 18 : i32
    %c18_i32_305 = arith.constant 18 : i32
    %c18_i32_306 = arith.constant 18 : i32
    %c0_i32_307 = arith.constant 0 : i32
    %c0_i32_308 = arith.constant 0 : i32
    %400 = tpu.memref_slice %arg1[%c18_i32, %c0_i32_307, %c0_i32_308] : memref<19x64x128xbf16, #tpu.memory_space<any>> -> memref<1x64x128xbf16, #tpu.memory_space<any>>
    %401 = tpu.memref_squeeze %400 : memref<1x64x128xbf16, #tpu.memory_space<any>> -> memref<64x128xbf16, #tpu.memory_space<any>>
    %c0_i32_309 = arith.constant 0 : i32
    %c0_i32_310 = arith.constant 0 : i32
    %402 = tpu.memref_slice %arg4[%c18_i32_305, %c0_i32_309, %c0_i32_310] : memref<19x64x128xbf16, #tpu.memory_space<vmem>> -> memref<1x64x128xbf16, #tpu.memory_space<vmem>>
    %403 = tpu.memref_squeeze %402 : memref<1x64x128xbf16, #tpu.memory_space<vmem>> -> memref<64x128xbf16, #tpu.memory_space<vmem>>
    %404 = tpu.memref_slice %arg5[%c18_i32_306] : memref<19x!tpu.dma_semaphore, #tpu.memory_space<semaphore_mem>> -> memref<1x!tpu.dma_semaphore, #tpu.memory_space<semaphore_mem>>
    %405 = tpu.memref_squeeze %404 : memref<1x!tpu.dma_semaphore, #tpu.memory_space<semaphore_mem>> -> memref<!tpu.dma_semaphore, #tpu.memory_space<semaphore_mem>>
    tpu.enqueue_dma source(%401 : memref<64x128xbf16, #tpu.memory_space<any>>) target(%403 : memref<64x128xbf16, #tpu.memory_space<vmem>>) target_semaphore(%405 : memref<!tpu.dma_semaphore, #tpu.memory_space<semaphore_mem>>)
    %406 = vector.extract_strided_slice %393 {offsets = [0, 0], sizes = [8, 64], strides = [1, 1]} : vector<8x128xf32> to vector<8x64xf32>
    %407 = arith.truncf %406 : vector<8x64xf32> to vector<8x64xbf16>
    %c14 = arith.constant 14 : index
    %c0_311 = arith.constant 0 : index
    %c0_312 = arith.constant 0 : index
    %408 = vector.load %arg4[%c14, %c0_311, %c0_312] : memref<19x64x128xbf16, #tpu.memory_space<vmem>>, vector<1x64x128xbf16>
    %409 = vector.shape_cast %408 : vector<1x64x128xbf16> to vector<64x128xbf16>
    %cst_313 = arith.constant dense<0.000000e+00> : vector<8x128xf32>
    %410 = tpu.matmul %407, %409, %cst_313 {dimension_numbers = #tpu.dot_dimension_numbers<[1], [0], [0], [1], [0, 0, 1, 1], [], []>} : vector<8x64xbf16>, vector<64x128xbf16>, vector<8x128xf32> -> vector<8x128xf32>
    %c14_314 = arith.constant 14 : index
    %c0_315 = arith.constant 0 : index
    %411 = vector.load %arg2[%c14_314, %c0_315] : memref<24x128xf32, #tpu.memory_space<vmem>>, vector<1x128xf32>
    %412 = vector.broadcast %411 : vector<1x128xf32> to vector<8x128xf32>
    %413 = arith.addf %410, %412 : vector<8x128xf32>
    %cst_316 = arith.constant 1.000000e-01 : f32
    %414 = vector.broadcast %cst_316 : f32 to vector<8x128xf32>
    %415 = arith.mulf %414, %413 : vector<8x128xf32>
    %416 = arith.maximumf %413, %415 : vector<8x128xf32>
    %417 = arith.addf %362, %416 : vector<8x128xf32>
    %418 = arith.select %93, %416, %94 : vector<8x128xi1>, vector<8x128xf32>
    %cst_317 = arith.constant dense<0xFF800000> : vector<8xf32>
    %419 = vector.multi_reduction <maximumf>, %418, %cst_317 [1] : vector<8x128xf32> to vector<8xf32>
    %420 = vector.shape_cast %419 : vector<8xf32> to vector<8x1xf32>
    %c69_i32 = arith.constant 69 : i32
    %421 = vector.broadcast %c69_i32 : i32 to vector<8x128xi32>
    %422 = arith.cmpi eq, %91, %421 : vector<8x128xi32>
    %423 = vector.shape_cast %420 : vector<8x1xf32> to vector<8x1xf32>
    %424 = vector.broadcast %423 : vector<8x1xf32> to vector<8x128xf32>
    %425 = arith.select %422, %424, %370 : vector<8x128xi1>, vector<8x128xf32>
    %c15_i32_318 = arith.constant 15 : i32
    %c15_i32_319 = arith.constant 15 : i32
    %c15_i32_320 = arith.constant 15 : i32
    %c0_i32_321 = arith.constant 0 : i32
    %c0_i32_322 = arith.constant 0 : i32
    %426 = tpu.memref_slice %arg1[%c15_i32_318, %c0_i32_321, %c0_i32_322] : memref<19x64x128xbf16, #tpu.memory_space<any>> -> memref<1x64x128xbf16, #tpu.memory_space<any>>
    %427 = tpu.memref_squeeze %426 : memref<1x64x128xbf16, #tpu.memory_space<any>> -> memref<64x128xbf16, #tpu.memory_space<any>>
    %c0_i32_323 = arith.constant 0 : i32
    %c0_i32_324 = arith.constant 0 : i32
    %428 = tpu.memref_slice %arg4[%c15_i32_319, %c0_i32_323, %c0_i32_324] : memref<19x64x128xbf16, #tpu.memory_space<vmem>> -> memref<1x64x128xbf16, #tpu.memory_space<vmem>>
    %429 = tpu.memref_squeeze %428 : memref<1x64x128xbf16, #tpu.memory_space<vmem>> -> memref<64x128xbf16, #tpu.memory_space<vmem>>
    %430 = tpu.memref_slice %arg5[%c15_i32_320] : memref<19x!tpu.dma_semaphore, #tpu.memory_space<semaphore_mem>> -> memref<1x!tpu.dma_semaphore, #tpu.memory_space<semaphore_mem>>
    %431 = tpu.memref_squeeze %430 : memref<1x!tpu.dma_semaphore, #tpu.memory_space<semaphore_mem>> -> memref<!tpu.dma_semaphore, #tpu.memory_space<semaphore_mem>>
    tpu.wait_dma2 semaphore(%431 : memref<!tpu.dma_semaphore, #tpu.memory_space<semaphore_mem>>) src(%427 : memref<64x128xbf16, #tpu.memory_space<any>>) dst(%429 : memref<64x128xbf16, #tpu.memory_space<vmem>>)
    %432 = vector.extract_strided_slice %417 {offsets = [0, 0], sizes = [8, 64], strides = [1, 1]} : vector<8x128xf32> to vector<8x64xf32>
    %433 = arith.truncf %432 : vector<8x64xf32> to vector<8x64xbf16>
    %c15 = arith.constant 15 : index
    %c0_325 = arith.constant 0 : index
    %c0_326 = arith.constant 0 : index
    %434 = vector.load %arg4[%c15, %c0_325, %c0_326] : memref<19x64x128xbf16, #tpu.memory_space<vmem>>, vector<1x64x128xbf16>
    %435 = vector.shape_cast %434 : vector<1x64x128xbf16> to vector<64x128xbf16>
    %cst_327 = arith.constant dense<0.000000e+00> : vector<8x128xf32>
    %436 = tpu.matmul %433, %435, %cst_327 {dimension_numbers = #tpu.dot_dimension_numbers<[1], [0], [0], [1], [0, 0, 1, 1], [], []>} : vector<8x64xbf16>, vector<64x128xbf16>, vector<8x128xf32> -> vector<8x128xf32>
    %c15_328 = arith.constant 15 : index
    %c0_329 = arith.constant 0 : index
    %437 = vector.load %arg2[%c15_328, %c0_329] : memref<24x128xf32, #tpu.memory_space<vmem>>, vector<1x128xf32>
    %438 = vector.broadcast %437 : vector<1x128xf32> to vector<8x128xf32>
    %439 = arith.addf %436, %438 : vector<8x128xf32>
    %cst_330 = arith.constant 1.000000e-01 : f32
    %440 = vector.broadcast %cst_330 : f32 to vector<8x128xf32>
    %441 = arith.mulf %440, %439 : vector<8x128xf32>
    %442 = arith.maximumf %439, %441 : vector<8x128xf32>
    %c16_i32_331 = arith.constant 16 : i32
    %c16_i32_332 = arith.constant 16 : i32
    %c16_i32_333 = arith.constant 16 : i32
    %c0_i32_334 = arith.constant 0 : i32
    %c0_i32_335 = arith.constant 0 : i32
    %443 = tpu.memref_slice %arg1[%c16_i32_331, %c0_i32_334, %c0_i32_335] : memref<19x64x128xbf16, #tpu.memory_space<any>> -> memref<1x64x128xbf16, #tpu.memory_space<any>>
    %444 = tpu.memref_squeeze %443 : memref<1x64x128xbf16, #tpu.memory_space<any>> -> memref<64x128xbf16, #tpu.memory_space<any>>
    %c0_i32_336 = arith.constant 0 : i32
    %c0_i32_337 = arith.constant 0 : i32
    %445 = tpu.memref_slice %arg4[%c16_i32_332, %c0_i32_336, %c0_i32_337] : memref<19x64x128xbf16, #tpu.memory_space<vmem>> -> memref<1x64x128xbf16, #tpu.memory_space<vmem>>
    %446 = tpu.memref_squeeze %445 : memref<1x64x128xbf16, #tpu.memory_space<vmem>> -> memref<64x128xbf16, #tpu.memory_space<vmem>>
    %447 = tpu.memref_slice %arg5[%c16_i32_333] : memref<19x!tpu.dma_semaphore, #tpu.memory_space<semaphore_mem>> -> memref<1x!tpu.dma_semaphore, #tpu.memory_space<semaphore_mem>>
    %448 = tpu.memref_squeeze %447 : memref<1x!tpu.dma_semaphore, #tpu.memory_space<semaphore_mem>> -> memref<!tpu.dma_semaphore, #tpu.memory_space<semaphore_mem>>
    tpu.wait_dma2 semaphore(%448 : memref<!tpu.dma_semaphore, #tpu.memory_space<semaphore_mem>>) src(%444 : memref<64x128xbf16, #tpu.memory_space<any>>) dst(%446 : memref<64x128xbf16, #tpu.memory_space<vmem>>)
    %449 = vector.extract_strided_slice %442 {offsets = [0, 0], sizes = [8, 64], strides = [1, 1]} : vector<8x128xf32> to vector<8x64xf32>
    %450 = arith.truncf %449 : vector<8x64xf32> to vector<8x64xbf16>
    %c16 = arith.constant 16 : index
    %c0_338 = arith.constant 0 : index
    %c0_339 = arith.constant 0 : index
    %451 = vector.load %arg4[%c16, %c0_338, %c0_339] : memref<19x64x128xbf16, #tpu.memory_space<vmem>>, vector<1x64x128xbf16>
    %452 = vector.shape_cast %451 : vector<1x64x128xbf16> to vector<64x128xbf16>
    %cst_340 = arith.constant dense<0.000000e+00> : vector<8x128xf32>
    %453 = tpu.matmul %450, %452, %cst_340 {dimension_numbers = #tpu.dot_dimension_numbers<[1], [0], [0], [1], [0, 0, 1, 1], [], []>} : vector<8x64xbf16>, vector<64x128xbf16>, vector<8x128xf32> -> vector<8x128xf32>
    %c16_341 = arith.constant 16 : index
    %c0_342 = arith.constant 0 : index
    %454 = vector.load %arg2[%c16_341, %c0_342] : memref<24x128xf32, #tpu.memory_space<vmem>>, vector<1x128xf32>
    %455 = vector.broadcast %454 : vector<1x128xf32> to vector<8x128xf32>
    %456 = arith.addf %453, %455 : vector<8x128xf32>
    %cst_343 = arith.constant 1.000000e-01 : f32
    %457 = vector.broadcast %cst_343 : f32 to vector<8x128xf32>
    %458 = arith.mulf %457, %456 : vector<8x128xf32>
    %459 = arith.maximumf %456, %458 : vector<8x128xf32>
    %460 = arith.addf %417, %459 : vector<8x128xf32>
    %461 = arith.select %93, %459, %94 : vector<8x128xi1>, vector<8x128xf32>
    %cst_344 = arith.constant dense<0xFF800000> : vector<8xf32>
    %462 = vector.multi_reduction <maximumf>, %461, %cst_344 [1] : vector<8x128xf32> to vector<8xf32>
    %463 = vector.shape_cast %462 : vector<8xf32> to vector<8x1xf32>
    %c70_i32 = arith.constant 70 : i32
    %464 = vector.broadcast %c70_i32 : i32 to vector<8x128xi32>
    %465 = arith.cmpi eq, %91, %464 : vector<8x128xi32>
    %466 = vector.shape_cast %463 : vector<8x1xf32> to vector<8x1xf32>
    %467 = vector.broadcast %466 : vector<8x1xf32> to vector<8x128xf32>
    %468 = arith.select %465, %467, %425 : vector<8x128xi1>, vector<8x128xf32>
    %c19 = arith.constant 19 : index
    %c0_345 = arith.constant 0 : index
    %469 = vector.load %arg2[%c19, %c0_345] : memref<24x128xf32, #tpu.memory_space<vmem>>, vector<1x128xf32>
    %470 = vector.broadcast %469 : vector<1x128xf32> to vector<8x128xf32>
    %471 = arith.mulf %460, %470 : vector<8x128xf32>
    %c20 = arith.constant 20 : index
    %c0_346 = arith.constant 0 : index
    %472 = vector.load %arg2[%c20, %c0_346] : memref<24x128xf32, #tpu.memory_space<vmem>>, vector<1x128xf32>
    %473 = vector.broadcast %472 : vector<1x128xf32> to vector<8x128xf32>
    %474 = arith.addf %471, %473 : vector<8x128xf32>
    %cst_347 = arith.constant 1.000000e-01 : f32
    %475 = vector.broadcast %cst_347 : f32 to vector<8x128xf32>
    %476 = arith.mulf %475, %474 : vector<8x128xf32>
    %477 = arith.maximumf %474, %476 : vector<8x128xf32>
    %c17_i32_348 = arith.constant 17 : i32
    %c17_i32_349 = arith.constant 17 : i32
    %c17_i32_350 = arith.constant 17 : i32
    %c0_i32_351 = arith.constant 0 : i32
    %c0_i32_352 = arith.constant 0 : i32
    %478 = tpu.memref_slice %arg1[%c17_i32_348, %c0_i32_351, %c0_i32_352] : memref<19x64x128xbf16, #tpu.memory_space<any>> -> memref<1x64x128xbf16, #tpu.memory_space<any>>
    %479 = tpu.memref_squeeze %478 : memref<1x64x128xbf16, #tpu.memory_space<any>> -> memref<64x128xbf16, #tpu.memory_space<any>>
    %c0_i32_353 = arith.constant 0 : i32
    %c0_i32_354 = arith.constant 0 : i32
    %480 = tpu.memref_slice %arg4[%c17_i32_349, %c0_i32_353, %c0_i32_354] : memref<19x64x128xbf16, #tpu.memory_space<vmem>> -> memref<1x64x128xbf16, #tpu.memory_space<vmem>>
    %481 = tpu.memref_squeeze %480 : memref<1x64x128xbf16, #tpu.memory_space<vmem>> -> memref<64x128xbf16, #tpu.memory_space<vmem>>
    %482 = tpu.memref_slice %arg5[%c17_i32_350] : memref<19x!tpu.dma_semaphore, #tpu.memory_space<semaphore_mem>> -> memref<1x!tpu.dma_semaphore, #tpu.memory_space<semaphore_mem>>
    %483 = tpu.memref_squeeze %482 : memref<1x!tpu.dma_semaphore, #tpu.memory_space<semaphore_mem>> -> memref<!tpu.dma_semaphore, #tpu.memory_space<semaphore_mem>>
    tpu.wait_dma2 semaphore(%483 : memref<!tpu.dma_semaphore, #tpu.memory_space<semaphore_mem>>) src(%479 : memref<64x128xbf16, #tpu.memory_space<any>>) dst(%481 : memref<64x128xbf16, #tpu.memory_space<vmem>>)
    %484 = vector.extract_strided_slice %477 {offsets = [0, 0], sizes = [8, 64], strides = [1, 1]} : vector<8x128xf32> to vector<8x64xf32>
    %485 = arith.truncf %484 : vector<8x64xf32> to vector<8x64xbf16>
    %c17 = arith.constant 17 : index
    %c0_355 = arith.constant 0 : index
    %c0_356 = arith.constant 0 : index
    %486 = vector.load %arg4[%c17, %c0_355, %c0_356] : memref<19x64x128xbf16, #tpu.memory_space<vmem>>, vector<1x64x128xbf16>
    %487 = vector.shape_cast %486 : vector<1x64x128xbf16> to vector<64x128xbf16>
    %cst_357 = arith.constant dense<0.000000e+00> : vector<8x128xf32>
    %488 = tpu.matmul %485, %487, %cst_357 {dimension_numbers = #tpu.dot_dimension_numbers<[1], [0], [0], [1], [0, 0, 1, 1], [], []>} : vector<8x64xbf16>, vector<64x128xbf16>, vector<8x128xf32> -> vector<8x128xf32>
    %c17_358 = arith.constant 17 : index
    %c0_359 = arith.constant 0 : index
    %489 = vector.load %arg2[%c17_358, %c0_359] : memref<24x128xf32, #tpu.memory_space<vmem>>, vector<1x128xf32>
    %490 = vector.broadcast %489 : vector<1x128xf32> to vector<8x128xf32>
    %491 = arith.addf %488, %490 : vector<8x128xf32>
    %cst_360 = arith.constant 1.000000e-01 : f32
    %492 = vector.broadcast %cst_360 : f32 to vector<8x128xf32>
    %493 = arith.mulf %492, %491 : vector<8x128xf32>
    %494 = arith.maximumf %491, %493 : vector<8x128xf32>
    %c18_i32_361 = arith.constant 18 : i32
    %c18_i32_362 = arith.constant 18 : i32
    %c18_i32_363 = arith.constant 18 : i32
    %c0_i32_364 = arith.constant 0 : i32
    %c0_i32_365 = arith.constant 0 : i32
    %495 = tpu.memref_slice %arg1[%c18_i32_361, %c0_i32_364, %c0_i32_365] : memref<19x64x128xbf16, #tpu.memory_space<any>> -> memref<1x64x128xbf16, #tpu.memory_space<any>>
    %496 = tpu.memref_squeeze %495 : memref<1x64x128xbf16, #tpu.memory_space<any>> -> memref<64x128xbf16, #tpu.memory_space<any>>
    %c0_i32_366 = arith.constant 0 : i32
    %c0_i32_367 = arith.constant 0 : i32
    %497 = tpu.memref_slice %arg4[%c18_i32_362, %c0_i32_366, %c0_i32_367] : memref<19x64x128xbf16, #tpu.memory_space<vmem>> -> memref<1x64x128xbf16, #tpu.memory_space<vmem>>
    %498 = tpu.memref_squeeze %497 : memref<1x64x128xbf16, #tpu.memory_space<vmem>> -> memref<64x128xbf16, #tpu.memory_space<vmem>>
    %499 = tpu.memref_slice %arg5[%c18_i32_363] : memref<19x!tpu.dma_semaphore, #tpu.memory_space<semaphore_mem>> -> memref<1x!tpu.dma_semaphore, #tpu.memory_space<semaphore_mem>>
    %500 = tpu.memref_squeeze %499 : memref<1x!tpu.dma_semaphore, #tpu.memory_space<semaphore_mem>> -> memref<!tpu.dma_semaphore, #tpu.memory_space<semaphore_mem>>
    tpu.wait_dma2 semaphore(%500 : memref<!tpu.dma_semaphore, #tpu.memory_space<semaphore_mem>>) src(%496 : memref<64x128xbf16, #tpu.memory_space<any>>) dst(%498 : memref<64x128xbf16, #tpu.memory_space<vmem>>)
    %501 = vector.extract_strided_slice %494 {offsets = [0, 0], sizes = [8, 64], strides = [1, 1]} : vector<8x128xf32> to vector<8x64xf32>
    %502 = arith.truncf %501 : vector<8x64xf32> to vector<8x64xbf16>
    %c18 = arith.constant 18 : index
    %c0_368 = arith.constant 0 : index
    %c0_369 = arith.constant 0 : index
    %503 = vector.load %arg4[%c18, %c0_368, %c0_369] : memref<19x64x128xbf16, #tpu.memory_space<vmem>>, vector<1x64x128xbf16>
    %504 = vector.shape_cast %503 : vector<1x64x128xbf16> to vector<64x128xbf16>
    %cst_370 = arith.constant dense<0.000000e+00> : vector<8x128xf32>
    %505 = tpu.matmul %502, %504, %cst_370 {dimension_numbers = #tpu.dot_dimension_numbers<[1], [0], [0], [1], [0, 0, 1, 1], [], []>} : vector<8x64xbf16>, vector<64x128xbf16>, vector<8x128xf32> -> vector<8x128xf32>
    %c18_371 = arith.constant 18 : index
    %c0_372 = arith.constant 0 : index
    %506 = vector.load %arg2[%c18_371, %c0_372] : memref<24x128xf32, #tpu.memory_space<vmem>>, vector<1x128xf32>
    %507 = vector.broadcast %506 : vector<1x128xf32> to vector<8x128xf32>
    %508 = arith.addf %505, %507 : vector<8x128xf32>
    %cst_373 = arith.constant 1.000000e-01 : f32
    %509 = vector.broadcast %cst_373 : f32 to vector<8x128xf32>
    %510 = arith.mulf %509, %508 : vector<8x128xf32>
    %511 = arith.maximumf %508, %510 : vector<8x128xf32>
    %512 = arith.addf %511, %468 : vector<8x128xf32>
    %c0_374 = arith.constant 0 : index
    %c0_375 = arith.constant 0 : index
    %513 = vector.load %arg3[%c0_374, %c0_375] : memref<8x128xf32, #tpu.memory_space<vmem>>, vector<8x128xf32>
    tpu.vector_store %arg3[%c0_374, %c0_375], %512 {strides = array<i32>} : memref<8x128xf32, #tpu.memory_space<vmem>>, vector<8x128xf32>,
    return
  }
}

</mosaic_0001>

<bundles_post_ra>
// kernel: tpu_custom_call.1
= control target key start
LH: loop header
LB: loop body
LE: loop exit
PB: predicated region body
PF: predicated region fallthrough
CT: control target
= control target key end

     0   :  { %8 = vsyncpa [#allocation5], 0  ;;  %s3248_s0 = inlined_call_operand.hbm [shape: f32[8,128], index: 0, kind: input, shape index: {}]   ;;  %s3249_s1 = inlined_call_operand.hbm [shape: bf16[19,64,128], index: 1, kind: input, shape index: {}]   ;;  %s3250_s2 = inlined_call_operand.hbm [shape: f32[24,128], index: 2, kind: input, shape index: {}]   ;;  %s3251_s3 = inlined_call_operand.hbm [shape: f32[8,128], index: 3, kind: output, shape index: {}]  }
   0x1   :  { %9 = vsyncpa [#allocation8], 0 }
   0x2   :  { %10 = vsyncpa [#allocation6], 0  ;;  %s2587_s12 = smov [#allocation4]   ;;  %s2588_s14 = smov [#allocation7]  }
   0x3   :  { %s17_s13 = sshll.u32 %s2587_s12, 4  ;;  %s26_s15 = sshll.u32 %s2588_s14, 4  ;;  %s18_s13 = int_to_ptr.vmem [resolvable:$true] %s17_s13  ;;  %s2633_s15 = int_to_ptr.vmem [resolvable:$true] %s26_s15 }
   0x4   :  { %s2005_s18 = scalar_lea.hbm %s3248_s0, 128 }
   0x5   :  { %p2006_p0 = scmp.ne.s32.totalorder %s3248_s0, %s2005_s18  ;;  %p2009_p1 = scmp.lt.u32.totalorder %s2005_s18, %s3248_s0 }
   0x7   :  { %p2011_p2 = pnand %p2009_p1, %p2006_p0 }
   0x9   :  { %2014 = shalt.err (!%p2011_p2)
}
   0xa   :  { %s2015_s23 = scalar_lea.vmem %s18_s13, 128  ;;  %p2020_p4 = scmp.lt.s32.totalorder %s18_s13, %s18_s13 }
   0xb   :  { %p2016_p3 = scmp.ne.s32.totalorder %s18_s13, %s2015_s23  ;;  %p2021_p5 = scmp.lt.s32.totalorder %s2015_s23, %s2015_s23 }
   0xd   :  { %p2022_p6 = por %p2021_p5, %p2020_p4 }
   0xf   :  { %p2023_p7 = pnand %p2022_p6, %p2016_p3 }
  0x11   :  { %2026 = shalt.err (!%p2023_p7)
}
  0x12   :  { %20 = dma.hbm_to_vmem [thread:$0]  %s3248_s0, 128, %s18_s13, [#allocation5]  }
  0x13   :  { %s2027_s28 = scalar_lea.hbm %s3250_s2, 384 }
  0x14   :  { %p2028_p8 = scmp.ne.s32.totalorder %s3250_s2, %s2027_s28  ;;  %p2031_p9 = scmp.lt.u32.totalorder %s2027_s28, %s3250_s2 }
  0x16   :  { %p2033_p10 = pnand %p2031_p9, %p2028_p8 }
  0x18   :  { %2036 = shalt.err (!%p2033_p10)
}
  0x19   :  { %s2037_s6 = scalar_lea.vmem %s2633_s15, 384  ;;  %p2042_p12 = scmp.lt.s32.totalorder %s2633_s15, %s2633_s15 }
  0x1a   :  { %p2038_p11 = scmp.ne.s32.totalorder %s2633_s15, %s2037_s6  ;;  %p2043_p13 = scmp.lt.s32.totalorder %s2037_s6, %s2037_s6 }
  0x1c   :  { %p2044_p0 = por %p2043_p13, %p2042_p12 }
  0x1e   :  { %p2045_p1 = pnand %p2044_p0, %p2038_p11 }
  0x20   :  { %2048 = shalt.err (!%p2045_p1)
}
  0x21   :  { %s2589_s0 = smov 128   ;;  %s2590_s7 = smov 8  }
  0x22   :  { %32 = dma.hbm_to_vmem [thread:$0]  %s3250_s2, 384, %s2633_s15, [#allocation8], %s2589_s0, %s2589_s0, %s2590_s7  }
  0x23   :  { %2543 = dma.done.wait [#allocation5], 128  }
  0x24   :  { %2544 = vsyncadd [#allocation5], 4294967168 }
  0x25   :  { %2545 = dma.done.wait [#allocation8], 384  }
  0x26   :  { %2546 = vsyncadd [#allocation8], 4294966912  ;;  %s2667_s12 = scalar_lea.hbm %s3249_s1, 512  ;;  %s2591_s13 = smov [#allocation2]  }
  0x27   :  { %s47_s14 = sshll.u32 %s2591_s13, 4  ;;  %s2592_s16 = smov [#allocation2 + $0x20]   ;;  %s2669_s14 = int_to_ptr.vmem [resolvable:$true] %s47_s14 }
  0x28   :  { %s61_s17 = sshll.u32 %s2592_s16, 4  ;;  %p2050_p2 = scmp.ne.s32.totalorder %s3249_s1, %s2667_s12  ;;  %s62_s17 = int_to_ptr.vmem [resolvable:$true] %s61_s17 }
  0x29   :  { %s2678_s20 = scalar_lea.hbm %s3249_s1, 9728  ;;  %p2053_p4 = scmp.lt.u32.totalorder %s2667_s12, %s3249_s1 }
  0x2a   :  { %p2052_p3 = scmp.lt.u32.totalorder %s2678_s20, %s2667_s12 }
  0x2c   :  { %p2054_p5 = por %p2053_p4, %p2052_p3 }
  0x2e   :  { %p2055_p6 = pnand %p2054_p5, %p2050_p2 }
  0x30   :  { %2058 = shalt.err (!%p2055_p6)  }
  0x31   :  { %s2059_s25 = scalar_lea.vmem %s2669_s14, 512  ;;  %s2694_s26 = scalar_lea.vmem %s2669_s14, 9728 }
  0x32   :  { %p2060_p7 = scmp.ne.s32.totalorder %s2669_s14, %s2059_s25  ;;  %p2064_p8 = scmp.lt.s32.totalorder %s2669_s14, %s2669_s14 }
  0x33   :  { %p2065_p9 = scmp.lt.s32.totalorder %s2694_s26, %s2059_s25 }
  0x35   :  { %p2066_p10 = por %p2065_p9, %p2064_p8 }
  0x37   :  { %p2067_p11 = pnand %p2066_p10, %p2060_p7 }
  0x39   :  { %2070 = shalt.err (!%p2067_p11)  }
  0x3a   :  { %50 = dma.hbm_to_vmem [thread:$0]  %s3249_s1, 512, %s2669_s14, [#allocation3] }
  0x3b   :  { %s2706_s4 = scalar_lea.hbm %s3249_s1, 1024 }
  0x3c   :  { %p2072_p12 = scmp.ne.s32.totalorder %s2667_s12, %s2706_s4  ;;  %p2075_p13 = scmp.lt.u32.totalorder %s2678_s20, %s2706_s4 }
  0x3d   :  { %p2077_p1 = scmp.lt.u32.totalorder %s2706_s4, %s2667_s12 }
  0x3e   :  { %p2076_p0 = por %p2075_p13, %p2053_p4 }
  0x40   :  { %p2078_p2 = por %p2077_p1, %p2076_p0 }
  0x42   :  { %p2079_p3 = pnand %p2078_p2, %p2072_p12 }
  0x44   :  { %2082 = shalt.err (!%p2079_p3)  }
  0x45   :  { %s2083_s0 = scalar_lea.vmem %s62_s17, 512  ;;  %p2088_p6 = scmp.lt.s32.totalorder %s62_s17, %s2669_s14 }
  0x46   :  { %p2084_p5 = scmp.ne.s32.totalorder %s62_s17, %s2083_s0  ;;  %p2089_p7 = scmp.lt.s32.totalorder %s2694_s26, %s2083_s0 }
  0x48   :  { %p2090_p8 = por %p2089_p7, %p2088_p6 }
  0x4a   :  { %p2091_p9 = pnand %p2090_p8, %p2084_p5 }
  0x4c   :  { %2094 = shalt.err (!%p2091_p9)  }
  0x4d   :  { %64 = dma.hbm_to_vmem [thread:$0]  %s2667_s12, 512, %s62_s17, [#allocation3 + $0x1]  ;;  %v2727_v0 = vld [vmem:[#allocation4] sm:$0xff] }
  0x4e   :  { %s2725_s9 = scalar_lea.hbm %s3249_s1, 1536  ;;  %s2593_s10 = smov [#allocation2 + $0x40]  }
  0x4f   :  { %s75_s11 = sshll.u32 %s2593_s10, 4  ;;  %s2594_s13 = smov [#allocation2 + $0x60]   ;;  %s76_s11 = int_to_ptr.vmem [resolvable:$true] %s75_s11 }
  0x50   :  { %s89_s16 = sshll.u32 %s2594_s13, 4  ;;  %p2097_p4 = scmp.ne.s32.totalorder %s2706_s4, %s2725_s9  ;;  %s90_s16 = int_to_ptr.vmem [resolvable:$true] %s89_s16 }
  0x51   :  { %p2099_p10 = scmp.lt.u32.totalorder %s2706_s4, %s3249_s1  ;;  %p2100_p11 = scmp.lt.u32.totalorder %s2678_s20, %s2725_s9 }
  0x52   :  { %p2102_p13 = scmp.lt.u32.totalorder %s2725_s9, %s2706_s4 }
  0x53   :  { %p2101_p12 = por %p2100_p11, %p2099_p10 }
  0x55   :  { %p2103_p0 = por %p2102_p13, %p2101_p12 }
  0x57   :  { %p2104_p1 = pnand %p2103_p0, %p2097_p4 }
  0x59   :  { %2107 = shalt.err (!%p2104_p1)  }
  0x5a   :  { %s2108_s12 = scalar_lea.vmem %s76_s11, 512  ;;  %p2113_p3 = scmp.lt.s32.totalorder %s76_s11, %s2669_s14 }
  0x5b   :  { %p2109_p2 = scmp.ne.s32.totalorder %s76_s11, %s2108_s12  ;;  %p2114_p5 = scmp.lt.s32.totalorder %s2694_s26, %s2108_s12 }
  0x5d   :  { %p2115_p6 = por %p2114_p5, %p2113_p3 }
  0x5f   :  { %p2116_p7 = pnand %p2115_p6, %p2109_p2 }
  0x61   :  { %2119 = shalt.err (!%p2116_p7)  }
  0x62   :  { %78 = dma.hbm_to_vmem [thread:$0]  %s2706_s4, 512, %s76_s11, [#allocation3 + $0x2] }
  0x63   :  { %s2745_s19 = scalar_lea.hbm %s3249_s1, 2048  ;;  %p2124_p9 = scmp.lt.u32.totalorder %s2725_s9, %s3249_s1 }
  0x64   :  { %p2122_p8 = scmp.ne.s32.totalorder %s2725_s9, %s2745_s19  ;;  %p2125_p4 = scmp.lt.u32.totalorder %s2678_s20, %s2745_s19 }
  0x65   :  { %p2127_p11 = scmp.lt.u32.totalorder %s2745_s19, %s2725_s9 }
  0x66   :  { %p2126_p10 = por %p2125_p4, %p2124_p9 }
  0x68   :  { %p2128_p12 = por %p2127_p11, %p2126_p10 }
  0x6a   :  { %p2129_p13 = pnand %p2128_p12, %p2122_p8 }
  0x6c   :  { %2132 = shalt.err (!%p2129_p13)  }
  0x6d   :  { %s2133_s23 = scalar_lea.vmem %s90_s16, 512  ;;  %p2138_p1 = scmp.lt.s32.totalorder %s90_s16, %s2669_s14 }
  0x6e   :  { %p2134_p0 = scmp.ne.s32.totalorder %s90_s16, %s2133_s23  ;;  %p2139_p2 = scmp.lt.s32.totalorder %s2694_s26, %s2133_s23 }
  0x70   :  { %p2140_p3 = por %p2139_p2, %p2138_p1 }
  0x72   :  { %p2141_p5 = pnand %p2140_p3, %p2134_p0 }
  0x74   :  { %2144 = shalt.err (!%p2141_p5)  }
  0x75   :  { %92 = dma.hbm_to_vmem [thread:$0]  %s2725_s9, 512, %s90_s16, [#allocation3 + $0x3] }
  0x76   :  { %2547 = dma.done.wait [#allocation3], 512 }
  0x77   :  { %2548 = vsyncadd [#allocation3], 4294966784  ;;  %s2595_s24 = smov [#allocation2 + $0x80]   ;;  %v2596_v1 = vmov 0.0   ;;  %vm2597_vm0 = vmmov 0   ;;  %s2766_s29 = scalar_lea.hbm %s3249_s1, 2560 }
  0x78   :  { %s108_s25 = sshll.u32 %s2595_s24, 4  ;;  %1751 = vmatprep.subr.bf16.mxu0 %v2596_v1  ;;  %1759 = vmatprep.mubr.msk.bf16.mxu0 %vm2597_vm0, %v2596_v1  ;;  %p2147_p6 = scmp.ne.s32.totalorder %s2745_s19, %s2766_s29  ;;  %s109_s25 = int_to_ptr.vmem [resolvable:$true] %s108_s25 }
  0x79   :  { %p2149_p7 = scmp.lt.u32.totalorder %s2745_s19, %s3249_s1  ;;  %p2150_p8 = scmp.lt.u32.totalorder %s2678_s20, %s2766_s29 }
  0x7a   :  { %p2152_p4 = scmp.lt.u32.totalorder %s2766_s29, %s2745_s19 }
  0x7b   :  { %p2151_p9 = por %p2150_p8, %p2149_p7 }
  0x7d   :  { %p2153_p10 = por %p2152_p4, %p2151_p9 }
  0x7f   :  { %p2154_p11 = pnand %p2153_p10, %p2147_p6 }
  0x81   :  { %2157 = shalt.err (!%p2154_p11)  }
  0x82   :  { %s2158_s5 = scalar_lea.vmem %s109_s25, 512  ;;  %p2163_p13 = scmp.lt.s32.totalorder %s109_s25, %s2669_s14 }
  0x83   :  { %p2159_p12 = scmp.ne.s32.totalorder %s109_s25, %s2158_s5  ;;  %p2164_p0 = scmp.lt.s32.totalorder %s2694_s26, %s2158_s5 }
  0x85   :  { %p2165_p1 = por %p2164_p0, %p2163_p13 }
  0x87   :  { %p2166_p2 = pnand %p2165_p1, %p2159_p12 }
  0x89   :  { %2169 = shalt.err (!%p2166_p2)  }
  0x8a   :  { %111 = dma.hbm_to_vmem [thread:$0]  %s2745_s19, 512, %s109_s25, [#allocation3 + $0x4]  ;;  %v112_v6 = vpack.c.bf16 %v2727_v0, %v2727_v0  ;;  %vm122_vm1 = vcmask 523264   ;;  %v1597_v7 = vld [vmem:[#allocation7] ss:$0 sm:$0xff] }
  0x8b   :  { %v113_v2 = vld [vmem:[#allocation2] sm:$0xff]  ;;  %v114_v3 = vld [vmem:[#allocation2 + $0x8] sm:$0xff]  ;;  %v115_v4 = vld [vmem:[#allocation2 + $0x10] sm:$0xff] }
  0x8c   :  { %1752 = vmatpush3.bf16.msra.mxu0 %v113_v2  ;;  %v116_v5 = vld [vmem:[#allocation2 + $0x18] sm:$0xff] }
  0x8d   :  { %1753 = vmatprep.subr.bf16.mxu0 %v2596_v1 }
  0x90   :  { %1754 = vmatpush3.bf16.msra.mxu0 %v114_v3 }
  0x91   :  { %1755 = vmatprep.subr.bf16.mxu0 %v2596_v1 }
  0x94   :  { %1756 = vmatpush3.bf16.msra.mxu0 %v115_v4 }
  0x95   :  { %1757 = vmatprep.subr.bf16.mxu0 %v2596_v1 }
  0x98   :  { %1758 = vmatpush3.bf16.msra.mxu0 %v116_v5 }
  0x9b   :  { %1760 = vmatmul.mubr.msk.bf16.vlgmr.msra.gmra.mrb[0].mxu0 %vm122_vm1, %v112_v6 }
 0x16e   :  { %v160_v8 = vpop.f32.mrb[0].mxu0 }
 0x16f   :  { %v161_v9 = vadd.f32 %v1597_v7, %v160_v8  ;;  %v1761_v10 = vpop.f32.mrb[1].mxu0 }
 0x170   :  { %v163_v11 = vpop.f32.mrb[2].mxu0 }
 0x171   :  { %v166_v12 = vmul.f32 0.1, %v161_v9  ;;  %v1762_v13 = vpop.f32.mrb[3].mxu0 }
 0x173   :  { %v167_v14 = vmax.f32 %v161_v9, %v166_v12 }
 0x174   :  { %2549 = dma.done.wait [#allocation3 + $0x1], 512 }
 0x175   :  { %2550 = vsyncadd [#allocation3 + $0x1], 4294966784  ;;  %1763 = vmatprep.subr.bf16.mxu1 %v2596_v1  ;;  %1771 = vmatprep.mubr.msk.bf16.mxu1 %vm2597_vm0, %v2596_v1  ;;  %s2598_s6 = smov [#allocation2 + $0xa0]   ;;  %s2793_s9 = scalar_lea.hbm %s3249_s1, 3072 }
 0x176   :  { %s180_s0 = sshll.u32 %s2598_s6, 4  ;;  %p2172_p3 = scmp.ne.s32.totalorder %s2766_s29, %s2793_s9  ;;  %s181_s0 = int_to_ptr.vmem [resolvable:$true] %s180_s0 }
 0x177   :  { %p2174_p5 = scmp.lt.u32.totalorder %s2766_s29, %s3249_s1  ;;  %p2175_p6 = scmp.lt.u32.totalorder %s2678_s20, %s2793_s9 }
 0x178   :  { %p2177_p8 = scmp.lt.u32.totalorder %s2793_s9, %s2766_s29 }
 0x179   :  { %p2176_p7 = por %p2175_p6, %p2174_p5 }
 0x17b   :  { %p2178_p9 = por %p2177_p8, %p2176_p7 }
 0x17d   :  { %p2179_p4 = pnand %p2178_p9, %p2172_p3 }
 0x17f   :  { %2182 = shalt.err (!%p2179_p4)  }
 0x180   :  { %s2183_s13 = scalar_lea.vmem %s181_s0, 512  ;;  %p2188_p11 = scmp.lt.s32.totalorder %s181_s0, %s2669_s14 }
 0x181   :  { %p2184_p10 = scmp.ne.s32.totalorder %s181_s0, %s2183_s13  ;;  %p2189_p12 = scmp.lt.s32.totalorder %s2694_s26, %s2183_s13 }
 0x183   :  { %p2190_p13 = por %p2189_p12, %p2188_p11 }
 0x185   :  { %p2191_p0 = pnand %p2190_p13, %p2184_p10 }
 0x187   :  { %2194 = shalt.err (!%p2191_p0)  }
 0x188   :  { %183 = dma.hbm_to_vmem [thread:$0]  %s2766_s29, 512, %s181_s0, [#allocation3 + $0x5]  ;;  %v184_v19 = vpack.c.bf16 %v167_v14, %v167_v14  ;;  %v1599_v20 = vld [vmem:[#allocation7 + $0x1] ss:$0 sm:$0xff] }
 0x189   :  { %v185_v15 = vld [vmem:[#allocation2 + $0x20] sm:$0xff]  ;;  %v186_v16 = vld [vmem:[#allocation2 + $0x28] sm:$0xff]  ;;  %v187_v17 = vld [vmem:[#allocation2 + $0x30] sm:$0xff] }
 0x18a   :  { %1764 = vmatpush3.bf16.msra.mxu1 %v185_v15  ;;  %v188_v18 = vld [vmem:[#allocation2 + $0x38] sm:$0xff] }
 0x18b   :  { %1765 = vmatprep.subr.bf16.mxu1 %v2596_v1 }
 0x18e   :  { %1766 = vmatpush3.bf16.msra.mxu1 %v186_v16 }
 0x18f   :  { %1767 = vmatprep.subr.bf16.mxu1 %v2596_v1 }
 0x192   :  { %1768 = vmatpush3.bf16.msra.mxu1 %v187_v17 }
 0x193   :  { %1769 = vmatprep.subr.bf16.mxu1 %v2596_v1 }
 0x196   :  { %1770 = vmatpush3.bf16.msra.mxu1 %v188_v18 }
 0x199   :  { %1772 = vmatmul.mubr.msk.bf16.vlgmr.msra.gmra.mrb[0].mxu1 %vm122_vm1, %v184_v19 }
 0x26c   :  { %v231_v21 = vpop.f32.mrb[0].mxu1 }
 0x26d   :  { %v232_v22 = vadd.f32 %v1599_v20, %v231_v21  ;;  %v1773_v23 = vpop.f32.mrb[1].mxu1 }
 0x26e   :  { %v234_v24 = vpop.f32.mrb[2].mxu1 }
 0x26f   :  { %v237_v25 = vmul.f32 0.1, %v232_v22  ;;  %v1774_v26 = vpop.f32.mrb[3].mxu1 }
 0x271   :  { %v238_v27 = vmax.f32 %v232_v22, %v237_v25 }
 0x272   :  { %2551 = dma.done.wait [#allocation3 + $0x2], 512 }
 0x273   :  { %2552 = vsyncadd [#allocation3 + $0x2], 4294966784  ;;  %1775 = vmatprep.subr.bf16.mxu0 %v2596_v1  ;;  %1783 = vmatprep.mubr.msk.bf16.mxu0 %vm2597_vm0, %v2596_v1  ;;  %s2599_s16 = smov [#allocation2 + $0xc0]   ;;  %s2818_s17 = scalar_lea.hbm %s3249_s1, 3584 }
 0x274   :  { %s251_s2 = sshll.u32 %s2599_s16, 4  ;;  %p2197_p1 = scmp.ne.s32.totalorder %s2793_s9, %s2818_s17  ;;  %s252_s2 = int_to_ptr.vmem [resolvable:$true] %s251_s2 }
 0x275   :  { %p2199_p2 = scmp.lt.u32.totalorder %s2793_s9, %s3249_s1  ;;  %p2200_p3 = scmp.lt.u32.totalorder %s2678_s20, %s2818_s17 }
 0x276   :  { %p2202_p6 = scmp.lt.u32.totalorder %s2818_s17, %s2793_s9 }
 0x277   :  { %p2201_p5 = por %p2200_p3, %p2199_p2 }
 0x279   :  { %p2203_p7 = por %p2202_p6, %p2201_p5 }
 0x27b   :  { %p2204_p8 = pnand %p2203_p7, %p2197_p1 }
 0x27d   :  { %2207 = shalt.err (!%p2204_p8)  }
 0x27e   :  { %s2208_s21 = scalar_lea.vmem %s252_s2, 512  ;;  %p2213_p4 = scmp.lt.s32.totalorder %s252_s2, %s2669_s14 }
 0x27f   :  { %p2209_p9 = scmp.ne.s32.totalorder %s252_s2, %s2208_s21  ;;  %p2214_p10 = scmp.lt.s32.totalorder %s2694_s26, %s2208_s21 }
 0x281   :  { %p2215_p11 = por %p2214_p10, %p2213_p4 }
 0x283   :  { %p2216_p12 = pnand %p2215_p11, %p2209_p9 }
 0x285   :  { %2219 = shalt.err (!%p2216_p12)  }
 0x286   :  { %254 = dma.hbm_to_vmem [thread:$0]  %s2793_s9, 512, %s252_s2, [#allocation3 + $0x6]  ;;  %v255_v32 = vpack.c.bf16 %v238_v27, %v238_v27  ;;  %v308_v33 = vlaneseq  ;;  %v1601_v35 = vld [vmem:[#allocation7 + $0x2] ss:$0 sm:$0xff] }
 0x287   :  { %v256_v28 = vld [vmem:[#allocation2 + $0x40] sm:$0xff]  ;;  %v257_v29 = vld [vmem:[#allocation2 + $0x48] sm:$0xff]  ;;  %v258_v30 = vld [vmem:[#allocation2 + $0x50] sm:$0xff] }
 0x288   :  { %1776 = vmatpush3.bf16.msra.mxu0 %v256_v28  ;;  %v259_v31 = vld [vmem:[#allocation2 + $0x58] sm:$0xff]  ;;  %v2837_v34 = vand.u32 127, %v308_v33 }
 0x289   :  { %1777 = vmatprep.subr.bf16.mxu0 %v2596_v1 }
 0x28a   :  { %vm310_vm2 = vcmp.lt.s32.totalorder %v2837_v34, 64 }
 0x28c   :  { %1778 = vmatpush3.bf16.msra.mxu0 %v257_v29 }
 0x28d   :  { %1779 = vmatprep.subr.bf16.mxu0 %v2596_v1 }
 0x290   :  { %1780 = vmatpush3.bf16.msra.mxu0 %v258_v30 }
 0x291   :  { %1781 = vmatprep.subr.bf16.mxu0 %v2596_v1 }
 0x294   :  { %1782 = vmatpush3.bf16.msra.mxu0 %v259_v31 }
 0x297   :  { %1784 = vmatmul.mubr.msk.bf16.vlgmr.msra.gmra.mrb[4].mxu0 %vm122_vm1, %v255_v32 }
 0x36a   :  { %v302_v36 = vpop.f32.mrb[4].mxu0 }
 0x36b   :  { %v2840_v37 = vadd.f32 %v1601_v35, %v302_v36  ;;  %v1785_v38 = vpop.f32.mrb[5].mxu0 }
 0x36c   :  { %v305_v39 = vpop.f32.mrb[6].mxu0 }
 0x36d   :  { %v1786_v40 = vpop.f32.mrb[7].mxu0 }
 0x36e   :  { %2553 = dma.done.wait [#allocation3 + $0x3], 512 }
 0x36f   :  { %2554 = vsyncadd [#allocation3 + $0x3], 4294966784  ;;  %1787 = vmatprep.subr.bf16.mxu1 %v2596_v1  ;;  %1795 = vmatprep.mubr.msk.bf16.mxu1 %vm2597_vm0, %v2596_v1  ;;  %s2600_s22 = smov [#allocation2 + $0xe0]   ;;  %s2848_s27 = scalar_lea.hbm %s3249_s1, 4096 }
 0x370   :  { %s323_s23 = sshll.u32 %s2600_s22, 4  ;;  %p2222_p13 = scmp.ne.s32.totalorder %s2818_s17, %s2848_s27  ;;  %s324_s23 = int_to_ptr.vmem [resolvable:$true] %s323_s23 }
 0x371   :  { %p2224_p0 = scmp.lt.u32.totalorder %s2818_s17, %s3249_s1  ;;  %p2225_p1 = scmp.lt.u32.totalorder %s2678_s20, %s2848_s27 }
 0x372   :  { %p2227_p3 = scmp.lt.u32.totalorder %s2848_s27, %s2818_s17 }
 0x373   :  { %p2226_p2 = por %p2225_p1, %p2224_p0 }
 0x375   :  { %p2228_p5 = por %p2227_p3, %p2226_p2 }
 0x377   :  { %p2229_p6 = pnand %p2228_p5, %p2222_p13 }
 0x379   :  { %2232 = shalt.err (!%p2229_p6)  }
 0x37a   :  { %s2233_s30 = scalar_lea.vmem %s324_s23, 512  ;;  %p2238_p8 = scmp.lt.s32.totalorder %s324_s23, %s2669_s14 }
 0x37b   :  { %p2234_p7 = scmp.ne.s32.totalorder %s324_s23, %s2233_s30  ;;  %p2239_p9 = scmp.lt.s32.totalorder %s2694_s26, %s2233_s30 }
 0x37d   :  { %p2240_p4 = por %p2239_p9, %p2238_p8 }
 0x37f   :  { %p2241_p10 = pnand %p2240_p4, %p2234_p7 }
 0x381   :  { %2244 = shalt.err (!%p2241_p10)  }
 0x382   :  { %326 = dma.hbm_to_vmem [thread:$0]  %s2818_s17, 512, %s324_s23, [#allocation3 + $0x7]  ;;  %v327_v45 = vpack.c.bf16 %v2840_v37, %v2840_v37  ;;  %v1603_v46 = vld [vmem:[#allocation7 + $0x3] ss:$0 sm:$0xff] }
 0x383   :  { %v328_v41 = vld [vmem:[#allocation2 + $0x60] sm:$0xff]  ;;  %v329_v42 = vld [vmem:[#allocation2 + $0x68] sm:$0xff]  ;;  %v330_v43 = vld [vmem:[#allocation2 + $0x70] sm:$0xff] }
 0x384   :  { %1788 = vmatpush3.bf16.msra.mxu1 %v328_v41  ;;  %v331_v44 = vld [vmem:[#allocation2 + $0x78] sm:$0xff] }
 0x385   :  { %1789 = vmatprep.subr.bf16.mxu1 %v2596_v1 }
 0x388   :  { %1790 = vmatpush3.bf16.msra.mxu1 %v329_v42 }
 0x389   :  { %1791 = vmatprep.subr.bf16.mxu1 %v2596_v1 }
 0x38c   :  { %1792 = vmatpush3.bf16.msra.mxu1 %v330_v43 }
 0x38d   :  { %1793 = vmatprep.subr.bf16.mxu1 %v2596_v1 }
 0x390   :  { %1794 = vmatpush3.bf16.msra.mxu1 %v331_v44 }
 0x393   :  { %1796 = vmatmul.mubr.msk.bf16.vlgmr.msra.gmra.mrb[4].mxu1 %vm122_vm1, %v327_v45 }
 0x466   :  { %v374_v47 = vpop.f32.mrb[4].mxu1 }
 0x467   :  { %v375_v48 = vadd.f32 %v1603_v46, %v374_v47  ;;  %v1797_v49 = vpop.f32.mrb[5].mxu1 }
 0x468   :  { %v377_v50 = vpop.f32.mrb[6].mxu1 }
 0x469   :  { %v380_v51 = vmul.f32 0.1, %v375_v48  ;;  %v1798_v52 = vpop.f32.mrb[7].mxu1 }
 0x46b   :  { %v381_v53 = vmax.f32 %v375_v48, %v380_v51 }
 0x46c   :  { %2555 = dma.done.wait [#allocation3 + $0x4], 512 }
 0x46d   :  { %2556 = vsyncadd [#allocation3 + $0x4], 4294966784  ;;  %1799 = vmatprep.subr.bf16.mxu0 %v2596_v1  ;;  %1807 = vmatprep.mubr.msk.bf16.mxu0 %vm2597_vm0, %v2596_v1  ;;  %s2601_s4 = smov [#allocation2 + $0x100]   ;;  %s2875_s7 = scalar_lea.hbm %s3249_s1, 4608 }
 0x46e   :  { %s394_s5 = sshll.u32 %s2601_s4, 4  ;;  %p2247_p11 = scmp.ne.s32.totalorder %s2848_s27, %s2875_s7  ;;  %s395_s5 = int_to_ptr.vmem [resolvable:$true] %s394_s5 }
 0x46f   :  { %p2249_p12 = scmp.lt.u32.totalorder %s2848_s27, %s3249_s1  ;;  %p2250_p13 = scmp.lt.u32.totalorder %s2678_s20, %s2875_s7 }
 0x470   :  { %p2252_p1 = scmp.lt.u32.totalorder %s2875_s7, %s2848_s27 }
 0x471   :  { %p2251_p0 = por %p2250_p13, %p2249_p12 }
 0x473   :  { %p2253_p2 = por %p2252_p1, %p2251_p0 }
 0x475   :  { %p2254_p3 = pnand %p2253_p2, %p2247_p11 }
 0x477   :  { %2257 = shalt.err (!%p2254_p3)  }
 0x478   :  { %s2258_s10 = scalar_lea.vmem %s395_s5, 512  ;;  %p2263_p6 = scmp.lt.s32.totalorder %s395_s5, %s2669_s14 }
 0x479   :  { %p2259_p5 = scmp.ne.s32.totalorder %s395_s5, %s2258_s10  ;;  %p2264_p7 = scmp.lt.s32.totalorder %s2694_s26, %s2258_s10 }
 0x47b   :  { %p2265_p8 = por %p2264_p7, %p2263_p6 }
 0x47d   :  { %p2266_p9 = pnand %p2265_p8, %p2259_p5 }
 0x47f   :  { %2269 = shalt.err (!%p2266_p9)  }
 0x480   :  { %397 = dma.hbm_to_vmem [thread:$0]  %s2848_s27, 512, %s395_s5, [#allocation3 + $0x8]  ;;  %v398_v58 = vpack.c.bf16 %v381_v53, %v381_v53  ;;  %v1605_v59 = vld [vmem:[#allocation7 + $0x4] ss:$0 sm:$0xff]  ;;  %vm457_vm3 = vcmp.eq.s32.totalorder %v2837_v34, 64 }
 0x481   :  { %v399_v54 = vld [vmem:[#allocation2 + $0x80] sm:$0xff]  ;;  %v400_v55 = vld [vmem:[#allocation2 + $0x88] sm:$0xff]  ;;  %v401_v56 = vld [vmem:[#allocation2 + $0x90] sm:$0xff] }
 0x482   :  { %1800 = vmatpush3.bf16.msra.mxu0 %v399_v54  ;;  %v402_v57 = vld [vmem:[#allocation2 + $0x98] sm:$0xff] }
 0x483   :  { %1801 = vmatprep.subr.bf16.mxu0 %v2596_v1 }
 0x486   :  { %1802 = vmatpush3.bf16.msra.mxu0 %v400_v55 }
 0x487   :  { %1803 = vmatprep.subr.bf16.mxu0 %v2596_v1 }
 0x48a   :  { %1804 = vmatpush3.bf16.msra.mxu0 %v401_v56 }
 0x48b   :  { %1805 = vmatprep.subr.bf16.mxu0 %v2596_v1 }
 0x48e   :  { %1806 = vmatpush3.bf16.msra.mxu0 %v402_v57 }
 0x491   :  { %1808 = vmatmul.mubr.msk.bf16.vlgmr.msra.gmra.mrb[8].mxu0 %vm122_vm1, %v398_v58 }
 0x564   :  { %v445_v60 = vpop.f32.mrb[8].mxu0 }
 0x565   :  { %v446_v61 = vadd.f32 %v1605_v59, %v445_v60  ;;  %v1809_v62 = vpop.f32.mrb[9].mxu0 }
 0x566   :  { %v448_v63 = vpop.f32.mrb[10].mxu0 }
 0x567   :  { %v451_v0 = vmul.f32 0.1, %v446_v61  ;;  %v1810_v2 = vpop.f32.mrb[11].mxu0 }
 0x569   :  { %v452_v3 = vmax.f32 %v446_v61, %v451_v0 }
 0x56b   :  { %v2895_v4 = vadd.f32 %v452_v3, %v2840_v37  ;;  %v454_v5 = vsel %vm310_vm2, %v452_v3, -inf }
 0x56c   :  { %455 = vmax.xlane.f32.xlu0 %v454_v5 }
 0x5f9   :  { %v456_v6 = vpop.xlane.xlu0 %455 }
 0x5fa   :  { %v2900_v7 = vsel %vm457_vm3, %v456_v6, 0.0 }
 0x5fb   :  { %2557 = dma.done.wait [#allocation3 + $0x5], 512 }
 0x5fc   :  { %2558 = vsyncadd [#allocation3 + $0x5], 4294966784  ;;  %1811 = vmatprep.subr.bf16.mxu1 %v2596_v1  ;;  %1819 = vmatprep.mubr.msk.bf16.mxu1 %vm2597_vm0, %v2596_v1  ;;  %s2602_s11 = smov [#allocation2 + $0x120]   ;;  %s2908_s15 = scalar_lea.hbm %s3249_s1, 5120 }
 0x5fd   :  { %s471_s13 = sshll.u32 %s2602_s11, 4  ;;  %p2272_p4 = scmp.ne.s32.totalorder %s2875_s7, %s2908_s15  ;;  %s472_s13 = int_to_ptr.vmem [resolvable:$true] %s471_s13 }
 0x5fe   :  { %p2274_p10 = scmp.lt.u32.totalorder %s2875_s7, %s3249_s1  ;;  %p2275_p11 = scmp.lt.u32.totalorder %s2678_s20, %s2908_s15 }
 0x5ff   :  { %p2277_p13 = scmp.lt.u32.totalorder %s2908_s15, %s2875_s7 }
 0x600   :  { %p2276_p12 = por %p2275_p11, %p2274_p10 }
 0x602   :  { %p2278_p0 = por %p2277_p13, %p2276_p12 }
 0x604   :  { %p2279_p1 = pnand %p2278_p0, %p2272_p4 }
 0x606   :  { %2282 = shalt.err (!%p2279_p1)  }
 0x607   :  { %s2283_s18 = scalar_lea.vmem %s472_s13, 512  ;;  %p2288_p3 = scmp.lt.s32.totalorder %s472_s13, %s2669_s14 }
 0x608   :  { %p2284_p2 = scmp.ne.s32.totalorder %s472_s13, %s2283_s18  ;;  %p2289_p5 = scmp.lt.s32.totalorder %s2694_s26, %s2283_s18 }
 0x60a   :  { %p2290_p6 = por %p2289_p5, %p2288_p3 }
 0x60c   :  { %p2291_p7 = pnand %p2290_p6, %p2284_p2 }
 0x60e   :  { %2294 = shalt.err (!%p2291_p7)  }
 0x60f   :  { %474 = dma.hbm_to_vmem [thread:$0]  %s2875_s7, 512, %s472_s13, [#allocation3 + $0x9]  ;;  %v475_v12 = vpack.c.bf16 %v2895_v4, %v2895_v4  ;;  %v1607_v13 = vld [vmem:[#allocation7 + $0x5] ss:$0 sm:$0xff] }
 0x610   :  { %v476_v8 = vld [vmem:[#allocation2 + $0xa0] sm:$0xff]  ;;  %v477_v9 = vld [vmem:[#allocation2 + $0xa8] sm:$0xff]  ;;  %v478_v10 = vld [vmem:[#allocation2 + $0xb0] sm:$0xff] }
 0x611   :  { %1812 = vmatpush3.bf16.msra.mxu1 %v476_v8  ;;  %v479_v11 = vld [vmem:[#allocation2 + $0xb8] sm:$0xff] }
 0x612   :  { %1813 = vmatprep.subr.bf16.mxu1 %v2596_v1 }
 0x615   :  { %1814 = vmatpush3.bf16.msra.mxu1 %v477_v9 }
 0x616   :  { %1815 = vmatprep.subr.bf16.mxu1 %v2596_v1 }
 0x619   :  { %1816 = vmatpush3.bf16.msra.mxu1 %v478_v10 }
 0x61a   :  { %1817 = vmatprep.subr.bf16.mxu1 %v2596_v1 }
 0x61d   :  { %1818 = vmatpush3.bf16.msra.mxu1 %v479_v11 }
 0x620   :  { %1820 = vmatmul.mubr.msk.bf16.vlgmr.msra.gmra.mrb[8].mxu1 %vm122_vm1, %v475_v12 }
 0x6f3   :  { %v522_v14 = vpop.f32.mrb[8].mxu1 }
 0x6f4   :  { %v523_v15 = vadd.f32 %v1607_v13, %v522_v14  ;;  %v1821_v16 = vpop.f32.mrb[9].mxu1 }
 0x6f5   :  { %v525_v17 = vpop.f32.mrb[10].mxu1 }
 0x6f6   :  { %v528_v18 = vmul.f32 0.1, %v523_v15  ;;  %v1822_v19 = vpop.f32.mrb[11].mxu1 }
 0x6f8   :  { %v529_v20 = vmax.f32 %v523_v15, %v528_v18 }
 0x6f9   :  { %2559 = dma.done.wait [#allocation3 + $0x6], 512 }
 0x6fa   :  { %2560 = vsyncadd [#allocation3 + $0x6], 4294966784  ;;  %1823 = vmatprep.subr.bf16.mxu0 %v2596_v1  ;;  %1831 = vmatprep.mubr.msk.bf16.mxu0 %vm2597_vm0, %v2596_v1  ;;  %s2603_s19 = smov [#allocation2 + $0x140]   ;;  %s2935_s24 = scalar_lea.hbm %s3249_s1, 5632 }
 0x6fb   :  { %s542_s21 = sshll.u32 %s2603_s19, 4  ;;  %p2297_p8 = scmp.ne.s32.totalorder %s2908_s15, %s2935_s24  ;;  %s543_s21 = int_to_ptr.vmem [resolvable:$true] %s542_s21 }
 0x6fc   :  { %p2299_p9 = scmp.lt.u32.totalorder %s2908_s15, %s3249_s1  ;;  %p2300_p4 = scmp.lt.u32.totalorder %s2678_s20, %s2935_s24 }
 0x6fd   :  { %p2302_p11 = scmp.lt.u32.totalorder %s2935_s24, %s2908_s15 }
 0x6fe   :  { %p2301_p10 = por %p2300_p4, %p2299_p9 }
 0x700   :  { %p2303_p12 = por %p2302_p11, %p2301_p10 }
 0x702   :  { %p2304_p13 = pnand %p2303_p12, %p2297_p8 }
 0x704   :  { %2307 = shalt.err (!%p2304_p13)  }
 0x705   :  { %s2308_s28 = scalar_lea.vmem %s543_s21, 512  ;;  %p2313_p1 = scmp.lt.s32.totalorder %s543_s21, %s2669_s14 }
 0x706   :  { %p2309_p0 = scmp.ne.s32.totalorder %s543_s21, %s2308_s28  ;;  %p2314_p2 = scmp.lt.s32.totalorder %s2694_s26, %s2308_s28 }
 0x708   :  { %p2315_p3 = por %p2314_p2, %p2313_p1 }
 0x70a   :  { %p2316_p5 = pnand %p2315_p3, %p2309_p0 }
 0x70c   :  { %2319 = shalt.err (!%p2316_p5)  }
 0x70d   :  { %545 = dma.hbm_to_vmem [thread:$0]  %s2908_s15, 512, %s543_s21, [#allocation3 + $0xa]  ;;  %v546_v25 = vpack.c.bf16 %v529_v20, %v529_v20  ;;  %v1609_v26 = vld [vmem:[#allocation7 + $0x6] ss:$0 sm:$0xff]  ;;  %vm605_vm4 = vcmp.eq.s32.totalorder %v2837_v34, 65 }
 0x70e   :  { %v547_v21 = vld [vmem:[#allocation2 + $0xc0] sm:$0xff]  ;;  %v548_v22 = vld [vmem:[#allocation2 + $0xc8] sm:$0xff]  ;;  %v549_v23 = vld [vmem:[#allocation2 + $0xd0] sm:$0xff] }
 0x70f   :  { %1824 = vmatpush3.bf16.msra.mxu0 %v547_v21  ;;  %v550_v24 = vld [vmem:[#allocation2 + $0xd8] sm:$0xff] }
 0x710   :  { %1825 = vmatprep.subr.bf16.mxu0 %v2596_v1 }
 0x713   :  { %1826 = vmatpush3.bf16.msra.mxu0 %v548_v22 }
 0x714   :  { %1827 = vmatprep.subr.bf16.mxu0 %v2596_v1 }
 0x717   :  { %1828 = vmatpush3.bf16.msra.mxu0 %v549_v23 }
 0x718   :  { %1829 = vmatprep.subr.bf16.mxu0 %v2596_v1 }
 0x71b   :  { %1830 = vmatpush3.bf16.msra.mxu0 %v550_v24 }
 0x71e   :  { %1832 = vmatmul.mubr.msk.bf16.vlgmr.msra.gmra.mrb[12].mxu0 %vm122_vm1, %v546_v25 }
 0x7f1   :  { %v593_v27 = vpop.f32.mrb[12].mxu0 }
 0x7f2   :  { %v594_v28 = vadd.f32 %v1609_v26, %v593_v27  ;;  %v1833_v29 = vpop.f32.mrb[13].mxu0 }
 0x7f3   :  { %v596_v30 = vpop.f32.mrb[14].mxu0 }
 0x7f4   :  { %v599_v31 = vmul.f32 0.1, %v594_v28  ;;  %v1834_v32 = vpop.f32.mrb[15].mxu0 }
 0x7f6   :  { %v600_v33 = vmax.f32 %v594_v28, %v599_v31 }
 0x7f8   :  { %v2955_v35 = vadd.f32 %v600_v33, %v2895_v4  ;;  %v602_v36 = vsel %vm310_vm2, %v600_v33, -inf }
 0x7f9   :  { %603 = vmax.xlane.f32.xlu0 %v602_v36 }
 0x886   :  { %v604_v37 = vpop.xlane.xlu0 %603 }
 0x887   :  { %v2961_v38 = vsel %vm605_vm4, %v604_v37, %v2900_v7 }
 0x888   :  { %2561 = dma.done.wait [#allocation3 + $0x7], 512 }
 0x889   :  { %2562 = vsyncadd [#allocation3 + $0x7], 4294966784  ;;  %1835 = vmatprep.subr.bf16.mxu1 %v2596_v1  ;;  %1843 = vmatprep.mubr.msk.bf16.mxu1 %vm2597_vm0, %v2596_v1  ;;  %s2604_s29 = smov [#allocation2 + $0x160]   ;;  %s2969_s6 = scalar_lea.hbm %s3249_s1, 6144 }
 0x88a   :  { %s619_s30 = sshll.u32 %s2604_s29, 4  ;;  %p2322_p6 = scmp.ne.s32.totalorder %s2935_s24, %s2969_s6  ;;  %s620_s30 = int_to_ptr.vmem [resolvable:$true] %s619_s30 }
 0x88b   :  { %p2324_p7 = scmp.lt.u32.totalorder %s2935_s24, %s3249_s1  ;;  %p2325_p8 = scmp.lt.u32.totalorder %s2678_s20, %s2969_s6 }
 0x88c   :  { %p2327_p4 = scmp.lt.u32.totalorder %s2969_s6, %s2935_s24 }
 0x88d   :  { %p2326_p9 = por %p2325_p8, %p2324_p7 }
 0x88f   :  { %p2328_p10 = por %p2327_p4, %p2326_p9 }
 0x891   :  { %p2329_p11 = pnand %p2328_p10, %p2322_p6 }
 0x893   :  { %2332 = shalt.err (!%p2329_p11)  }
 0x894   :  { %s2333_s8 = scalar_lea.vmem %s620_s30, 512  ;;  %p2338_p13 = scmp.lt.s32.totalorder %s620_s30, %s2669_s14 }
 0x895   :  { %p2334_p12 = scmp.ne.s32.totalorder %s620_s30, %s2333_s8  ;;  %p2339_p0 = scmp.lt.s32.totalorder %s2694_s26, %s2333_s8 }
 0x897   :  { %p2340_p1 = por %p2339_p0, %p2338_p13 }
 0x899   :  { %p2341_p2 = pnand %p2340_p1, %p2334_p12 }
 0x89b   :  { %2344 = shalt.err (!%p2341_p2)  }
 0x89c   :  { %622 = dma.hbm_to_vmem [thread:$0]  %s2935_s24, 512, %s620_s30, [#allocation3 + $0xb]  ;;  %v623_v43 = vpack.c.bf16 %v2955_v35, %v2955_v35  ;;  %v1611_v44 = vld [vmem:[#allocation7 + $0x7] ss:$0 sm:$0xff] }
 0x89d   :  { %v624_v39 = vld [vmem:[#allocation2 + $0xe0] sm:$0xff]  ;;  %v625_v40 = vld [vmem:[#allocation2 + $0xe8] sm:$0xff]  ;;  %v626_v41 = vld [vmem:[#allocation2 + $0xf0] sm:$0xff] }
 0x89e   :  { %1836 = vmatpush3.bf16.msra.mxu1 %v624_v39  ;;  %v627_v42 = vld [vmem:[#allocation2 + $0xf8] sm:$0xff] }
 0x89f   :  { %1837 = vmatprep.subr.bf16.mxu1 %v2596_v1 }
 0x8a2   :  { %1838 = vmatpush3.bf16.msra.mxu1 %v625_v40 }
 0x8a3   :  { %1839 = vmatprep.subr.bf16.mxu1 %v2596_v1 }
 0x8a6   :  { %1840 = vmatpush3.bf16.msra.mxu1 %v626_v41 }
 0x8a7   :  { %1841 = vmatprep.subr.bf16.mxu1 %v2596_v1 }
 0x8aa   :  { %1842 = vmatpush3.bf16.msra.mxu1 %v627_v42 }
 0x8ad   :  { %1844 = vmatmul.mubr.msk.bf16.vlgmr.msra.gmra.mrb[12].mxu1 %vm122_vm1, %v623_v43 }
 0x980   :  { %v670_v45 = vpop.f32.mrb[12].mxu1 }
 0x981   :  { %v671_v46 = vadd.f32 %v1611_v44, %v670_v45  ;;  %v1845_v47 = vpop.f32.mrb[13].mxu1 }
 0x982   :  { %v673_v48 = vpop.f32.mrb[14].mxu1 }
 0x983   :  { %v676_v49 = vmul.f32 0.1, %v671_v46  ;;  %v1846_v50 = vpop.f32.mrb[15].mxu1 }
 0x985   :  { %v677_v51 = vmax.f32 %v671_v46, %v676_v49 }
 0x986   :  { %2563 = dma.done.wait [#allocation3 + $0x8], 512 }
 0x987   :  { %2564 = vsyncadd [#allocation3 + $0x8], 4294966784  ;;  %1847 = vmatprep.subr.bf16.mxu0 %v2596_v1  ;;  %1855 = vmatprep.mubr.msk.bf16.mxu0 %vm2597_vm0, %v2596_v1  ;;  %s2605_s9 = smov [#allocation2 + $0x180]   ;;  %s2996_s16 = scalar_lea.hbm %s3249_s1, 6656 }
 0x988   :  { %s690_s10 = sshll.u32 %s2605_s9, 4  ;;  %p2347_p3 = scmp.ne.s32.totalorder %s2969_s6, %s2996_s16  ;;  %s691_s10 = int_to_ptr.vmem [resolvable:$true] %s690_s10 }
 0x989   :  { %p2349_p5 = scmp.lt.u32.totalorder %s2969_s6, %s3249_s1  ;;  %p2350_p6 = scmp.lt.u32.totalorder %s2678_s20, %s2996_s16 }
 0x98a   :  { %p2352_p8 = scmp.lt.u32.totalorder %s2996_s16, %s2969_s6 }
 0x98b   :  { %p2351_p7 = por %p2350_p6, %p2349_p5 }
 0x98d   :  { %p2353_p9 = por %p2352_p8, %p2351_p7 }
 0x98f   :  { %p2354_p4 = pnand %p2353_p9, %p2347_p3 }
 0x991   :  { %2357 = shalt.err (!%p2354_p4)  }
 0x992   :  { %s2358_s12 = scalar_lea.vmem %s691_s10, 512  ;;  %p2363_p11 = scmp.lt.s32.totalorder %s691_s10, %s2669_s14 }
 0x993   :  { %p2359_p10 = scmp.ne.s32.totalorder %s691_s10, %s2358_s12  ;;  %p2364_p12 = scmp.lt.s32.totalorder %s2694_s26, %s2358_s12 }
 0x995   :  { %p2365_p13 = por %p2364_p12, %p2363_p11 }
 0x997   :  { %p2366_p0 = pnand %p2365_p13, %p2359_p10 }
 0x999   :  { %2369 = shalt.err (!%p2366_p0)  }
 0x99a   :  { %693 = dma.hbm_to_vmem [thread:$0]  %s2969_s6, 512, %s691_s10, [#allocation3 + $0xc]  ;;  %v694_v56 = vpack.c.bf16 %v677_v51, %v677_v51  ;;  %v1613_v57 = vld [vmem:[#allocation7 + $0x8] ss:$0 sm:$0xff]  ;;  %vm753_vm5 = vcmp.eq.s32.totalorder %v2837_v34, 66 }
 0x99b   :  { %v695_v52 = vld [vmem:[#allocation2 + $0x100] sm:$0xff]  ;;  %v696_v53 = vld [vmem:[#allocation2 + $0x108] sm:$0xff]  ;;  %v697_v54 = vld [vmem:[#allocation2 + $0x110] sm:$0xff] }
 0x99c   :  { %1848 = vmatpush3.bf16.msra.mxu0 %v695_v52  ;;  %v698_v55 = vld [vmem:[#allocation2 + $0x118] sm:$0xff] }
 0x99d   :  { %1849 = vmatprep.subr.bf16.mxu0 %v2596_v1 }
 0x9a0   :  { %1850 = vmatpush3.bf16.msra.mxu0 %v696_v53 }
 0x9a1   :  { %1851 = vmatprep.subr.bf16.mxu0 %v2596_v1 }
 0x9a4   :  { %1852 = vmatpush3.bf16.msra.mxu0 %v697_v54 }
 0x9a5   :  { %1853 = vmatprep.subr.bf16.mxu0 %v2596_v1 }
 0x9a8   :  { %1854 = vmatpush3.bf16.msra.mxu0 %v698_v55 }
 0x9ab   :  { %1856 = vmatmul.mubr.msk.bf16.vlgmr.msra.gmra.mrb[16].mxu0 %vm122_vm1, %v694_v56 }
 0xa7e   :  { %v741_v58 = vpop.f32.mrb[16].mxu0 }
 0xa7f   :  { %v742_v59 = vadd.f32 %v1613_v57, %v741_v58  ;;  %v1857_v60 = vpop.f32.mrb[17].mxu0 }
 0xa80   :  { %v744_v61 = vpop.f32.mrb[18].mxu0 }
 0xa81   :  { %v747_v62 = vmul.f32 0.1, %v742_v59  ;;  %v1858_v63 = vpop.f32.mrb[19].mxu0 }
 0xa83   :  { %v748_v0 = vmax.f32 %v742_v59, %v747_v62 }
 0xa85   :  { %v3016_v2 = vadd.f32 %v748_v0, %v2955_v35  ;;  %v750_v3 = vsel %vm310_vm2, %v748_v0, -inf }
 0xa86   :  { %751 = vmax.xlane.f32.xlu0 %v750_v3 }
 0xb13   :  { %v752_v4 = vpop.xlane.xlu0 %751 }
 0xb14   :  { %v3022_v5 = vsel %vm753_vm5, %v752_v4, %v2961_v38 }
 0xb15   :  { %2565 = dma.done.wait [#allocation3 + $0x9], 512 }
 0xb16   :  { %2566 = vsyncadd [#allocation3 + $0x9], 4294966784  ;;  %1859 = vmatprep.subr.bf16.mxu1 %v2596_v1  ;;  %1867 = vmatprep.mubr.msk.bf16.mxu1 %vm2597_vm0, %v2596_v1  ;;  %s2606_s17 = smov [#allocation2 + $0x1a0]   ;;  %s3030_s22 = scalar_lea.hbm %s3249_s1, 7168 }
 0xb17   :  { %s767_s18 = sshll.u32 %s2606_s17, 4  ;;  %p2372_p1 = scmp.ne.s32.totalorder %s2996_s16, %s3030_s22  ;;  %s768_s18 = int_to_ptr.vmem [resolvable:$true] %s767_s18 }
 0xb18   :  { %p2374_p2 = scmp.lt.u32.totalorder %s2996_s16, %s3249_s1  ;;  %p2375_p3 = scmp.lt.u32.totalorder %s2678_s20, %s3030_s22 }
 0xb19   :  { %p2377_p6 = scmp.lt.u32.totalorder %s3030_s22, %s2996_s16 }
 0xb1a   :  { %p2376_p5 = por %p2375_p3, %p2374_p2 }
 0xb1c   :  { %p2378_p7 = por %p2377_p6, %p2376_p5 }
 0xb1e   :  { %p2379_p8 = pnand %p2378_p7, %p2372_p1 }
 0xb20   :  { %2382 = shalt.err (!%p2379_p8)  }
 0xb21   :  { %s2383_s25 = scalar_lea.vmem %s768_s18, 512  ;;  %p2388_p4 = scmp.lt.s32.totalorder %s768_s18, %s2669_s14 }
 0xb22   :  { %p2384_p9 = scmp.ne.s32.totalorder %s768_s18, %s2383_s25  ;;  %p2389_p10 = scmp.lt.s32.totalorder %s2694_s26, %s2383_s25 }
 0xb24   :  { %p2390_p11 = por %p2389_p10, %p2388_p4 }
 0xb26   :  { %p2391_p12 = pnand %p2390_p11, %p2384_p9 }
 0xb28   :  { %2394 = shalt.err (!%p2391_p12)  }
 0xb29   :  { %770 = dma.hbm_to_vmem [thread:$0]  %s2996_s16, 512, %s768_s18, [#allocation3 + $0xd]  ;;  %v771_v10 = vpack.c.bf16 %v3016_v2, %v3016_v2  ;;  %v1615_v11 = vld [vmem:[#allocation7 + $0x9] ss:$0 sm:$0xff] }
 0xb2a   :  { %v772_v6 = vld [vmem:[#allocation2 + $0x120] sm:$0xff]  ;;  %v773_v7 = vld [vmem:[#allocation2 + $0x128] sm:$0xff]  ;;  %v774_v8 = vld [vmem:[#allocation2 + $0x130] sm:$0xff] }
 0xb2b   :  { %1860 = vmatpush3.bf16.msra.mxu1 %v772_v6  ;;  %v775_v9 = vld [vmem:[#allocation2 + $0x138] sm:$0xff] }
 0xb2c   :  { %1861 = vmatprep.subr.bf16.mxu1 %v2596_v1 }
 0xb2f   :  { %1862 = vmatpush3.bf16.msra.mxu1 %v773_v7 }
 0xb30   :  { %1863 = vmatprep.subr.bf16.mxu1 %v2596_v1 }
 0xb33   :  { %1864 = vmatpush3.bf16.msra.mxu1 %v774_v8 }
 0xb34   :  { %1865 = vmatprep.subr.bf16.mxu1 %v2596_v1 }
 0xb37   :  { %1866 = vmatpush3.bf16.msra.mxu1 %v775_v9 }
 0xb3a   :  { %1868 = vmatmul.mubr.msk.bf16.vlgmr.msra.gmra.mrb[16].mxu1 %vm122_vm1, %v771_v10 }
 0xc0d   :  { %v818_v12 = vpop.f32.mrb[16].mxu1 }
 0xc0e   :  { %v819_v13 = vadd.f32 %v1615_v11, %v818_v12  ;;  %v1869_v14 = vpop.f32.mrb[17].mxu1 }
 0xc0f   :  { %v821_v15 = vpop.f32.mrb[18].mxu1 }
 0xc10   :  { %v824_v16 = vmul.f32 0.1, %v819_v13  ;;  %v1870_v17 = vpop.f32.mrb[19].mxu1 }
 0xc12   :  { %v825_v18 = vmax.f32 %v819_v13, %v824_v16 }
 0xc13   :  { %2567 = dma.done.wait [#allocation3 + $0xa], 512 }
 0xc14   :  { %2568 = vsyncadd [#allocation3 + $0xa], 4294966784  ;;  %1871 = vmatprep.subr.bf16.mxu0 %v2596_v1  ;;  %1879 = vmatprep.mubr.msk.bf16.mxu0 %vm2597_vm0, %v2596_v1  ;;  %s2607_s27 = smov [#allocation2 + $0x1c0]   ;;  %s3057_s4 = scalar_lea.hbm %s3249_s1, 7680 }
 0xc15   :  { %s838_s28 = sshll.u32 %s2607_s27, 4  ;;  %p2397_p13 = scmp.ne.s32.totalorder %s3030_s22, %s3057_s4  ;;  %s839_s28 = int_to_ptr.vmem [resolvable:$true] %s838_s28 }
 0xc16   :  { %p2399_p0 = scmp.lt.u32.totalorder %s3030_s22, %s3249_s1  ;;  %p2400_p1 = scmp.lt.u32.totalorder %s2678_s20, %s3057_s4 }
 0xc17   :  { %p2402_p3 = scmp.lt.u32.totalorder %s3057_s4, %s3030_s22 }
 0xc18   :  { %p2401_p2 = por %p2400_p1, %p2399_p0 }
 0xc1a   :  { %p2403_p5 = por %p2402_p3, %p2401_p2 }
 0xc1c   :  { %p2404_p6 = pnand %p2403_p5, %p2397_p13 }
 0xc1e   :  { %2407 = shalt.err (!%p2404_p6)  }
 0xc1f   :  { %s2408_s0 = scalar_lea.vmem %s839_s28, 512  ;;  %p2413_p8 = scmp.lt.s32.totalorder %s839_s28, %s2669_s14 }
 0xc20   :  { %p2409_p7 = scmp.ne.s32.totalorder %s839_s28, %s2408_s0  ;;  %p2414_p9 = scmp.lt.s32.totalorder %s2694_s26, %s2408_s0 }
 0xc22   :  { %p2415_p4 = por %p2414_p9, %p2413_p8 }
 0xc24   :  { %p2416_p10 = pnand %p2415_p4, %p2409_p7 }
 0xc26   :  { %2419 = shalt.err (!%p2416_p10)  }
 0xc27   :  { %841 = dma.hbm_to_vmem [thread:$0]  %s3030_s22, 512, %s839_s28, [#allocation3 + $0xe]  ;;  %v842_v23 = vpack.c.bf16 %v825_v18, %v825_v18  ;;  %v1617_v24 = vld [vmem:[#allocation7 + $0xa] ss:$0 sm:$0xff]  ;;  %vm901_vm6 = vcmp.eq.s32.totalorder %v2837_v34, 67 }
 0xc28   :  { %v843_v19 = vld [vmem:[#allocation2 + $0x140] sm:$0xff]  ;;  %v844_v20 = vld [vmem:[#allocation2 + $0x148] sm:$0xff]  ;;  %v845_v21 = vld [vmem:[#allocation2 + $0x150] sm:$0xff] }
 0xc29   :  { %1872 = vmatpush3.bf16.msra.mxu0 %v843_v19  ;;  %v846_v22 = vld [vmem:[#allocation2 + $0x158] sm:$0xff] }
 0xc2a   :  { %1873 = vmatprep.subr.bf16.mxu0 %v2596_v1 }
 0xc2d   :  { %1874 = vmatpush3.bf16.msra.mxu0 %v844_v20 }
 0xc2e   :  { %1875 = vmatprep.subr.bf16.mxu0 %v2596_v1 }
 0xc31   :  { %1876 = vmatpush3.bf16.msra.mxu0 %v845_v21 }
 0xc32   :  { %1877 = vmatprep.subr.bf16.mxu0 %v2596_v1 }
 0xc35   :  { %1878 = vmatpush3.bf16.msra.mxu0 %v846_v22 }
 0xc38   :  { %1880 = vmatmul.mubr.msk.bf16.vlgmr.msra.gmra.mrb[20].mxu0 %vm122_vm1, %v842_v23 }
 0xd0b   :  { %v889_v25 = vpop.f32.mrb[20].mxu0 }
 0xd0c   :  { %v890_v26 = vadd.f32 %v1617_v24, %v889_v25  ;;  %v1881_v27 = vpop.f32.mrb[21].mxu0 }
 0xd0d   :  { %v892_v28 = vpop.f32.mrb[22].mxu0 }
 0xd0e   :  { %v895_v29 = vmul.f32 0.1, %v890_v26  ;;  %v1882_v30 = vpop.f32.mrb[23].mxu0 }
 0xd10   :  { %v896_v31 = vmax.f32 %v890_v26, %v895_v29 }
 0xd12   :  { %v3077_v32 = vadd.f32 %v896_v31, %v3016_v2  ;;  %v898_v33 = vsel %vm310_vm2, %v896_v31, -inf }
 0xd13   :  { %899 = vmax.xlane.f32.xlu0 %v898_v33 }
 0xda0   :  { %v900_v35 = vpop.xlane.xlu0 %899 }
 0xda1   :  { %v3083_v36 = vsel %vm901_vm6, %v900_v35, %v3022_v5 }
 0xda2   :  { %2569 = dma.done.wait [#allocation3 + $0xb], 512 }
 0xda3   :  { %2570 = vsyncadd [#allocation3 + $0xb], 4294966784  ;;  %1883 = vmatprep.subr.bf16.mxu1 %v2596_v1  ;;  %1891 = vmatprep.mubr.msk.bf16.mxu1 %vm2597_vm0, %v2596_v1  ;;  %s2608_s7 = smov [#allocation2 + $0x1e0]   ;;  %s3091_s11 = scalar_lea.hbm %s3249_s1, 8192 }
 0xda4   :  { %s915_s8 = sshll.u32 %s2608_s7, 4  ;;  %p2422_p11 = scmp.ne.s32.totalorder %s3057_s4, %s3091_s11  ;;  %s916_s8 = int_to_ptr.vmem [resolvable:$true] %s915_s8 }
 0xda5   :  { %p2424_p12 = scmp.lt.u32.totalorder %s3057_s4, %s3249_s1  ;;  %p2425_p13 = scmp.lt.u32.totalorder %s2678_s20, %s3091_s11 }
 0xda6   :  { %p2427_p1 = scmp.lt.u32.totalorder %s3091_s11, %s3057_s4 }
 0xda7   :  { %p2426_p0 = por %p2425_p13, %p2424_p12 }
 0xda9   :  { %p2428_p2 = por %p2427_p1, %p2426_p0 }
 0xdab   :  { %p2429_p3 = pnand %p2428_p2, %p2422_p11 }
 0xdad   :  { %2432 = shalt.err (!%p2429_p3)  }
 0xdae   :  { %s2433_s2 = scalar_lea.vmem %s916_s8, 512  ;;  %p2438_p6 = scmp.lt.s32.totalorder %s916_s8, %s2669_s14 }
 0xdaf   :  { %p2434_p5 = scmp.ne.s32.totalorder %s916_s8, %s2433_s2  ;;  %p2439_p7 = scmp.lt.s32.totalorder %s2694_s26, %s2433_s2 }
 0xdb1   :  { %p2440_p8 = por %p2439_p7, %p2438_p6 }
 0xdb3   :  { %p2441_p9 = pnand %p2440_p8, %p2434_p5 }
 0xdb5   :  { %2444 = shalt.err (!%p2441_p9)  }
 0xdb6   :  { %918 = dma.hbm_to_vmem [thread:$0]  %s3057_s4, 512, %s916_s8, [#allocation3 + $0xf]  ;;  %v919_v41 = vpack.c.bf16 %v3077_v32, %v3077_v32  ;;  %v1619_v42 = vld [vmem:[#allocation7 + $0xb] ss:$0 sm:$0xff] }
 0xdb7   :  { %v920_v37 = vld [vmem:[#allocation2 + $0x160] sm:$0xff]  ;;  %v921_v38 = vld [vmem:[#allocation2 + $0x168] sm:$0xff]  ;;  %v922_v39 = vld [vmem:[#allocation2 + $0x170] sm:$0xff] }
 0xdb8   :  { %1884 = vmatpush3.bf16.msra.mxu1 %v920_v37  ;;  %v923_v40 = vld [vmem:[#allocation2 + $0x178] sm:$0xff] }
 0xdb9   :  { %1885 = vmatprep.subr.bf16.mxu1 %v2596_v1 }
 0xdbc   :  { %1886 = vmatpush3.bf16.msra.mxu1 %v921_v38 }
 0xdbd   :  { %1887 = vmatprep.subr.bf16.mxu1 %v2596_v1 }
 0xdc0   :  { %1888 = vmatpush3.bf16.msra.mxu1 %v922_v39 }
 0xdc1   :  { %1889 = vmatprep.subr.bf16.mxu1 %v2596_v1 }
 0xdc4   :  { %1890 = vmatpush3.bf16.msra.mxu1 %v923_v40 }
 0xdc7   :  { %1892 = vmatmul.mubr.msk.bf16.vlgmr.msra.gmra.mrb[20].mxu1 %vm122_vm1, %v919_v41 }
 0xe9a   :  { %v966_v43 = vpop.f32.mrb[20].mxu1 }
 0xe9b   :  { %v967_v44 = vadd.f32 %v1619_v42, %v966_v43  ;;  %v1893_v45 = vpop.f32.mrb[21].mxu1 }
 0xe9c   :  { %v969_v46 = vpop.f32.mrb[22].mxu1 }
 0xe9d   :  { %v972_v47 = vmul.f32 0.1, %v967_v44  ;;  %v1894_v48 = vpop.f32.mrb[23].mxu1 }
 0xe9f   :  { %v973_v49 = vmax.f32 %v967_v44, %v972_v47 }
 0xea0   :  { %2571 = dma.done.wait [#allocation3 + $0xc], 512 }
 0xea1   :  { %2572 = vsyncadd [#allocation3 + $0xc], 4294966784  ;;  %1895 = vmatprep.subr.bf16.mxu0 %v2596_v1  ;;  %1903 = vmatprep.mubr.msk.bf16.mxu0 %vm2597_vm0, %v2596_v1  ;;  %s2609_s15 = smov [#allocation2 + $0x200]   ;;  %s3118_s19 = scalar_lea.hbm %s3249_s1, 8704 }
 0xea2   :  { %s986_s12 = sshll.u32 %s2609_s15, 4  ;;  %p2447_p4 = scmp.ne.s32.totalorder %s3091_s11, %s3118_s19  ;;  %s987_s12 = int_to_ptr.vmem [resolvable:$true] %s986_s12 }
 0xea3   :  { %p2449_p10 = scmp.lt.u32.totalorder %s3091_s11, %s3249_s1  ;;  %p2450_p11 = scmp.lt.u32.totalorder %s2678_s20, %s3118_s19 }
 0xea4   :  { %p2452_p13 = scmp.lt.u32.totalorder %s3118_s19, %s3091_s11 }
 0xea5   :  { %p2451_p12 = por %p2450_p11, %p2449_p10 }
 0xea7   :  { %p2453_p0 = por %p2452_p13, %p2451_p12 }
 0xea9   :  { %p2454_p1 = pnand %p2453_p0, %p2447_p4 }
 0xeab   :  { %2457 = shalt.err (!%p2454_p1)  }
 0xeac   :  { %s2458_s23 = scalar_lea.vmem %s987_s12, 512  ;;  %p2463_p3 = scmp.lt.s32.totalorder %s987_s12, %s2669_s14 }
 0xead   :  { %p2459_p2 = scmp.ne.s32.totalorder %s987_s12, %s2458_s23  ;;  %p2464_p5 = scmp.lt.s32.totalorder %s2694_s26, %s2458_s23 }
 0xeaf   :  { %p2465_p6 = por %p2464_p5, %p2463_p3 }
 0xeb1   :  { %p2466_p7 = pnand %p2465_p6, %p2459_p2 }
 0xeb3   :  { %2469 = shalt.err (!%p2466_p7)  }
 0xeb4   :  { %989 = dma.hbm_to_vmem [thread:$0]  %s3091_s11, 512, %s987_s12, [#allocation3 + $0x10]  ;;  %v990_v54 = vpack.c.bf16 %v973_v49, %v973_v49  ;;  %v1621_v55 = vld [vmem:[#allocation7 + $0xc] ss:$0 sm:$0xff]  ;;  %vm1049_vm7 = vcmp.eq.s32.totalorder %v2837_v34, 68 }
 0xeb5   :  { %v991_v50 = vld [vmem:[#allocation2 + $0x180] sm:$0xff]  ;;  %v992_v51 = vld [vmem:[#allocation2 + $0x188] sm:$0xff]  ;;  %v993_v52 = vld [vmem:[#allocation2 + $0x190] sm:$0xff] }
 0xeb6   :  { %1896 = vmatpush3.bf16.msra.mxu0 %v991_v50  ;;  %v994_v53 = vld [vmem:[#allocation2 + $0x198] sm:$0xff] }
 0xeb7   :  { %1897 = vmatprep.subr.bf16.mxu0 %v2596_v1 }
 0xeba   :  { %1898 = vmatpush3.bf16.msra.mxu0 %v992_v51 }
 0xebb   :  { %1899 = vmatprep.subr.bf16.mxu0 %v2596_v1 }
 0xebe   :  { %1900 = vmatpush3.bf16.msra.mxu0 %v993_v52 }
 0xebf   :  { %1901 = vmatprep.subr.bf16.mxu0 %v2596_v1 }
 0xec2   :  { %1902 = vmatpush3.bf16.msra.mxu0 %v994_v53 }
 0xec5   :  { %1904 = vmatmul.mubr.msk.bf16.vlgmr.msra.gmra.mrb[24].mxu0 %vm122_vm1, %v990_v54 }
 0xf98   :  { %v1037_v56 = vpop.f32.mrb[24].mxu0 }
 0xf99   :  { %v1038_v57 = vadd.f32 %v1621_v55, %v1037_v56  ;;  %v1905_v58 = vpop.f32.mrb[25].mxu0 }
 0xf9a   :  { %v1040_v59 = vpop.f32.mrb[26].mxu0 }
 0xf9b   :  { %v1043_v60 = vmul.f32 0.1, %v1038_v57  ;;  %v1906_v61 = vpop.f32.mrb[27].mxu0 }
 0xf9d   :  { %v1044_v62 = vmax.f32 %v1038_v57, %v1043_v60 }
 0xf9f   :  { %v3138_v63 = vadd.f32 %v1044_v62, %v3077_v32  ;;  %v1046_v0 = vsel %vm310_vm2, %v1044_v62, -inf }
 0xfa0   :  { %1047 = vmax.xlane.f32.xlu0 %v1046_v0 }
0x102d   :  { %v1048_v2 = vpop.xlane.xlu0 %1047 }
0x102e   :  { %v3144_v3 = vsel %vm1049_vm7, %v1048_v2, %v3083_v36 }
0x102f   :  { %2573 = dma.done.wait [#allocation3 + $0xd], 512 }
0x1030   :  { %2574 = vsyncadd [#allocation3 + $0xd], 4294966784  ;;  %1907 = vmatprep.subr.bf16.mxu1 %v2596_v1  ;;  %1915 = vmatprep.mubr.msk.bf16.mxu1 %vm2597_vm0, %v2596_v1  ;;  %s2610_s24 = smov [#allocation2 + $0x220]   ;;  %s3152_s29 = scalar_lea.hbm %s3249_s1, 9216 }
0x1031   :  { %s1063_s25 = sshll.u32 %s2610_s24, 4  ;;  %p2472_p8 = scmp.ne.s32.totalorder %s3118_s19, %s3152_s29  ;;  %s1064_s25 = int_to_ptr.vmem [resolvable:$true] %s1063_s25 }
0x1032   :  { %p2474_p9 = scmp.lt.u32.totalorder %s3118_s19, %s3249_s1  ;;  %p2475_p4 = scmp.lt.u32.totalorder %s2678_s20, %s3152_s29 }
0x1033   :  { %p2477_p11 = scmp.lt.u32.totalorder %s3152_s29, %s3118_s19 }
0x1034   :  { %p2476_p10 = por %p2475_p4, %p2474_p9 }
0x1036   :  { %p2478_p12 = por %p2477_p11, %p2476_p10 }
0x1038   :  { %p2479_p13 = pnand %p2478_p12, %p2472_p8 }
0x103a   :  { %2482 = shalt.err (!%p2479_p13)  }
0x103b   :  { %s2483_s5 = scalar_lea.vmem %s1064_s25, 512  ;;  %p2488_p1 = scmp.lt.s32.totalorder %s1064_s25, %s2669_s14 }
0x103c   :  { %p2484_p0 = scmp.ne.s32.totalorder %s1064_s25, %s2483_s5  ;;  %p2489_p2 = scmp.lt.s32.totalorder %s2694_s26, %s2483_s5 }
0x103e   :  { %p2490_p3 = por %p2489_p2, %p2488_p1 }
0x1040   :  { %p2491_p5 = pnand %p2490_p3, %p2484_p0 }
0x1042   :  { %2494 = shalt.err (!%p2491_p5)  }
0x1043   :  { %1066 = dma.hbm_to_vmem [thread:$0]  %s3118_s19, 512, %s1064_s25, [#allocation3 + $0x11]  ;;  %v1067_v8 = vpack.c.bf16 %v3138_v63, %v3138_v63  ;;  %v1623_v9 = vld [vmem:[#allocation7 + $0xd] ss:$0 sm:$0xff] }
0x1044   :  { %v1068_v4 = vld [vmem:[#allocation2 + $0x1a0] sm:$0xff]  ;;  %v1069_v5 = vld [vmem:[#allocation2 + $0x1a8] sm:$0xff]  ;;  %v1070_v6 = vld [vmem:[#allocation2 + $0x1b0] sm:$0xff] }
0x1045   :  { %1908 = vmatpush3.bf16.msra.mxu1 %v1068_v4  ;;  %v1071_v7 = vld [vmem:[#allocation2 + $0x1b8] sm:$0xff] }
0x1046   :  { %1909 = vmatprep.subr.bf16.mxu1 %v2596_v1 }
0x1049   :  { %1910 = vmatpush3.bf16.msra.mxu1 %v1069_v5 }
0x104a   :  { %1911 = vmatprep.subr.bf16.mxu1 %v2596_v1 }
0x104d   :  { %1912 = vmatpush3.bf16.msra.mxu1 %v1070_v6 }
0x104e   :  { %1913 = vmatprep.subr.bf16.mxu1 %v2596_v1 }
0x1051   :  { %1914 = vmatpush3.bf16.msra.mxu1 %v1071_v7 }
0x1054   :  { %1916 = vmatmul.mubr.msk.bf16.vlgmr.msra.gmra.mrb[24].mxu1 %vm122_vm1, %v1067_v8 }
0x1127   :  { %v1114_v10 = vpop.f32.mrb[24].mxu1 }
0x1128   :  { %v1115_v11 = vadd.f32 %v1623_v9, %v1114_v10  ;;  %v1917_v12 = vpop.f32.mrb[25].mxu1 }
0x1129   :  { %v1117_v13 = vpop.f32.mrb[26].mxu1 }
0x112a   :  { %v1120_v14 = vmul.f32 0.1, %v1115_v11  ;;  %v1918_v15 = vpop.f32.mrb[27].mxu1 }
0x112c   :  { %v1121_v16 = vmax.f32 %v1115_v11, %v1120_v14 }
0x112d   :  { %2575 = dma.done.wait [#allocation3 + $0xe], 512 }
0x112e   :  { %2576 = vsyncadd [#allocation3 + $0xe], 4294966784  ;;  %1919 = vmatprep.subr.bf16.mxu0 %v2596_v1  ;;  %1927 = vmatprep.mubr.msk.bf16.mxu0 %vm2597_vm0, %v2596_v1  ;;  %s2611_s6 = smov [#allocation2 + $0x240]   ;;  %p2497_p6 = scmp.ne.s32.totalorder %s3152_s29, %s2678_s20 }
0x112f   :  { %s1134_s0 = sshll.u32 %s2611_s6, 4  ;;  %p2499_p7 = scmp.lt.u32.totalorder %s3152_s29, %s3249_s1  ;;  %s1135_s0 = int_to_ptr.vmem [resolvable:$true] %s1134_s0 }
0x1130   :  { %p2500_p8 = scmp.lt.u32.totalorder %s2678_s20, %s2678_s20 }
0x1132   :  { %p2501_p9 = por %p2500_p8, %p2499_p7 }
0x1134   :  { %p2503_p10 = por %p2501_p9, %p2475_p4 }
0x1136   :  { %p2504_p11 = pnand %p2503_p10, %p2497_p6 }
0x1138   :  { %2507 = shalt.err (!%p2504_p11)  }
0x1139   :  { %s2508_s9 = scalar_lea.vmem %s1135_s0, 512  ;;  %p2513_p13 = scmp.lt.s32.totalorder %s1135_s0, %s2669_s14 }
0x113a   :  { %p2509_p12 = scmp.ne.s32.totalorder %s1135_s0, %s2508_s9  ;;  %p2514_p0 = scmp.lt.s32.totalorder %s2694_s26, %s2508_s9 }
0x113c   :  { %p2515_p1 = por %p2514_p0, %p2513_p13 }
0x113e   :  { %p2516_p2 = pnand %p2515_p1, %p2509_p12 }
0x1140   :  { %2519 = shalt.err (!%p2516_p2)  }
0x1141   :  { %1137 = dma.hbm_to_vmem [thread:$0]  %s3152_s29, 512, %s1135_s0, [#allocation3 + $0x12]  ;;  %v1138_v21 = vpack.c.bf16 %v1121_v16, %v1121_v16  ;;  %v1625_v22 = vld [vmem:[#allocation7 + $0xe] ss:$0 sm:$0xff]  ;;  %vm1197_vm8 = vcmp.eq.s32.totalorder %v2837_v34, 69 }
0x1142   :  { %v1139_v17 = vld [vmem:[#allocation2 + $0x1c0] sm:$0xff]  ;;  %v1140_v18 = vld [vmem:[#allocation2 + $0x1c8] sm:$0xff]  ;;  %v1141_v19 = vld [vmem:[#allocation2 + $0x1d0] sm:$0xff] }
0x1143   :  { %1920 = vmatpush3.bf16.msra.mxu0 %v1139_v17  ;;  %v1142_v20 = vld [vmem:[#allocation2 + $0x1d8] sm:$0xff] }
0x1144   :  { %1921 = vmatprep.subr.bf16.mxu0 %v2596_v1 }
0x1147   :  { %1922 = vmatpush3.bf16.msra.mxu0 %v1140_v18 }
0x1148   :  { %1923 = vmatprep.subr.bf16.mxu0 %v2596_v1 }
0x114b   :  { %1924 = vmatpush3.bf16.msra.mxu0 %v1141_v19 }
0x114c   :  { %1925 = vmatprep.subr.bf16.mxu0 %v2596_v1 }
0x114f   :  { %1926 = vmatpush3.bf16.msra.mxu0 %v1142_v20 }
0x1152   :  { %1928 = vmatmul.mubr.msk.bf16.vlgmr.msra.gmra.mrb[28].mxu0 %vm122_vm1, %v1138_v21 }
0x1225   :  { %v1185_v23 = vpop.f32.mrb[28].mxu0 }
0x1226   :  { %v1186_v24 = vadd.f32 %v1625_v22, %v1185_v23  ;;  %v1929_v25 = vpop.f32.mrb[29].mxu0 }
0x1227   :  { %v1188_v26 = vpop.f32.mrb[30].mxu0 }
0x1228   :  { %v1191_v27 = vmul.f32 0.1, %v1186_v24  ;;  %v1930_v28 = vpop.f32.mrb[31].mxu0 }
0x122a   :  { %v1192_v29 = vmax.f32 %v1186_v24, %v1191_v27 }
0x122c   :  { %v1193_v30 = vadd.f32 %v1192_v29, %v3138_v63  ;;  %v1194_v31 = vsel %vm310_vm2, %v1192_v29, -inf }
0x122d   :  { %1195 = vmax.xlane.f32.xlu0 %v1194_v31 }
0x12ba   :  { %v1196_v32 = vpop.xlane.xlu0 %1195 }
0x12bb   :  { %v3202_v33 = vsel %vm1197_vm8, %v1196_v32, %v3144_v3 }
0x12bc   :  { %2577 = dma.done.wait [#allocation3 + $0xf], 512 }
0x12bd   :  { %2578 = vsyncadd [#allocation3 + $0xf], 4294966784  ;;  %1931 = vmatprep.subr.bf16.mxu1 %v2596_v1  ;;  %1939 = vmatprep.mubr.msk.bf16.mxu1 %vm2597_vm0, %v2596_v1  ;;  %v1202_v35 = vld [vmem:[#allocation2 + $0x1e0] sm:$0xff]  ;;  %v1203_v36 = vld [vmem:[#allocation2 + $0x1e8] sm:$0xff]  ;;  %v1201_v39 = vpack.c.bf16 %v1193_v30, %v1193_v30 }
0x12be   :  { %1932 = vmatpush3.bf16.msra.mxu1 %v1202_v35  ;;  %v1204_v37 = vld [vmem:[#allocation2 + $0x1f0] sm:$0xff]  ;;  %v1205_v38 = vld [vmem:[#allocation2 + $0x1f8] sm:$0xff] }
0x12bf   :  { %1933 = vmatprep.subr.bf16.mxu1 %v2596_v1  ;;  %v1627_v40 = vld [vmem:[#allocation7 + $0xf] ss:$0 sm:$0xff] }
0x12c2   :  { %1934 = vmatpush3.bf16.msra.mxu1 %v1203_v36 }
0x12c3   :  { %1935 = vmatprep.subr.bf16.mxu1 %v2596_v1 }
0x12c6   :  { %1936 = vmatpush3.bf16.msra.mxu1 %v1204_v37 }
0x12c7   :  { %1937 = vmatprep.subr.bf16.mxu1 %v2596_v1 }
0x12ca   :  { %1938 = vmatpush3.bf16.msra.mxu1 %v1205_v38 }
0x12cd   :  { %1940 = vmatmul.mubr.msk.bf16.vlgmr.msra.gmra.mrb[28].mxu1 %vm122_vm1, %v1201_v39 }
0x13a0   :  { %v1248_v41 = vpop.f32.mrb[28].mxu1 }
0x13a1   :  { %v1249_v42 = vadd.f32 %v1627_v40, %v1248_v41  ;;  %v1941_v43 = vpop.f32.mrb[29].mxu1 }
0x13a2   :  { %v1251_v44 = vpop.f32.mrb[30].mxu1 }
0x13a3   :  { %v1254_v45 = vmul.f32 0.1, %v1249_v42  ;;  %v1942_v46 = vpop.f32.mrb[31].mxu1 }
0x13a5   :  { %v1255_v47 = vmax.f32 %v1249_v42, %v1254_v45 }
0x13a6   :  { %2579 = dma.done.wait [#allocation3 + $0x10], 512 }
0x13a7   :  { %2580 = vsyncadd [#allocation3 + $0x10], 4294966784  ;;  %1943 = vmatprep.subr.bf16.mxu0 %v2596_v1  ;;  %1951 = vmatprep.mubr.msk.bf16.mxu0 %vm2597_vm0, %v2596_v1  ;;  %v1259_v48 = vld [vmem:[#allocation2 + $0x200] sm:$0xff]  ;;  %v1260_v49 = vld [vmem:[#allocation2 + $0x208] sm:$0xff]  ;;  %v1258_v52 = vpack.c.bf16 %v1255_v47, %v1255_v47  ;;  %vm1317_vm9 = vcmp.eq.s32.totalorder %v2837_v34, 70 }
0x13a8   :  { %1944 = vmatpush3.bf16.msra.mxu0 %v1259_v48  ;;  %v1261_v50 = vld [vmem:[#allocation2 + $0x210] sm:$0xff]  ;;  %v1262_v51 = vld [vmem:[#allocation2 + $0x218] sm:$0xff] }
0x13a9   :  { %1945 = vmatprep.subr.bf16.mxu0 %v2596_v1  ;;  %v1629_v53 = vld [vmem:[#allocation7 + $0x10] ss:$0 sm:$0xff]  ;;  %v1631_v61 = vld [vmem:[#allocation7 + $0x13] ss:$0 sm:$0xff]  ;;  %v1632_v0 = vld [vmem:[#allocation7 + $0x14] ss:$0 sm:$0xff] }
0x13ac   :  { %1946 = vmatpush3.bf16.msra.mxu0 %v1260_v49 }
0x13ad   :  { %1947 = vmatprep.subr.bf16.mxu0 %v2596_v1 }
0x13b0   :  { %1948 = vmatpush3.bf16.msra.mxu0 %v1261_v50 }
0x13b1   :  { %1949 = vmatprep.subr.bf16.mxu0 %v2596_v1 }
0x13b4   :  { %1950 = vmatpush3.bf16.msra.mxu0 %v1262_v51 }
0x13b7   :  { %1952 = vmatmul.mubr.msk.bf16.vlgmr.msra.gmra.mrb[32].mxu0 %vm122_vm1, %v1258_v52 }
0x148a   :  { %v1305_v54 = vpop.f32.mrb[32].mxu0 }
0x148b   :  { %v1306_v55 = vadd.f32 %v1629_v53, %v1305_v54  ;;  %v1953_v56 = vpop.f32.mrb[33].mxu0 }
0x148c   :  { %v1308_v57 = vpop.f32.mrb[34].mxu0 }
0x148d   :  { %v1311_v58 = vmul.f32 0.1, %v1306_v55  ;;  %v1954_v59 = vpop.f32.mrb[35].mxu0 }
0x148f   :  { %v1312_v60 = vmax.f32 %v1306_v55, %v1311_v58 }
0x1491   :  { %v1313_v62 = vadd.f32 %v1312_v60, %v1193_v30  ;;  %v1314_v63 = vsel %vm310_vm2, %v1312_v60, -inf }
0x1492   :  { %1315 = vmax.xlane.f32.xlu0 %v1314_v63 }
0x1493   :  { %v1324_v2 = vmul.f32 %v1631_v61, %v1313_v62 }
0x1495   :  { %v1330_v3 = vadd.f32 %v1632_v0, %v1324_v2 }
0x1497   :  { %v1331_v4 = vmul.f32 0.1, %v1330_v3 }
0x1499   :  { %v1332_v5 = vmax.f32 %v1330_v3, %v1331_v4 }
0x151f   :  { %v1316_v6 = vpop.xlane.xlu0 %1315 }
0x1520   :  { %v1318_v7 = vsel %vm1317_vm9, %v1316_v6, %v3202_v33 }
0x1521   :  { %2581 = dma.done.wait [#allocation3 + $0x11], 512 }
0x1522   :  { %2582 = vsyncadd [#allocation3 + $0x11], 4294966784  ;;  %1955 = vmatprep.subr.bf16.mxu1 %v2596_v1  ;;  %1963 = vmatprep.mubr.msk.bf16.mxu1 %vm2597_vm0, %v2596_v1  ;;  %v1336_v8 = vld [vmem:[#allocation2 + $0x220] sm:$0xff]  ;;  %v1337_v9 = vld [vmem:[#allocation2 + $0x228] sm:$0xff]  ;;  %v1335_v11 = vpack.c.bf16 %v1332_v5, %v1332_v5 }
0x1523   :  { %1956 = vmatpush3.bf16.msra.mxu1 %v1336_v8  ;;  %v1338_v10 = vld [vmem:[#allocation2 + $0x230] sm:$0xff]  ;;  %v1339_v34 = vld [vmem:[#allocation2 + $0x238] sm:$0xff] }
0x1524   :  { %1957 = vmatprep.subr.bf16.mxu1 %v2596_v1  ;;  %v1633_v12 = vld [vmem:[#allocation7 + $0x11] ss:$0 sm:$0xff] }
0x1527   :  { %1958 = vmatpush3.bf16.msra.mxu1 %v1337_v9 }
0x1528   :  { %1959 = vmatprep.subr.bf16.mxu1 %v2596_v1 }
0x152b   :  { %1960 = vmatpush3.bf16.msra.mxu1 %v1338_v10 }
0x152c   :  { %1961 = vmatprep.subr.bf16.mxu1 %v2596_v1 }
0x152f   :  { %1962 = vmatpush3.bf16.msra.mxu1 %v1339_v34 }
0x1532   :  { %1964 = vmatmul.mubr.msk.bf16.vlgmr.msra.gmra.mrb[32].mxu1 %vm122_vm1, %v1335_v11 }
0x1605   :  { %v1382_v13 = vpop.f32.mrb[32].mxu1 }
0x1606   :  { %v1383_v14 = vadd.f32 %v1633_v12, %v1382_v13  ;;  %v1965_v15 = vpop.f32.mrb[33].mxu1 }
0x1607   :  { %v1385_v16 = vpop.f32.mrb[34].mxu1 }
0x1608   :  { %v1388_v17 = vmul.f32 0.1, %v1383_v14  ;;  %v1966_v18 = vpop.f32.mrb[35].mxu1 }
0x160a   :  { %v1389_v19 = vmax.f32 %v1383_v14, %v1388_v17 }
0x160b   :  { %2583 = dma.done.wait [#allocation3 + $0x12], 512 }
0x160c   :  { %2584 = vsyncadd [#allocation3 + $0x12], 4294966784  ;;  %1967 = vmatprep.subr.bf16.mxu0 %v2596_v1  ;;  %1975 = vmatprep.mubr.msk.bf16.mxu0 %vm2597_vm0, %v2596_v1  ;;  %v1393_v20 = vld [vmem:[#allocation2 + $0x240] sm:$0xff]  ;;  %v1394_v21 = vld [vmem:[#allocation2 + $0x248] sm:$0xff]  ;;  %v1392_v24 = vpack.c.bf16 %v1389_v19, %v1389_v19  ;;  %s2612_s1 = smov [#allocation9]  }
0x160d   :  { %1968 = vmatpush3.bf16.msra.mxu0 %v1393_v20  ;;  %v1395_v22 = vld [vmem:[#allocation2 + $0x250] sm:$0xff]  ;;  %v1396_v23 = vld [vmem:[#allocation2 + $0x258] sm:$0xff]  ;;  %s1455_s14 = sshll.u32 %s2612_s1, 4  ;;  %s1456_s14 = int_to_ptr.vmem [resolvable:$true] %s1455_s14 }
0x160e   :  { %1969 = vmatprep.subr.bf16.mxu0 %v2596_v1  ;;  %v1635_v25 = vld [vmem:[#allocation7 + $0x12] ss:$0 sm:$0xff]  ;;  %s2521_s20 = scalar_lea.vmem %s1456_s14, 128  ;;  %p2526_p3 = scmp.lt.s32.totalorder %s1456_s14, %s1456_s14 }
0x160f   :  { %p2522_p4 = scmp.ne.s32.totalorder %s1456_s14, %s2521_s20  ;;  %p2527_p5 = scmp.lt.s32.totalorder %s2521_s20, %s2521_s20 }
0x1611   :  { %1970 = vmatpush3.bf16.msra.mxu0 %v1394_v21  ;;  %p2528_p6 = por %p2527_p5, %p2526_p3 }
0x1612   :  { %1971 = vmatprep.subr.bf16.mxu0 %v2596_v1 }
0x1613   :  { %p2529_p7 = pnand %p2528_p6, %p2522_p4 }
0x1615   :  { %1972 = vmatpush3.bf16.msra.mxu0 %v1395_v22 }
0x1616   :  { %1973 = vmatprep.subr.bf16.mxu0 %v2596_v1 }
0x1619   :  { %1974 = vmatpush3.bf16.msra.mxu0 %v1396_v23 }
0x161c   :  { %1976 = vmatmul.mubr.msk.bf16.vlgmr.msra.gmra.mrb[36].mxu0 %vm122_vm1, %v1392_v24 }
0x16ef   :  { %v1439_v26 = vpop.f32.mrb[36].mxu0 }
0x16f0   :  { %v1440_v27 = vadd.f32 %v1635_v25, %v1439_v26  ;;  %v1977_v28 = vpop.f32.mrb[37].mxu0 }
0x16f1   :  { %v1442_v29 = vpop.f32.mrb[38].mxu0 }
0x16f2   :  { %v1445_v30 = vmul.f32 0.1, %v1440_v27  ;;  %v1978_v31 = vpop.f32.mrb[39].mxu0 }
0x16f4   :  { %v1446_v32 = vmax.f32 %v1440_v27, %v1445_v30 }
0x16f6   :  { %v1447_v33 = vadd.f32 %v1446_v32, %v1318_v7 }
0x16f8   :  { %1448 = vst [vmem:[#allocation9] sm:$0xff] %v1447_v33 }
0x16f9   :  { %2532 = shalt.err (!%p2529_p7)
}
0x16fa   :  { %s2533_s11 = scalar_lea.hbm %s3251_s3, 128 }
0x16fb   :  { %p2534_p8 = scmp.ne.s32.totalorder %s3251_s3, %s2533_s11  ;;  %p2537_p9 = scmp.lt.u32.totalorder %s2533_s11, %s3251_s3 }
0x16fd   :  { %p2539_p10 = pnand %p2537_p9, %p2534_p8 }
0x16ff   :  { %2542 = shalt.err (!%p2539_p10)
}
0x1700   :  { %1458 = dma.vmem_to_hbm [thread:$0]  %s1456_s14, 128, %s3251_s3, [#allocation6]  }
0x1701   :  { %2585 = dma.done.wait [#allocation6], 128  }
0x1702   :  { %2586 = vsyncadd [#allocation6], 4294967168 }
0x1703   :  { %1462 = vsyncpa [#allocation5], 1 }
0x1704   :  { %1463 = vsyncpa [#allocation8], 1 }
0x1705   :  { %1464 = vsyncpa [#allocation6], 1 }
0x1706   :  { %1465 = vsyncmov [#allocation3] }
0x1709   :  { %s1466_s18 = vpop.sfrf %1465 }
0x170a   :  { %p1637_p11 = scmp.ne.s32.totalorder %s1466_s18, 0 }
0x170c   :  { %1470 = shalt.err (%p1637_p11)  }
0x170d   :  { %1472 = vsyncmov [#allocation3 + $0x1] }
0x1710   :  { %s1473_s19 = vpop.sfrf %1472 }
0x1711   :  { %p1638_p12 = scmp.ne.s32.totalorder %s1473_s19, 0 }
0x1713   :  { %1477 = shalt.err (%p1638_p12)  }
0x1714   :  { %1479 = vsyncmov [#allocation3 + $0x2] }
0x1717   :  { %s1480_s21 = vpop.sfrf %1479 }
0x1718   :  { %p1639_p13 = scmp.ne.s32.totalorder %s1480_s21, 0 }
0x171a   :  { %1484 = shalt.err (%p1639_p13)  }
0x171b   :  { %1486 = vsyncmov [#allocation3 + $0x3] }
0x171e   :  { %s1487_s22 = vpop.sfrf %1486 }
0x171f   :  { %p1640_p0 = scmp.ne.s32.totalorder %s1487_s22, 0 }
0x1721   :  { %1491 = shalt.err (%p1640_p0)  }
0x1722   :  { %1493 = vsyncmov [#allocation3 + $0x4] }
0x1725   :  { %s1494_s3 = vpop.sfrf %1493 }
0x1726   :  { %p1641_p1 = scmp.ne.s32.totalorder %s1494_s3, 0 }
0x1728   :  { %1498 = shalt.err (%p1641_p1)  }
0x1729   :  { %1500 = vsyncmov [#allocation3 + $0x5] }
0x172c   :  { %s1501_s23 = vpop.sfrf %1500 }
0x172d   :  { %p1642_p2 = scmp.ne.s32.totalorder %s1501_s23, 0 }
0x172f   :  { %1505 = shalt.err (%p1642_p2)  }
0x1730   :  { %1507 = vsyncmov [#allocation3 + $0x6] }
0x1733   :  { %s1508_s24 = vpop.sfrf %1507 }
0x1734   :  { %p1643_p4 = scmp.ne.s32.totalorder %s1508_s24, 0 }
0x1736   :  { %1512 = shalt.err (%p1643_p4)  }
0x1737   :  { %1514 = vsyncmov [#allocation3 + $0x7] }
0x173a   :  { %s1515_s25 = vpop.sfrf %1514 }
0x173b   :  { %p1644_p3 = scmp.ne.s32.totalorder %s1515_s25, 0 }
0x173d   :  { %1519 = shalt.err (%p1644_p3)  }
0x173e   :  { %1521 = vsyncmov [#allocation3 + $0x8] }
0x1741   :  { %s1522_s27 = vpop.sfrf %1521 }
0x1742   :  { %p1645_p5 = scmp.ne.s32.totalorder %s1522_s27, 0 }
0x1744   :  { %1526 = shalt.err (%p1645_p5)  }
0x1745   :  { %1528 = vsyncmov [#allocation3 + $0x9] }
0x1748   :  { %s1529_s28 = vpop.sfrf %1528 }
0x1749   :  { %p1646_p6 = scmp.ne.s32.totalorder %s1529_s28, 0 }
0x174b   :  { %1533 = shalt.err (%p1646_p6)  }
0x174c   :  { %1535 = vsyncmov [#allocation3 + $0xa] }
0x174f   :  { %s1536_s29 = vpop.sfrf %1535 }
0x1750   :  { %p1647_p7 = scmp.ne.s32.totalorder %s1536_s29, 0 }
0x1752   :  { %1540 = shalt.err (%p1647_p7)  }
0x1753   :  { %1542 = vsyncmov [#allocation3 + $0xb] }
0x1756   :  { %s1543_s30 = vpop.sfrf %1542 }
0x1757   :  { %p1648_p8 = scmp.ne.s32.totalorder %s1543_s30, 0 }
0x1759   :  { %1547 = shalt.err (%p1648_p8)  }
0x175a   :  { %1549 = vsyncmov [#allocation3 + $0xc] }
0x175d   :  { %s1550_s4 = vpop.sfrf %1549 }
0x175e   :  { %p1649_p9 = scmp.ne.s32.totalorder %s1550_s4, 0 }
0x1760   :  { %1554 = shalt.err (%p1649_p9)  }
0x1761   :  { %1556 = vsyncmov [#allocation3 + $0xd] }
0x1764   :  { %s1557_s5 = vpop.sfrf %1556 }
0x1765   :  { %p1650_p10 = scmp.ne.s32.totalorder %s1557_s5, 0 }
0x1767   :  { %1561 = shalt.err (%p1650_p10)  }
0x1768   :  { %1563 = vsyncmov [#allocation3 + $0xe] }
0x176b   :  { %s1564_s6 = vpop.sfrf %1563 }
0x176c   :  { %p1651_p11 = scmp.ne.s32.totalorder %s1564_s6, 0 }
0x176e   :  { %1568 = shalt.err (%p1651_p11)  }
0x176f   :  { %1570 = vsyncmov [#allocation3 + $0xf] }
0x1772   :  { %s1571_s0 = vpop.sfrf %1570 }
0x1773   :  { %p1652_p12 = scmp.ne.s32.totalorder %s1571_s0, 0 }
0x1775   :  { %1575 = shalt.err (%p1652_p12)  }
0x1776   :  { %1577 = vsyncmov [#allocation3 + $0x10] }
0x1779   :  { %s1578_s7 = vpop.sfrf %1577 }
0x177a   :  { %p1653_p13 = scmp.ne.s32.totalorder %s1578_s7, 0 }
0x177c   :  { %1582 = shalt.err (%p1653_p13)  }
0x177d   :  { %1584 = vsyncmov [#allocation3 + $0x11] }
0x1780   :  { %s1585_s8 = vpop.sfrf %1584 }
0x1781   :  { %p1654_p0 = scmp.ne.s32.totalorder %s1585_s8, 0 }
0x1783   :  { %1589 = shalt.err (%p1654_p0)  }
0x1784   :  { %1591 = vsyncmov [#allocation3 + $0x12] }
0x1787   :  { %s1592_s9 = vpop.sfrf %1591 }
0x1788   :  { %p1655_p1 = scmp.ne.s32.totalorder %s1592_s9, 0 }
0x178a   :  { %1596 = shalt.err (%p1655_p1)  }

</bundles_post_ra>
